<compile_context>
chip_gen: v7x
topology: tpu7x:2x2x1
jax: 0.10.0
libtpu: 0.0.40
codegen_flags: <defaults>
</compile_context>

<pallas_src>
import jax
import jax.numpy as jnp
from jax.experimental import pallas as pl
from jax.experimental.pallas import tpu as pltpu

D_IN = 1024     # linear30 in_features
D_HID = 256     # linear30 out_features / layernorm / linear31
EPS = 1e-12


def fused_kernel(x235_ref, x233_ref, w1_ref, w2_ref, bias_ref, o_ref):
    # x235_ref: (tm, 1024) f32/bf16     x233_ref: (tm, 256) f32/bf16
    # w1_ref:   (1024, 256) bf16        w2_ref:   (256, 256) bf16 (LN-gamma folded in)
    # bias_ref: (2, 256) f32            row 0 = b1, row 1 = b2' = beta @ W2 + b2
    # o_ref:    (tm, 256)
    biases = bias_ref[...]
    b1 = biases[0:1, :]
    b2 = biases[1:2, :]

    # linear30: bf16 MXU matmul, f32 accumulation, f32 bias add.
    x = x235_ref[...].astype(jnp.bfloat16)
    h = jnp.dot(x, w1_ref[...], preferred_element_type=jnp.float32) + b1

    # dropout15 (eval/inference mode) -> identity; residual add in f32.
    # TODO(synk): training-mode stochastic dropout would use pltpu.prng_seed + prng_random_bits.
    y = h + x233_ref[...].astype(jnp.float32)

    # layernorm10 over last dim (256), eps=1e-12; the elementwise affine
    # (gamma, beta) is folded into W2'/b2' in the wrapper (exact in f32).
    mean = jnp.mean(y, axis=-1, keepdims=True)
    centered = y - mean
    var = jnp.mean(centered * centered, axis=-1, keepdims=True)
    yn = centered * jax.lax.rsqrt(var + EPS)

    # linear31 (with folded LN affine): bf16 MXU matmul, f32 accumulation.
    out = jnp.dot(yn.astype(jnp.bfloat16), w2_ref[...],
                  preferred_element_type=jnp.float32) + b2
    o_ref[...] = out.astype(o_ref.dtype)


def _round_up(x, m):
    return ((x + m - 1) // m) * m


def _num_tensorcores():
    """Grid-shardable TensorCores per chip: v7x (and v4 megacore) -> 2, v5e/v6e -> 1."""
    try:
        kind = jax.devices()[0].device_kind.lower()
    except Exception:
        return 1
    if "v7" in kind or "7x" in kind or "v4" in kind:
        return 2
    return 1


def _pick_tile(M, num_tc):
    """Row-tile size.

    Single-TC chips (v5e/v6e): one big step when it fits -- the ~0.35us/step
    fixed cost dominates a ~2-3us HBM-bound kernel, so extra steps only hurt.
    2-TC chips (v7x): smallest EVEN number of grid steps with tiles <= cap so
    both cores get balanced work under dimension_semantics=("parallel",).
    """
    cap = 1024   # 1024x1024 f32 x235 tile = 4 MiB; double-buffered well under VMEM limits.
    if num_tc <= 1:
        if M <= cap:
            return M                       # grid=(1,); block == full row extent
        return cap                         # ragged last block handled by Pallas
    steps = max(2, 2 * pl.cdiv(pl.cdiv(M, cap), 2))   # smallest even step count
    tm = min(cap, _round_up(pl.cdiv(M, steps), 8))
    return tm


def fused_forward(x235, x233, w1, b1, w2, b2, gamma, beta, *, tm=None):
    """x235: [B, S, 1024], x233: [B, S, 256].  Weights are stored [in, out]."""
    B, S, _ = x235.shape
    M = B * S

    x235_2d = x235.reshape(M, D_IN)
    x233_2d = x233.reshape(M, D_HID)

    # One-time parameter prep (exact in f32):
    #   (yn*gamma + beta) @ W2 + b2 == yn @ (gamma[:,None] * W2) + (beta @ W2 + b2)
    w2_f32 = w2.astype(jnp.float32)
    gamma_f32 = gamma.astype(jnp.float32)
    beta_f32 = beta.astype(jnp.float32)
    w1_bf = w1.astype(jnp.bfloat16)
    w2_bf = (gamma_f32[:, None] * w2_f32).astype(jnp.bfloat16)
    b2_fold = beta_f32 @ w2_f32 + b2.astype(jnp.float32)
    biases = jnp.stack([b1.astype(jnp.float32), b2_fold], axis=0)   # (2, 256)

    if tm is None:
        tm = _pick_tile(M, _num_tensorcores())
    grid = (pl.cdiv(M, tm),)

    # Advisory cost for XLA's scheduler.
    bpe_x = jnp.dtype(x235.dtype).itemsize
    bpe_r = jnp.dtype(x233.dtype).itemsize
    flops = 2 * M * (D_IN * D_HID + D_HID * D_HID)
    bytes_accessed = (M * D_IN * bpe_x                 # x235 read
                      + M * D_HID * (bpe_r + bpe_x)    # x233 read + output write
                      + D_IN * D_HID * 2               # W1 (bf16)
                      + D_HID * D_HID * 2              # W2' (bf16)
                      + 2 * D_HID * 4)                 # packed biases
    cost = pl.CostEstimate(flops=flops, transcendentals=M,
                           bytes_accessed=bytes_accessed)

    out_2d = pl.pallas_call(
        fused_kernel,
        out_shape=jax.ShapeDtypeStruct((M, D_HID), x235.dtype),
        grid_spec=pltpu.PrefetchScalarGridSpec(
            num_scalar_prefetch=0,
            grid=grid,
            in_specs=[
                pl.BlockSpec((tm, D_IN), lambda i: (i, 0)),       # x235 row tile
                pl.BlockSpec((tm, D_HID), lambda i: (i, 0)),      # x233 row tile
                pl.BlockSpec((D_IN, D_HID), lambda i: (0, 0)),    # W1 (resident)
                pl.BlockSpec((D_HID, D_HID), lambda i: (0, 0)),   # W2' (resident)
                pl.BlockSpec((2, D_HID), lambda i: (0, 0)),       # [b1; b2'] (resident)
            ],
            out_specs=pl.BlockSpec((tm, D_HID), lambda i: (i, 0)),
        ),
        compiler_params=pltpu.CompilerParams(
            dimension_semantics=("parallel",)),
        cost_estimate=cost,
    )(x235_2d, x233_2d, w1_bf, w2_bf, biases)

    return out_2d.reshape(B, S, D_HID)


def reference_forward(x235, x233, w1, b1, w2, b2, gamma, beta):
    h = jnp.einsum("bsk,kd->bsd", x235, w1) + b1
    y = h + x233                                        # dropout (eval) = identity
    mean = jnp.mean(y, axis=-1, keepdims=True)
    var = jnp.mean((y - mean) ** 2, axis=-1, keepdims=True)
    yn = (y - mean) / jnp.sqrt(var + EPS)
    yn = yn * gamma + beta
    return jnp.einsum("bsd,de->bse", yn, w2) + b2


if __name__ == "__main__":
    key = jax.random.PRNGKey(0)
    k1, k2, k3, k4, k5, k6, k7, k8 = jax.random.split(key, 8)

    B, S = 1, 384  # matches the module's [1, 384, *] inputs

    x235 = jax.random.normal(k1, (B, S, D_IN), dtype=jnp.float32)
    x233 = jax.random.normal(k2, (B, S, D_HID), dtype=jnp.float32)

    # Deterministic parameter init (Linear weights stored as [in, out] for the kernel).
    w1 = jax.random.normal(k3, (D_IN, D_HID), dtype=jnp.float32) * 0.02
    b1 = jax.random.normal(k4, (D_HID,), dtype=jnp.float32) * 0.02
    w2 = jax.random.normal(k5, (D_HID, D_HID), dtype=jnp.float32) * 0.02
    b2 = jax.random.normal(k6, (D_HID,), dtype=jnp.float32) * 0.02
    gamma = 1.0 + 0.1 * jax.random.normal(k7, (D_HID,), dtype=jnp.float32)
    beta = 0.1 * jax.random.normal(k8, (D_HID,), dtype=jnp.float32)

    out = fused_forward(x235, x233, w1, b1, w2, b2, gamma, beta)
    out = jax.block_until_ready(out)

    ref = reference_forward(x235, x233, w1, b1, w2, b2, gamma, beta)
    assert out.shape == (B, S, D_HID)
    # bf16 MXU operands -> loosened tolerance vs. the pure-f32 reference.
    assert jnp.allclose(out, ref, atol=5e-2, rtol=5e-2), "mismatch vs reference"

    print("KERNEL_OK")
</pallas_src>

<mosaic_0001>
module attributes {stable_mosaic.version = 11 : i64} {
  func.func @fused_kernel(%arg0: i32, %arg1: memref<384x1024xf32, #tpu.memory_space<vmem>>, %arg2: memref<384x256xf32, #tpu.memory_space<vmem>>, %arg3: memref<1024x256xbf16, #tpu.memory_space<vmem>>, %arg4: memref<256x256xbf16, #tpu.memory_space<vmem>>, %arg5: memref<2x256xf32, #tpu.memory_space<vmem>>, %arg6: memref<384x256xf32, #tpu.memory_space<vmem>>) attributes {dimension_semantics = [#tpu.dimension_semantics<parallel>], iteration_bounds = array<i64: 1>, scalar_prefetch = 0 : i64, scratch_operands = 0 : i64, tpu.core_type = #tpu.core_type<tc>, window_params = [{transform_indices = @transform_0, window_bounds = array<i64: 384, 1024>}, {transform_indices = @transform_1, window_bounds = array<i64: 384, 256>}, {pipeline_mode = #tpu.pipeline_mode<synchronous>, transform_indices = @transform_2, window_bounds = array<i64: 1024, 256>}, {pipeline_mode = #tpu.pipeline_mode<synchronous>, transform_indices = @transform_3, window_bounds = array<i64: 256, 256>}, {pipeline_mode = #tpu.pipeline_mode<synchronous>, transform_indices = @transform_4, window_bounds = array<i64: 2, 256>}, {transform_indices = @transform_5, window_bounds = array<i64: 384, 256>}]} {
    %c0 = arith.constant 0 : index
    %c0_0 = arith.constant 0 : index
    %0 = vector.load %arg5[%c0, %c0_0] : memref<2x256xf32, #tpu.memory_space<vmem>>, vector<2x256xf32>
    %1 = vector.extract_strided_slice %0 {offsets = [0, 0], sizes = [1, 256], strides = [1, 1]} : vector<2x256xf32> to vector<1x256xf32>
    %2 = vector.extract_strided_slice %0 {offsets = [1, 0], sizes = [1, 256], strides = [1, 1]} : vector<2x256xf32> to vector<1x256xf32>
    %c0_1 = arith.constant 0 : index
    %c0_2 = arith.constant 0 : index
    %3 = vector.load %arg1[%c0_1, %c0_2] : memref<384x1024xf32, #tpu.memory_space<vmem>>, vector<384x1024xf32>
    %4 = arith.truncf %3 : vector<384x1024xf32> to vector<384x1024xbf16>
    %c0_3 = arith.constant 0 : index
    %c0_4 = arith.constant 0 : index
    %5 = vector.load %arg3[%c0_3, %c0_4] : memref<1024x256xbf16, #tpu.memory_space<vmem>>, vector<1024x256xbf16>
    %cst = arith.constant dense<0.000000e+00> : vector<384x256xf32>
    %6 = tpu.matmul %4, %5, %cst {dimension_numbers = #tpu.dot_dimension_numbers<[1], [0], [0], [1], [0, 0, 1, 1], [], []>} : vector<384x1024xbf16>, vector<1024x256xbf16>, vector<384x256xf32> -> vector<384x256xf32>
    %7 = vector.broadcast %1 : vector<1x256xf32> to vector<384x256xf32>
    %8 = arith.addf %6, %7 : vector<384x256xf32>
    %c0_5 = arith.constant 0 : index
    %c0_6 = arith.constant 0 : index
    %9 = vector.load %arg2[%c0_5, %c0_6] : memref<384x256xf32, #tpu.memory_space<vmem>>, vector<384x256xf32>
    %10 = arith.addf %8, %9 : vector<384x256xf32>
    %cst_7 = arith.constant dense<0.000000e+00> : vector<384xf32>
    %11 = vector.multi_reduction <add>, %10, %cst_7 [1] : vector<384x256xf32> to vector<384xf32>
    %12 = vector.shape_cast %11 : vector<384xf32> to vector<384x1xf32>
    %cst_8 = arith.constant 2.560000e+02 : f32
    %13 = vector.broadcast %cst_8 : f32 to vector<384x1xf32>
    %14 = arith.divf %12, %13 : vector<384x1xf32>
    %15 = vector.broadcast %14 : vector<384x1xf32> to vector<384x256xf32>
    %16 = arith.subf %10, %15 : vector<384x256xf32>
    %17 = arith.mulf %16, %16 : vector<384x256xf32>
    %cst_9 = arith.constant dense<0.000000e+00> : vector<384xf32>
    %18 = vector.multi_reduction <add>, %17, %cst_9 [1] : vector<384x256xf32> to vector<384xf32>
    %19 = vector.shape_cast %18 : vector<384xf32> to vector<384x1xf32>
    %cst_10 = arith.constant 2.560000e+02 : f32
    %20 = vector.broadcast %cst_10 : f32 to vector<384x1xf32>
    %21 = arith.divf %19, %20 : vector<384x1xf32>
    %cst_11 = arith.constant 9.99999996E-13 : f32
    %22 = vector.broadcast %cst_11 : f32 to vector<384x1xf32>
    %23 = arith.addf %21, %22 : vector<384x1xf32>
    %24 = math.rsqrt %23 : vector<384x1xf32>
    %25 = vector.broadcast %24 : vector<384x1xf32> to vector<384x256xf32>
    %26 = arith.mulf %16, %25 : vector<384x256xf32>
    %27 = arith.truncf %26 : vector<384x256xf32> to vector<384x256xbf16>
    %c0_12 = arith.constant 0 : index
    %c0_13 = arith.constant 0 : index
    %28 = vector.load %arg4[%c0_12, %c0_13] : memref<256x256xbf16, #tpu.memory_space<vmem>>, vector<256x256xbf16>
    %cst_14 = arith.constant dense<0.000000e+00> : vector<384x256xf32>
    %29 = tpu.matmul %27, %28, %cst_14 {dimension_numbers = #tpu.dot_dimension_numbers<[1], [0], [0], [1], [0, 0, 1, 1], [], []>} : vector<384x256xbf16>, vector<256x256xbf16>, vector<384x256xf32> -> vector<384x256xf32>
    %30 = vector.broadcast %2 : vector<1x256xf32> to vector<384x256xf32>
    %31 = arith.addf %29, %30 : vector<384x256xf32>
    %c0_15 = arith.constant 0 : index
    %c0_16 = arith.constant 0 : index
    %32 = vector.load %arg6[%c0_15, %c0_16] : memref<384x256xf32, #tpu.memory_space<vmem>>, vector<384x256xf32>
    tpu.vector_store %arg6[%c0_15, %c0_16], %31 {strides = array<i32>} : memref<384x256xf32, #tpu.memory_space<vmem>>, vector<384x256xf32>,
    return
  }
  func.func @transform_0(%arg0: i32) -> (i32, i32) {
    %c0_i32 = arith.constant 0 : i32
    %c0_i32_0 = arith.constant 0 : i32
    return %arg0, %c0_i32 : i32, i32
  }
  func.func @transform_1(%arg0: i32) -> (i32, i32) {
    %c0_i32 = arith.constant 0 : i32
    %c0_i32_0 = arith.constant 0 : i32
    return %arg0, %c0_i32 : i32, i32
  }
  func.func @transform_2(%arg0: i32) -> (i32, i32) {
    %c0_i32 = arith.constant 0 : i32
    %c0_i32_0 = arith.constant 0 : i32
    %c0_i32_1 = arith.constant 0 : i32
    return %c0_i32, %c0_i32_0 : i32, i32
  }
  func.func @transform_3(%arg0: i32) -> (i32, i32) {
    %c0_i32 = arith.constant 0 : i32
    %c0_i32_0 = arith.constant 0 : i32
    %c0_i32_1 = arith.constant 0 : i32
    return %c0_i32, %c0_i32_0 : i32, i32
  }
  func.func @transform_4(%arg0: i32) -> (i32, i32) {
    %c0_i32 = arith.constant 0 : i32
    %c0_i32_0 = arith.constant 0 : i32
    %c0_i32_1 = arith.constant 0 : i32
    return %c0_i32, %c0_i32_0 : i32, i32
  }
  func.func @transform_5(%arg0: i32) -> (i32, i32) {
    %c0_i32 = arith.constant 0 : i32
    %c0_i32_0 = arith.constant 0 : i32
    return %arg0, %c0_i32 : i32, i32
  }
}

</mosaic_0001>

<bundles_post_ra>
// kernel: tpu_custom_call.1
= control target key start
LH: loop header
LB: loop body
LE: loop exit
PB: predicated region body
PF: predicated region fallthrough
CT: control target
= control target key end

     0   :  { %10 = vsyncpa [#allocation3], 0  ;;  %s6999_s0 = inlined_call_operand.hbm [shape: f32[384,1024], index: 0, kind: input, shape index: {}]   ;;  %s7000_s1 = inlined_call_operand.hbm [shape: f32[384,256], index: 1, kind: input, shape index: {}]   ;;  %s7001_s2 = inlined_call_operand.hbm [shape: bf16[1024,256], index: 2, kind: input, shape index: {}]   ;;  %s7002_s3 = inlined_call_operand.hbm [shape: bf16[256,256], index: 3, kind: input, shape index: {}]   ;;  %s7003_s4 = inlined_call_operand.hbm [shape: f32[2,256], index: 4, kind: input, shape index: {}]   ;;  %s7004_s5 = inlined_call_operand.hbm [shape: f32[384,256], index: 5, kind: output, shape index: {}]  }
   0x1   :  { %11 = vsyncpa [#allocation6], 0 }
   0x2   :  { %12 = vsyncpa [#allocation9], 0 }
   0x3   :  { %13 = vsyncpa [#allocation4], 0  ;;  %s5214_s18 = smov [#allocation5]   ;;  %s5074_s22 = scalar_lea.hbm %s7000_s1, 12288 }
   0x4   :  { %s31_s19 = sshll.u32 %s5214_s18, 4  ;;  %p5075_p0 = scmp.ne.s32.totalorder %s7000_s1, %s5074_s22  ;;  %s32_s19 = int_to_ptr.vmem [resolvable:$true] %s31_s19 }
   0x5   :  { %p5078_p1 = scmp.lt.u32.totalorder %s5074_s22, %s7000_s1 }
   0x7   :  { %p5080_p2 = pnand %p5078_p1, %p5075_p0 }
   0x9   :  { %5083 = shalt.err (!%p5080_p2)
}
   0xa   :  { %s5084_s27 = scalar_lea.vmem %s32_s19, 12288  ;;  %p5089_p4 = scmp.lt.s32.totalorder %s32_s19, %s32_s19 }
   0xb   :  { %p5085_p3 = scmp.ne.s32.totalorder %s32_s19, %s5084_s27  ;;  %p5090_p5 = scmp.lt.s32.totalorder %s5084_s27, %s5084_s27 }
   0xd   :  { %p5091_p6 = por %p5090_p5, %p5089_p4 }
   0xf   :  { %p5092_p7 = pnand %p5091_p6, %p5085_p3 }
  0x11   :  { %5095 = shalt.err (!%p5092_p7)
}
  0x12   :  { %s5215_s28 = smov 256   ;;  %s5216_s29 = smov 16  }
  0x13   :  { %37 = dma.hbm_to_vmem [thread:$0]  %s7000_s1, 12288, %s32_s19, [#allocation6], %s5215_s28, %s5215_s28, %s5216_s29  }
  0x14   :  { %s5217_s7 = smov [#allocation8]   ;;  %s5218_s9 = smov [#allocation2]  }
  0x15   :  { %s55_s8 = sshll.u32 %s5217_s7, 4  ;;  %s19_s10 = sshll.u32 %s5218_s9, 4  ;;  %s56_s8 = int_to_ptr.vmem [resolvable:$true] %s55_s8  ;;  %s20_s10 = int_to_ptr.vmem [resolvable:$true] %s19_s10 }
  0x16   :  { %s5096_s13 = scalar_lea.hbm %s7002_s3, 4096 }
  0x17   :  { %p5097_p8 = scmp.ne.s32.totalorder %s7002_s3, %s5096_s13  ;;  %p5100_p9 = scmp.lt.u32.totalorder %s5096_s13, %s7002_s3 }
  0x19   :  { %p5102_p10 = pnand %p5100_p9, %p5097_p8 }
  0x1b   :  { %5105 = shalt.err (!%p5102_p10)
}
  0x1c   :  { %s5106_s1 = scalar_lea.vmem %s56_s8, 4096  ;;  %p5111_p12 = scmp.lt.s32.totalorder %s56_s8, %s56_s8 }
  0x1d   :  { %p5107_p11 = scmp.ne.s32.totalorder %s56_s8, %s5106_s1  ;;  %p5112_p13 = scmp.lt.s32.totalorder %s5106_s1, %s5106_s1 }
  0x1f   :  { %p5113_p0 = por %p5112_p13, %p5111_p12 }
  0x21   :  { %p5114_p1 = pnand %p5113_p0, %p5107_p11 }
  0x23   :  { %5117 = shalt.err (!%p5114_p1)
}
  0x24   :  { %s5219_s18 = smov 128   ;;  %s5220_s19 = smov 8  }
  0x25   :  { %61 = dma.hbm_to_vmem [thread:$0]  %s7002_s3, 4096, %s56_s8, [#allocation9], %s5219_s18, %s5219_s18, %s5220_s19  }
  0x26   :  { %s5118_s24 = scalar_lea.hbm %s6999_s0, 49152 }
  0x27   :  { %p5119_p2 = scmp.ne.s32.totalorder %s6999_s0, %s5118_s24  ;;  %p5122_p3 = scmp.lt.u32.totalorder %s5118_s24, %s6999_s0 }
  0x29   :  { %p5124_p4 = pnand %p5122_p3, %p5119_p2 }
  0x2b   :  { %5127 = shalt.err (!%p5124_p4)
}
  0x2c   :  { %s5128_s6 = scalar_lea.vmem %s20_s10, 49152  ;;  %p5133_p6 = scmp.lt.s32.totalorder %s20_s10, %s20_s10 }
  0x2d   :  { %p5129_p5 = scmp.ne.s32.totalorder %s20_s10, %s5128_s6  ;;  %p5134_p7 = scmp.lt.s32.totalorder %s5128_s6, %s5128_s6 }
  0x2f   :  { %p5135_p8 = por %p5134_p7, %p5133_p6 }
  0x31   :  { %p5136_p9 = pnand %p5135_p8, %p5129_p5 }
  0x33   :  { %5139 = shalt.err (!%p5136_p9)
}
  0x34   :  { %s5221_s3 = smov 1024   ;;  %s5222_s7 = smov 64  }
  0x35   :  { %25 = dma.hbm_to_vmem [thread:$0]  %s6999_s0, 49152, %s20_s10, [#allocation3], %s5221_s3, %s5221_s3, %s5222_s7  }
  0x36   :  { %s5223_s11 = smov [#allocation7]   ;;  %s5224_s13 = smov [#allocation10]  }
  0x37   :  { %s43_s12 = sshll.u32 %s5223_s11, 4  ;;  %s68_s14 = sshll.u32 %s5224_s13, 4  ;;  %s44_s12 = int_to_ptr.vmem [resolvable:$true] %s43_s12  ;;  %s69_s14 = int_to_ptr.vmem [resolvable:$true] %s68_s14 }
  0x38   :  { %s5140_s17 = scalar_lea.hbm %s7001_s2, 16384 }
  0x39   :  { %p5141_p10 = scmp.ne.s32.totalorder %s7001_s2, %s5140_s17  ;;  %p5144_p11 = scmp.lt.u32.totalorder %s5140_s17, %s7001_s2 }
  0x3b   :  { %p5146_p12 = pnand %p5144_p11, %p5141_p10 }
  0x3d   :  { %5149 = shalt.err (!%p5146_p12)
}
  0x3e   :  { %s5150_s0 = scalar_lea.vmem %s44_s12, 16384  ;;  %p5155_p0 = scmp.lt.s32.totalorder %s44_s12, %s44_s12 }
  0x3f   :  { %p5151_p13 = scmp.ne.s32.totalorder %s44_s12, %s5150_s0  ;;  %p5156_p1 = scmp.lt.s32.totalorder %s5150_s0, %s5150_s0 }
  0x41   :  { %p5157_p2 = por %p5156_p1, %p5155_p0 }
  0x43   :  { %p5158_p3 = pnand %p5157_p2, %p5151_p13 }
  0x45   :  { %5161 = shalt.err (!%p5158_p3)
}
  0x46   :  { %49 = dma.hbm_to_vmem [thread:$0]  %s7001_s2, 16384, %s44_s12, [#allocation6], %s5219_s18, %s5219_s18, %s5220_s19  }
  0x47   :  { %s5162_s26 = scalar_lea.hbm %s7003_s4, 64 }
  0x48   :  { %p5163_p4 = scmp.ne.s32.totalorder %s7003_s4, %s5162_s26  ;;  %p5166_p5 = scmp.lt.u32.totalorder %s5162_s26, %s7003_s4 }
  0x4a   :  { %p5168_p6 = pnand %p5166_p5, %p5163_p4 }
  0x4c   :  { %5171 = shalt.err (!%p5168_p6)
}
  0x4d   :  { %s5172_s7 = scalar_lea.vmem %s69_s14, 64  ;;  %p5177_p8 = scmp.lt.s32.totalorder %s69_s14, %s69_s14 }
  0x4e   :  { %p5173_p7 = scmp.ne.s32.totalorder %s69_s14, %s5172_s7  ;;  %p5178_p9 = scmp.lt.s32.totalorder %s5172_s7, %s5172_s7 }
  0x50   :  { %p5179_p10 = por %p5178_p9, %p5177_p8 }
  0x52   :  { %p5180_p11 = pnand %p5179_p10, %p5173_p7 }
  0x54   :  { %5183 = shalt.err (!%p5180_p11)
}
  0x55   :  { %71 = dma.hbm_to_vmem [thread:$0]  %s7003_s4, 64, %s69_s14, [#allocation9]  }
  0x56   :  { %5206 = dma.done.wait [#allocation3], 49152  }
  0x57   :  { %5207 = vsyncadd [#allocation3], 4294918144 }
  0x58   :  { %5208 = dma.done.wait [#allocation6], 28672  }
  0x59   :  { %5209 = vsyncadd [#allocation6], 4294938624 }
  0x5a   :  { %5210 = dma.done.wait [#allocation9], 4160  }
  0x5b   :  { %5211 = vsyncadd [#allocation9], 4294963136  ;;  %v5325_v0 = vld [vmem:[#allocation7 + $0x104] ss:$8 sps:$4 sm:$0xff]   ;;  %v5327_v1 = vld [vmem:[#allocation7 + $0x100] ss:$8 sps:$4 sm:$0xff]  }
  0x5c   :  { %1724 = vmatprep.subr.bf16.mxu0 %v5325_v0  ;;  %v5330_v2 = vld [vmem:[#allocation7 + $0x114] ss:$8 sps:$4 sm:$0xff]   ;;  %v5333_v3 = vld [vmem:[#allocation7 + $0x110] ss:$8 sps:$4 sm:$0xff]   ;;  %v5336_v4 = vld [vmem:[#allocation7 + $0x124] ss:$8 sps:$4 sm:$0xff]  }
  0x5d   :  { %1725 = vmatpush1.bf16.msra.mxu0 %v5327_v1  ;;  %v5339_v5 = vld [vmem:[#allocation7 + $0x120] ss:$8 sps:$4 sm:$0xff]   ;;  %v5342_v6 = vld [vmem:[#allocation7 + $0x134] ss:$8 sps:$4 sm:$0xff]   ;;  %v5345_v7 = vld [vmem:[#allocation7 + $0x130] ss:$8 sps:$4 sm:$0xff]  }
  0x5e   :  { %1726 = vmatprep.subr.bf16.mxu0 %v5330_v2  ;;  %v5348_v8 = vld [vmem:[#allocation7 + $0x144] ss:$8 sps:$4 sm:$0xff]   ;;  %v5351_v9 = vld [vmem:[#allocation7 + $0x140] ss:$8 sps:$4 sm:$0xff]   ;;  %v5354_v10 = vld [vmem:[#allocation7 + $0x154] ss:$8 sps:$4 sm:$0xff]  }
  0x5f   :  { %v5357_v11 = vld [vmem:[#allocation7 + $0x150] ss:$8 sps:$4 sm:$0xff]   ;;  %v5360_v12 = vld [vmem:[#allocation7 + $0x164] ss:$8 sps:$4 sm:$0xff]   ;;  %v5363_v16 = vld [vmem:[#allocation7 + $0x160] ss:$8 sps:$4 sm:$0xff]  }
  0x60   :  { %v91_v13 = vld [vmem:[#allocation2 + $0x18] sm:$0xff]  ;;  %v5372_v19 = vld [vmem:[#allocation7 + $0x184] ss:$8 sps:$4 sm:$0xff]   ;;  %v5375_v20 = vld [vmem:[#allocation7 + $0x180] ss:$8 sps:$4 sm:$0xff]   ;;  %s5225_s4 = smov [#allocation11]  }
  0x61   :  { %1727 = vmatpush1.bf16.msra.mxu0 %v5333_v3  ;;  %v99_v14 = vld [vmem:[#allocation2 + $0x58] sm:$0xff]  ;;  %v5384_v23 = vld [vmem:[#allocation7 + $0x1a4] ss:$8 sps:$4 sm:$0xff]   ;;  %v5387_v24 = vld [vmem:[#allocation7 + $0x1a0] ss:$8 sps:$4 sm:$0xff]   ;;  %s4136_s19 = sshll.u32 %s5225_s4, 4  ;;  %s4137_s19 = int_to_ptr.vmem [resolvable:$true] %s4136_s19 }
  0x62   :  { %1728 = vmatprep.subr.bf16.mxu0 %v5336_v4  ;;  %v475_v15 = vpack.c.bf16 %v99_v14, %v91_v13  ;;  %v5366_v17 = vld [vmem:[#allocation7 + $0x174] ss:$8 sps:$4 sm:$0xff]   ;;  %v5369_v18 = vld [vmem:[#allocation7 + $0x170] ss:$8 sps:$4 sm:$0xff]   ;;  %v5396_v27 = vld [vmem:[#allocation7 + $0x1c4] ss:$8 sps:$4 sm:$0xff]   ;;  %p5189_p13 = scmp.lt.s32.totalorder %s4137_s19, %s4137_s19 }
  0x63   :  { %v5378_v21 = vld [vmem:[#allocation7 + $0x194] ss:$8 sps:$4 sm:$0xff]   ;;  %v5381_v22 = vld [vmem:[#allocation7 + $0x190] ss:$8 sps:$4 sm:$0xff]   ;;  %v5399_v28 = vld [vmem:[#allocation7 + $0x1c0] ss:$8 sps:$4 sm:$0xff]  }
  0x64   :  { %1756 = vmatprep.mubr.bf16.mxu0 %v475_v15  ;;  %v5390_v25 = vld [vmem:[#allocation7 + $0x1b4] ss:$8 sps:$4 sm:$0xff]   ;;  %v5393_v26 = vld [vmem:[#allocation7 + $0x1b0] ss:$8 sps:$4 sm:$0xff]   ;;  %v5408_v31 = vld [vmem:[#allocation7 + $0x1e4] ss:$8 sps:$4 sm:$0xff]  }
  0x65   :  { %1729 = vmatpush1.bf16.msra.mxu0 %v5339_v5  ;;  %v5402_v29 = vld [vmem:[#allocation7 + $0x1d4] ss:$8 sps:$4 sm:$0xff]   ;;  %v5405_v30 = vld [vmem:[#allocation7 + $0x1d0] ss:$8 sps:$4 sm:$0xff]   ;;  %v5411_v32 = vld [vmem:[#allocation7 + $0x1e0] ss:$8 sps:$4 sm:$0xff]  }
  0x66   :  { %1730 = vmatprep.subr.bf16.mxu0 %v5342_v6  ;;  %v5414_v33 = vld [vmem:[#allocation7 + $0x1f4] ss:$8 sps:$4 sm:$0xff]   ;;  %v5416_v34 = vld [vmem:[#allocation7 + $0x1f0] ss:$8 sps:$4 sm:$0xff]   ;;  %v4788_v37 = vld [vmem:[#allocation7 + $0x204] ss:$8 sps:$4 sm:$0xff]  }
  0x67   :  { %v90_v35 = vld [vmem:[#allocation2 + $0x10] sm:$0xff]  ;;  %v107_v38 = vld [vmem:[#allocation2 + $0x98] sm:$0xff]  ;;  %v4834_v40 = vld [vmem:[#allocation7 + $0x4] ss:$8 sps:$4 sm:$0xff]   ;;  %s5184_s8 = scalar_lea.vmem %s4137_s19, 12288 }
  0x68   :  { %v98_v36 = vld [vmem:[#allocation2 + $0x50] sm:$0xff]  ;;  %v115_v39 = vld [vmem:[#allocation2 + $0xd8] sm:$0xff]  ;;  %1451 = vmatprep.subr.bf16.mxu1 %v4834_v40  ;;  %v4839_v42 = vld [vmem:[#allocation7] ss:$8 sps:$4 sm:$0xff]   ;;  %p5185_p12 = scmp.ne.s32.totalorder %s4137_s19, %s5184_s8  ;;  %p5190_p0 = scmp.lt.s32.totalorder %s5184_s8, %s5184_s8 }
  0x69   :  { %1731 = vmatpush1.bf16.msra.mxu0 %v5345_v7  ;;  %v474_v41 = vpack.c.bf16 %v98_v36, %v90_v35  ;;  %v4786_v43 = vld [vmem:[#allocation7 + $0x200] ss:$8 sps:$4 sm:$0xff]   ;;  %v483_v44 = vpack.c.bf16 %v115_v39, %v107_v38  ;;  %v4840_v45 = vld [vmem:[#allocation7 + $0x14] ss:$8 sps:$4 sm:$0xff]   ;;  %1452 = vmatpush1.bf16.msra.mxu1 %v4839_v42  ;;  %v4842_v47 = vld [vmem:[#allocation7 + $0x10] ss:$8 sps:$4 sm:$0xff]  }
  0x6a   :  { %1732 = vmatprep.subr.bf16.mxu0 %v5348_v8  ;;  %v4791_v46 = vld [vmem:[#allocation7 + $0x214] ss:$8 sps:$4 sm:$0xff]   ;;  %v4789_v48 = vld [vmem:[#allocation7 + $0x210] ss:$8 sps:$4 sm:$0xff]   ;;  %1453 = vmatprep.subr.bf16.mxu1 %v4840_v45  ;;  %v4843_v50 = vld [vmem:[#allocation7 + $0x24] ss:$8 sps:$4 sm:$0xff]   ;;  %p5191_p1 = por %p5190_p0, %p5189_p13 }
  0x6b   :  { %v106_v49 = vld [vmem:[#allocation2 + $0x90] sm:$0xff]  ;;  %v4794_v52 = vld [vmem:[#allocation7 + $0x224] ss:$8 sps:$4 sm:$0xff]   ;;  %v123_v53 = vld [vmem:[#allocation2 + $0x118] sm:$0xff] }
  0x6c   :  { %v114_v51 = vld [vmem:[#allocation2 + $0xd0] sm:$0xff]  ;;  %v131_v54 = vld [vmem:[#allocation2 + $0x158] sm:$0xff]  ;;  %v4845_v55 = vld [vmem:[#allocation7 + $0x20] ss:$8 sps:$4 sm:$0xff]   ;;  %p5192_p2 = pnand %p5191_p1, %p5185_p12 }
  0x6d   :  { %1733 = vmatpush1.bf16.msra.mxu0 %v5351_v9  ;;  %1454 = vmatpush1.bf16.msra.mxu1 %v4842_v47  ;;  %v4846_v56 = vld [vmem:[#allocation7 + $0x34] ss:$8 sps:$4 sm:$0xff]   ;;  %v482_v57 = vpack.c.bf16 %v114_v51, %v106_v49  ;;  %v4792_v58 = vld [vmem:[#allocation7 + $0x220] ss:$8 sps:$4 sm:$0xff]   ;;  %v491_v59 = vpack.c.bf16 %v131_v54, %v123_v53  ;;  %v4851_v61 = vld [vmem:[#allocation7 + $0x30] ss:$8 sps:$4 sm:$0xff]  }
  0x6e   :  { %1734 = vmatprep.subr.bf16.mxu0 %v5354_v10  ;;  %1455 = vmatprep.subr.bf16.mxu1 %v4843_v50  ;;  %v4797_v60 = vld [vmem:[#allocation7 + $0x234] ss:$8 sps:$4 sm:$0xff]   ;;  %v4852_v13 = vld [vmem:[#allocation7 + $0x44] ss:$8 sps:$4 sm:$0xff]   ;;  %v4795_v14 = vld [vmem:[#allocation7 + $0x230] ss:$8 sps:$4 sm:$0xff]  }
  0x6f   :  { %v122_v62 = vld [vmem:[#allocation2 + $0x110] sm:$0xff]  ;;  %v139_v15 = vld [vmem:[#allocation2 + $0x198] sm:$0xff]  ;;  %v4800_v36 = vld [vmem:[#allocation7 + $0x244] ss:$8 sps:$4 sm:$0xff]  }
  0x70   :  { %v130_v63 = vld [vmem:[#allocation2 + $0x150] sm:$0xff]  ;;  %v147_v35 = vld [vmem:[#allocation2 + $0x1d8] sm:$0xff]  ;;  %v4858_v45 = vld [vmem:[#allocation7 + $0x64] ss:$8 sps:$4 sm:$0xff]  }
  0x71   :  { %1735 = vmatpush1.bf16.msra.mxu0 %v5357_v11  ;;  %1456 = vmatpush1.bf16.msra.mxu1 %v4845_v55  ;;  %v4855_v38 = vld [vmem:[#allocation7 + $0x54] ss:$8 sps:$4 sm:$0xff]   ;;  %v490_v39 = vpack.c.bf16 %v130_v63, %v122_v62  ;;  %v499_v40 = vpack.c.bf16 %v147_v35, %v139_v15  ;;  %v4801_v47 = vld [vmem:[#allocation7 + $0x250] ss:$8 sps:$4 sm:$0xff]   ;;  %v4806_v50 = vld [vmem:[#allocation7 + $0x264] ss:$8 sps:$4 sm:$0xff]  }
  0x72   :  { %1736 = vmatprep.subr.bf16.mxu0 %v5360_v12  ;;  %1457 = vmatprep.subr.bf16.mxu1 %v4846_v56  ;;  %v4803_v42 = vld [vmem:[#allocation7 + $0x254] ss:$8 sps:$4 sm:$0xff]   ;;  %v4863_v51 = vld [vmem:[#allocation7 + $0x60] ss:$8 sps:$4 sm:$0xff]   ;;  %v4807_v63 = vld [vmem:[#allocation7 + $0x270] ss:$8 sps:$4 sm:$0xff]  }
  0x73   :  { %v163_v49 = vld [vmem:[#allocation2 + $0x258] sm:$0xff]  ;;  %v4804_v55 = vld [vmem:[#allocation7 + $0x260] ss:$8 sps:$4 sm:$0xff]  }
  0x74   :  { %v4809_v56 = vld [vmem:[#allocation7 + $0x274] ss:$8 sps:$4 sm:$0xff]  }
  0x75   :  { %1737 = vmatpush1.bf16.msra.mxu0 %v5363_v16  ;;  %1458 = vmatpush1.bf16.msra.mxu1 %v4851_v61  ;;  %v171_v61 = vld [vmem:[#allocation2 + $0x298] sm:$0xff] }
  0x76   :  { %1738 = vmatprep.subr.bf16.mxu0 %v5366_v17  ;;  %1459 = vmatprep.subr.bf16.mxu1 %v4852_v13  ;;  %v179_v62 = vld [vmem:[#allocation2 + $0x2d8] sm:$0xff]  ;;  %v4812_v13 = vld [vmem:[#allocation7 + $0x284] ss:$8 sps:$4 sm:$0xff]  }
  0x77   :  { %v4870_v15 = vld [vmem:[#allocation7 + $0x94] ss:$8 sps:$4 sm:$0xff]  }
  0x79   :  { %1739 = vmatpush1.bf16.msra.mxu0 %v5369_v18 }
  0x7a   :  { %1740 = vmatprep.subr.bf16.mxu0 %v5372_v19 }
  0x7d   :  { %1741 = vmatpush1.bf16.msra.mxu0 %v5375_v20 }
  0x7e   :  { %1742 = vmatprep.subr.bf16.mxu0 %v5378_v21 }
  0x81   :  { %1743 = vmatpush1.bf16.msra.mxu0 %v5381_v22 }
  0x82   :  { %1744 = vmatprep.subr.bf16.mxu0 %v5384_v23 }
  0x85   :  { %1745 = vmatpush1.bf16.msra.mxu0 %v5387_v24 }
  0x86   :  { %1746 = vmatprep.subr.bf16.mxu0 %v5390_v25 }
  0x89   :  { %1747 = vmatpush1.bf16.msra.mxu0 %v5393_v26 }
  0x8a   :  { %1748 = vmatprep.subr.bf16.mxu0 %v5396_v27 }
  0x8d   :  { %1749 = vmatpush1.bf16.msra.mxu0 %v5399_v28 }
  0x8e   :  { %1750 = vmatprep.subr.bf16.mxu0 %v5402_v29 }
  0x91   :  { %1751 = vmatpush1.bf16.msra.mxu0 %v5405_v30 }
  0x92   :  { %1752 = vmatprep.subr.bf16.mxu0 %v5408_v31 }
  0x95   :  { %1753 = vmatpush1.bf16.msra.mxu0 %v5411_v32 }
  0x96   :  { %1754 = vmatprep.subr.bf16.mxu0 %v5414_v33 }
  0x99   :  { %1755 = vmatpush1.bf16.msra.mxu0 %v5416_v34 }
  0x9a   :  { %1997 = vmatprep.subr.bf16.mxu0 %v4788_v37  ;;  %v4854_v37 = vld [vmem:[#allocation7 + $0x40] ss:$8 sps:$4 sm:$0xff]  }
  0x9b   :  { %1460 = vmatpush1.bf16.msra.mxu1 %v4854_v37  ;;  %v4810_v37 = vld [vmem:[#allocation7 + $0x280] ss:$8 sps:$4 sm:$0xff]  }
  0x9c   :  { %1757 = vmatmul.mubr.bf16.vlgmr.msra.gmra.mrb[0].mxu0 %v474_v41  ;;  %v4798_v41 = vld [vmem:[#allocation7 + $0x240] ss:$8 sps:$4 sm:$0xff]   ;;  %1461 = vmatprep.subr.bf16.mxu1 %v4855_v38  ;;  %v4815_v38 = vld [vmem:[#allocation7 + $0x294] ss:$8 sps:$4 sm:$0xff]  }
  0x9d   :  { %1998 = vmatpush1.bf16.msra.mxu0 %v4786_v43  ;;  %1766 = vmatprep.mubr.bf16.mxu0 %v483_v44  ;;  %v4857_v43 = vld [vmem:[#allocation7 + $0x50] ss:$8 sps:$4 sm:$0xff]  }
  0x9e   :  { %1999 = vmatprep.subr.bf16.mxu0 %v4791_v46  ;;  %v138_v44 = vld [vmem:[#allocation2 + $0x190] sm:$0xff] }
  0x9f   :  { %v146_v46 = vld [vmem:[#allocation2 + $0x1d0] sm:$0xff]  ;;  %1462 = vmatpush1.bf16.msra.mxu1 %v4857_v43  ;;  %v89_v43 = vld [vmem:[#allocation2 + $0x8] sm:$0xff] }
  0xa0   :  { %1463 = vmatprep.subr.bf16.mxu1 %v4858_v45  ;;  %v498_v53 = vpack.c.bf16 %v146_v46, %v138_v44  ;;  %v187_v44 = vld [vmem:[#allocation2 + $0x318] sm:$0xff]  ;;  %v97_v46 = vld [vmem:[#allocation2 + $0x48] sm:$0xff] }
  0xa1   :  { %2000 = vmatpush1.bf16.msra.mxu0 %v4789_v48  ;;  %v155_v48 = vld [vmem:[#allocation2 + $0x218] sm:$0xff] }
  0xa2   :  { %2001 = vmatprep.subr.bf16.mxu0 %v4794_v52  ;;  %v4864_v52 = vld [vmem:[#allocation7 + $0x74] ss:$8 sps:$4 sm:$0xff]   ;;  %v507_v54 = vpack.c.bf16 %v163_v49, %v155_v48  ;;  %v4813_v45 = vld [vmem:[#allocation7 + $0x290] ss:$8 sps:$4 sm:$0xff]   ;;  %v4818_v48 = vld [vmem:[#allocation7 + $0x2a4] ss:$8 sps:$4 sm:$0xff]  }
  0xa3   :  { %1464 = vmatpush1.bf16.msra.mxu1 %v4863_v51  ;;  %v4878_v49 = vld [vmem:[#allocation7 + $0xa0] ss:$8 sps:$4 sm:$0xff]   ;;  %v4879_v51 = vld [vmem:[#allocation7 + $0xb4] ss:$8 sps:$4 sm:$0xff]  }
  0xa4   :  { %1767 = vmatmul.mubr.bf16.gmra.mrb[4].mxu0 %v482_v57  ;;  %v4866_v57 = vld [vmem:[#allocation7 + $0x70] ss:$8 sps:$4 sm:$0xff]   ;;  %1465 = vmatprep.subr.bf16.mxu1 %v4864_v52 }
  0xa5   :  { %2002 = vmatpush1.bf16.msra.mxu0 %v4792_v58  ;;  %1776 = vmatprep.mubr.bf16.mxu0 %v491_v59  ;;  %v154_v58 = vld [vmem:[#allocation2 + $0x210] sm:$0xff] }
  0xa6   :  { %2003 = vmatprep.subr.bf16.mxu0 %v4797_v60  ;;  %v162_v59 = vld [vmem:[#allocation2 + $0x250] sm:$0xff]  ;;  %v4867_v60 = vld [vmem:[#allocation7 + $0x84] ss:$8 sps:$4 sm:$0xff]  }
  0xa7   :  { %1466 = vmatpush1.bf16.msra.mxu1 %v4866_v57  ;;  %v506_v35 = vpack.c.bf16 %v162_v59, %v154_v58  ;;  %v4882_v57 = vld [vmem:[#allocation7 + $0xc4] ss:$8 sps:$4 sm:$0xff]   ;;  %v186_v58 = vld [vmem:[#allocation2 + $0x310] sm:$0xff] }
  0xa8   :  { %1467 = vmatprep.subr.bf16.mxu1 %v4867_v60  ;;  %v194_v59 = vld [vmem:[#allocation2 + $0x350] sm:$0xff]  ;;  %v203_v60 = vld [vmem:[#allocation2 + $0x398] sm:$0xff] }
  0xa9   :  { %2004 = vmatpush1.bf16.msra.mxu0 %v4795_v14  ;;  %v4869_v14 = vld [vmem:[#allocation7 + $0x80] ss:$8 sps:$4 sm:$0xff]  }
  0xaa   :  { %2005 = vmatprep.subr.bf16.mxu0 %v4800_v36  ;;  %v515_v36 = vpack.c.bf16 %v179_v62, %v171_v61  ;;  %v4819_v61 = vld [vmem:[#allocation7 + $0x2b0] ss:$8 sps:$4 sm:$0xff]  }
  0xab   :  { %1468 = vmatpush1.bf16.msra.mxu1 %v4869_v14  ;;  %v211_v62 = vld [vmem:[#allocation2 + $0x3d8] sm:$0xff]  ;;  %v4822_v14 = vld [vmem:[#allocation7 + $0x2c0] ss:$8 sps:$4 sm:$0xff]  }
  0xac   :  { %1777 = vmatmul.mubr.bf16.gmra.mrb[8].mxu0 %v490_v39  ;;  %v4875_v39 = vld [vmem:[#allocation7 + $0x90] ss:$8 sps:$4 sm:$0xff]   ;;  %1469 = vmatprep.subr.bf16.mxu1 %v4870_v15  ;;  %v4888_v15 = vld [vmem:[#allocation7 + $0xd4] ss:$8 sps:$4 sm:$0xff]  }
  0xad   :  { %1786 = vmatprep.mubr.bf16.mxu0 %v499_v40  ;;  %2006 = vmatpush1.bf16.msra.mxu0 %v4798_v41  ;;  %v4876_v40 = vld [vmem:[#allocation7 + $0xa4] ss:$8 sps:$4 sm:$0xff]   ;;  %v170_v41 = vld [vmem:[#allocation2 + $0x290] sm:$0xff] }
  0xae   :  { %2007 = vmatprep.subr.bf16.mxu0 %v4803_v42  ;;  %v178_v42 = vld [vmem:[#allocation2 + $0x2d0] sm:$0xff] }
  0xaf   :  { %1470 = vmatpush1.bf16.msra.mxu1 %v4875_v39  ;;  %v514_v52 = vpack.c.bf16 %v178_v42, %v170_v41  ;;  %v4891_v39 = vld [vmem:[#allocation7 + $0xe4] ss:$8 sps:$4 sm:$0xff]   ;;  %v210_v41 = vld [vmem:[#allocation2 + $0x3d0] sm:$0xff]  ;;  %v219_v42 = vld [vmem:[#allocation2 + $0x418] sm:$0xff] }
  0xb0   :  { %1471 = vmatprep.subr.bf16.mxu1 %v4876_v40  ;;  %v202_v40 = vld [vmem:[#allocation2 + $0x390] sm:$0xff] }
  0xb1   :  { %2008 = vmatpush1.bf16.msra.mxu0 %v4801_v47  ;;  %v195_v47 = vld [vmem:[#allocation2 + $0x358] sm:$0xff] }
  0xb2   :  { %2009 = vmatprep.subr.bf16.mxu0 %v4806_v50  ;;  %v473_v50 = vpack.c.bf16 %v97_v46, %v89_v43  ;;  %v4825_v43 = vld [vmem:[#allocation7 + $0x2d0] ss:$8 sps:$4 sm:$0xff]   ;;  %v4893_v46 = vld [vmem:[#allocation7 + $0xe0] ss:$8 sps:$4 sm:$0xff]  }
  0xb3   :  { %1472 = vmatpush1.bf16.msra.mxu1 %v4878_v49  ;;  %v530_v49 = vpack.c.bf16 %v210_v41, %v202_v40  ;;  %v242_v40 = vld [vmem:[#allocation2 + $0x4d0] sm:$0xff] }
  0xb4   :  { %1787 = vmatmul.mubr.bf16.gmra.mrb[12].mxu0 %v498_v53  ;;  %v4816_v53 = vld [vmem:[#allocation7 + $0x2a0] ss:$8 sps:$4 sm:$0xff]   ;;  %1483 = vmatprep.mubr.bf16.mxu1 %v473_v50  ;;  %v4833_v50 = vld [vmem:[#allocation7 + $0x2f4] ss:$8 sps:$4 sm:$0xff]  }
  0xb5   :  { %1796 = vmatprep.mubr.bf16.mxu0 %v507_v54  ;;  %2010 = vmatpush1.bf16.msra.mxu0 %v4804_v55  ;;  %v523_v54 = vpack.c.bf16 %v195_v47, %v187_v44  ;;  %v4821_v55 = vld [vmem:[#allocation7 + $0x2b4] ss:$8 sps:$4 sm:$0xff]   ;;  %v4828_v47 = vld [vmem:[#allocation7 + $0x2e0] ss:$8 sps:$4 sm:$0xff]  }
  0xb6   :  { %2011 = vmatprep.subr.bf16.mxu0 %v4809_v56  ;;  %v4881_v56 = vld [vmem:[#allocation7 + $0xb0] ss:$8 sps:$4 sm:$0xff]   ;;  %1473 = vmatprep.subr.bf16.mxu1 %v4879_v51 }
  0xb7   :  { %1474 = vmatpush1.bf16.msra.mxu1 %v4881_v56  ;;  %v227_v44 = vld [vmem:[#allocation2 + $0x458] sm:$0xff]  ;;  %v113_v56 = vld [vmem:[#allocation2 + $0xc8] sm:$0xff] }
  0xb8   :  { %1475 = vmatprep.subr.bf16.mxu1 %v4882_v57  ;;  %v4899_v51 = vld [vmem:[#allocation7 + $0xf0] ss:$8 sps:$4 sm:$0xff]  }
  0xb9   :  { %2012 = vmatpush1.bf16.msra.mxu0 %v4807_v63  ;;  %v4824_v63 = vld [vmem:[#allocation7 + $0x2c4] ss:$8 sps:$4 sm:$0xff]   ;;  %v218_v57 = vld [vmem:[#allocation2 + $0x410] sm:$0xff] }
  0xba   :  { %2013 = vmatprep.subr.bf16.mxu0 %v4812_v13  ;;  %v4887_v13 = vld [vmem:[#allocation7 + $0xc0] ss:$8 sps:$4 sm:$0xff]  }
  0xbb   :  { %1476 = vmatpush1.bf16.msra.mxu1 %v4887_v13 }
  0xbc   :  { %1797 = vmatmul.mubr.bf16.gmra.mrb[16].mxu0 %v506_v35  ;;  %v522_v35 = vpack.c.bf16 %v194_v59, %v186_v58  ;;  %1477 = vmatprep.subr.bf16.mxu1 %v4888_v15  ;;  %v226_v58 = vld [vmem:[#allocation2 + $0x450] sm:$0xff]  ;;  %v235_v59 = vld [vmem:[#allocation2 + $0x498] sm:$0xff]  ;;  %v104_v15 = vld [vmem:[#allocation2 + $0x80] sm:$0xff] }
  0xbd   :  { %1806 = vmatprep.mubr.bf16.mxu0 %v515_v36  ;;  %2014 = vmatpush1.bf16.msra.mxu0 %v4810_v37  ;;  %v4827_v36 = vld [vmem:[#allocation7 + $0x2d4] ss:$8 sps:$4 sm:$0xff]   ;;  %v4890_v37 = vld [vmem:[#allocation7 + $0xd0] ss:$8 sps:$4 sm:$0xff]  }
  0xbe   :  { %2015 = vmatprep.subr.bf16.mxu0 %v4815_v38  ;;  %v531_v38 = vpack.c.bf16 %v211_v62, %v203_v60  ;;  %v4831_v60 = vld [vmem:[#allocation7 + $0x2f0] ss:$8 sps:$4 sm:$0xff]  }
  0xbf   :  { %1478 = vmatpush1.bf16.msra.mxu1 %v4890_v37  ;;  %v243_v62 = vld [vmem:[#allocation2 + $0x4d8] sm:$0xff]  ;;  %v121_v37 = vld [vmem:[#allocation2 + $0x108] sm:$0xff] }
  0xc0   :  { %1479 = vmatprep.subr.bf16.mxu1 %v4891_v39  ;;  %v234_v39 = vld [vmem:[#allocation2 + $0x490] sm:$0xff] }
  0xc1   :  { %2016 = vmatpush1.bf16.msra.mxu0 %v4813_v45  ;;  %v4830_v45 = vld [vmem:[#allocation7 + $0x2e4] ss:$8 sps:$4 sm:$0xff]  }
  0xc2   :  { %2017 = vmatprep.subr.bf16.mxu0 %v4818_v48  ;;  %v4894_v48 = vld [vmem:[#allocation7 + $0xf4] ss:$8 sps:$4 sm:$0xff]  }
  0xc3   :  { %1480 = vmatpush1.bf16.msra.mxu1 %v4893_v46  ;;  %v120_v46 = vld [vmem:[#allocation2 + $0x100] sm:$0xff] }
  0xc4   :  { %1807 = vmatmul.mubr.bf16.gmra.mrb[20].mxu0 %v514_v52  ;;  %v88_v52 = vld [vmem:[#allocation2] sm:$0xff]  ;;  %1481 = vmatprep.subr.bf16.mxu1 %v4894_v48  ;;  %v145_v48 = vld [vmem:[#allocation2 + $0x1c8] sm:$0xff] }
  0xc5   :  { %1816 = vmatprep.mubr.bf16.mxu0 %v523_v54  ;;  %2018 = vmatpush1.bf16.msra.mxu0 %v4816_v53  ;;  %v96_v53 = vld [vmem:[#allocation2 + $0x40] sm:$0xff]  ;;  %v539_v54 = vpack.c.bf16 %v227_v44, %v219_v42  ;;  %v259_v42 = vld [vmem:[#allocation2 + $0x558] sm:$0xff]  ;;  %v546_v44 = vpack.c.bf16 %v242_v40, %v234_v39 }
  0xc6   :  { %2019 = vmatprep.subr.bf16.mxu0 %v4821_v55  ;;  %v105_v55 = vld [vmem:[#allocation2 + $0x88] sm:$0xff]  ;;  %v4850_v39 = vld [vmem:[#allocation7 + $0x314] ss:$8 sps:$4 sm:$0xff]   ;;  %v176_v40 = vld [vmem:[#allocation2 + $0x2c0] sm:$0xff] }
  0xc7   :  { %1482 = vmatpush1.bf16.msra.mxu1 %v4899_v51  ;;  %v481_v13 = vpack.c.bf16 %v113_v56, %v105_v55  ;;  %v275_v51 = vld [vmem:[#allocation2 + $0x5d8] sm:$0xff]  ;;  %v153_v55 = vld [vmem:[#allocation2 + $0x208] sm:$0xff] }
  0xc8   :  { %4310 = vmatprep.subr.bf16.mxu1 %v5325_v0  ;;  %v251_v0 = vld [vmem:[#allocation2 + $0x518] sm:$0xff]  ;;  %v161_v56 = vld [vmem:[#allocation2 + $0x248] sm:$0xff] }
  0xc9   :  { %2020 = vmatpush1.bf16.msra.mxu0 %v4819_v61  ;;  %v472_v61 = vpack.c.bf16 %v96_v53, %v88_v52 }
  0xca   :  { %2021 = vmatprep.subr.bf16.mxu0 %v4824_v63  ;;  %v4838_v63 = vld [vmem:[#allocation7 + $0x304] ss:$8 sps:$4 sm:$0xff]  }
  0xcb   :  { %1484 = vmatmul.mubr.bf16.vlgmr.msra.gmra.mrb[0].mxu1 %v472_v61 }
  0xcc   :  { %1817 = vmatmul.mubr.bf16.gmra.mrb[24].mxu0 %v522_v35  ;;  %v112_v35 = vld [vmem:[#allocation2 + $0xc0] sm:$0xff]  ;;  %1493 = vmatprep.mubr.bf16.mxu1 %v481_v13  ;;  %v177_v13 = vld [vmem:[#allocation2 + $0x2c8] sm:$0xff] }
  0xcd   :  { %1826 = vmatprep.mubr.bf16.mxu0 %v531_v38  ;;  %2022 = vmatpush1.bf16.msra.mxu0 %v4822_v14  ;;  %v538_v14 = vpack.c.bf16 %v226_v58, %v218_v57  ;;  %v129_v38 = vld [vmem:[#allocation2 + $0x148] sm:$0xff]  ;;  %v480_v41 = vpack.c.bf16 %v112_v35, %v104_v15  ;;  %v274_v57 = vld [vmem:[#allocation2 + $0x5d0] sm:$0xff] }
  0xce   :  { %2023 = vmatprep.subr.bf16.mxu0 %v4827_v36  ;;  %v547_v36 = vpack.c.bf16 %v243_v62, %v235_v59  ;;  %4326 = vmatpush1.bf16.msra.mxu1 %v5327_v1  ;;  %v128_v1 = vld [vmem:[#allocation2 + $0x140] sm:$0xff]  ;;  %v101_v59 = vld [vmem:[#allocation2 + $0x68] sm:$0xff] }
  0xcf   :  { %4311 = vmatprep.subr.bf16.mxu1 %v5330_v2  ;;  %v250_v2 = vld [vmem:[#allocation2 + $0x510] sm:$0xff]  ;;  %v152_v62 = vld [vmem:[#allocation2 + $0x200] sm:$0xff]  ;;  %v117_v35 = vld [vmem:[#allocation2 + $0xe8] sm:$0xff] }
  0xd1   :  { %2024 = vmatpush1.bf16.msra.mxu0 %v4825_v43  ;;  %v489_v43 = vpack.c.bf16 %v129_v38, %v121_v37  ;;  %v4836_v37 = vld [vmem:[#allocation7 + $0x300] ss:$8 sps:$4 sm:$0xff]  }
  0xd2   :  { %2025 = vmatprep.subr.bf16.mxu0 %v4830_v45  ;;  %4327 = vmatpush1.bf16.msra.mxu1 %v5333_v3  ;;  %v555_v45 = vpack.c.bf16 %v259_v42, %v251_v0  ;;  %v267_v3 = vld [vmem:[#allocation2 + $0x598] sm:$0xff]  ;;  %v116_v0 = vld [vmem:[#allocation2 + $0xe0] sm:$0xff] }
  0xd3   :  { %4312 = vmatprep.subr.bf16.mxu1 %v5336_v4  ;;  %1494 = vmatmul.mubr.bf16.gmra.mrb[4].mxu1 %v480_v41  ;;  %v563_v53 = vpack.c.bf16 %v275_v51, %v267_v3  ;;  %v193_v41 = vld [vmem:[#allocation2 + $0x348] sm:$0xff]  ;;  %v4848_v42 = vld [vmem:[#allocation7 + $0x310] ss:$8 sps:$4 sm:$0xff]   ;;  %v132_v3 = vld [vmem:[#allocation2 + $0x160] sm:$0xff] }
  0xd4   :  { %1827 = vmatmul.mubr.bf16.gmra.mrb[28].mxu0 %v530_v49  ;;  %1503 = vmatprep.mubr.bf16.mxu1 %v489_v43  ;;  %v258_v49 = vld [vmem:[#allocation2 + $0x550] sm:$0xff]  ;;  %v125_v43 = vld [vmem:[#allocation2 + $0x128] sm:$0xff] }
  0xd5   :  { %1836 = vmatprep.mubr.bf16.mxu0 %v539_v54  ;;  %2026 = vmatpush1.bf16.msra.mxu0 %v4828_v47  ;;  %v137_v47 = vld [vmem:[#allocation2 + $0x188] sm:$0xff]  ;;  %v554_v4 = vpack.c.bf16 %v258_v49, %v250_v2  ;;  %v136_v54 = vld [vmem:[#allocation2 + $0x180] sm:$0xff] }
  0xd6   :  { %2027 = vmatprep.subr.bf16.mxu0 %v4833_v50  ;;  %4328 = vmatpush1.bf16.msra.mxu1 %v5339_v5  ;;  %v488_v50 = vpack.c.bf16 %v128_v1, %v120_v46  ;;  %v497_v52 = vpack.c.bf16 %v145_v48, %v137_v47  ;;  %v144_v5 = vld [vmem:[#allocation2 + $0x1c0] sm:$0xff]  ;;  %v201_v49 = vld [vmem:[#allocation2 + $0x388] sm:$0xff] }
  0xd7   :  { %4313 = vmatprep.subr.bf16.mxu1 %v5342_v6  ;;  %v266_v6 = vld [vmem:[#allocation2 + $0x590] sm:$0xff]  ;;  %v496_v58 = vpack.c.bf16 %v144_v5, %v136_v54  ;;  %v4860_v47 = vld [vmem:[#allocation7 + $0x320] ss:$8 sps:$4 sm:$0xff]  }
  0xd8   :  { %v184_v48 = vld [vmem:[#allocation2 + $0x300] sm:$0xff] }
  0xd9   :  { %2028 = vmatpush1.bf16.msra.mxu0 %v4831_v60  ;;  %v505_v60 = vpack.c.bf16 %v161_v56, %v153_v55  ;;  %v192_v2 = vld [vmem:[#allocation2 + $0x340] sm:$0xff] }
  0xda   :  { %2270 = vmatprep.subr.bf16.mxu0 %v4838_v63  ;;  %4329 = vmatpush1.bf16.msra.mxu1 %v5345_v7  ;;  %v93_v7 = vld [vmem:[#allocation2 + $0x28] sm:$0xff]  ;;  %v520_v51 = vpack.c.bf16 %v192_v2, %v184_v48  ;;  %v200_v56 = vld [vmem:[#allocation2 + $0x380] sm:$0xff] }
  0xdb   :  { %4314 = vmatprep.subr.bf16.mxu1 %v5348_v8  ;;  %1504 = vmatmul.mubr.bf16.gmra.mrb[8].mxu1 %v488_v50  ;;  %v562_v8 = vpack.c.bf16 %v274_v57, %v266_v6  ;;  %v477_v61 = vpack.c.bf16 %v101_v59, %v93_v7  ;;  %v169_v63 = vld [vmem:[#allocation2 + $0x288] sm:$0xff]  ;;  %v208_v6 = vld [vmem:[#allocation2 + $0x3c0] sm:$0xff] }
  0xdc   :  { %1837 = vmatmul.mubr.bf16.gmra.mrb[32].mxu0 %v538_v14  ;;  %1513 = vmatprep.mubr.bf16.mxu1 %v497_v52  ;;  %v100_v14 = vld [vmem:[#allocation2 + $0x60] sm:$0xff]  ;;  %v209_v50 = vld [vmem:[#allocation2 + $0x3c8] sm:$0xff]  ;;  %v528_v59 = vpack.c.bf16 %v208_v6, %v200_v56  ;;  %v4923_v6 = vld [vmem:[#allocation7 + $0x3d4] ss:$8 sps:$4 sm:$0xff]  }
  0xdd   :  { %1846 = vmatprep.mubr.bf16.mxu0 %v547_v36  ;;  %v513_v36 = vpack.c.bf16 %v177_v13, %v169_v63  ;;  %v141_v52 = vld [vmem:[#allocation2 + $0x1a8] sm:$0xff]  ;;  %v529_v54 = vpack.c.bf16 %v209_v50, %v201_v49  ;;  %v148_v7 = vld [vmem:[#allocation2 + $0x1e0] sm:$0xff] }
  0xde   :  { %4330 = vmatpush1.bf16.msra.mxu1 %v5351_v9  ;;  %v160_v9 = vld [vmem:[#allocation2 + $0x240] sm:$0xff]  ;;  %v217_v57 = vld [vmem:[#allocation2 + $0x408] sm:$0xff] }
  0xdf   :  { %4315 = vmatprep.subr.bf16.mxu1 %v5354_v10  ;;  %v92_v10 = vld [vmem:[#allocation2 + $0x20] sm:$0xff]  ;;  %v504_v15 = vpack.c.bf16 %v160_v9, %v152_v62  ;;  %v265_v49 = vld [vmem:[#allocation2 + $0x588] sm:$0xff] }
  0xe0   :  { %v4884_v55 = vld [vmem:[#allocation7 + $0x340] ss:$8 sps:$4 sm:$0xff]  }
  0xe1   :  { %v4900_v63 = vld [vmem:[#allocation7 + $0x360] ss:$8 sps:$4 sm:$0xff]  }
  0xe2   :  { %4331 = vmatpush1.bf16.msra.mxu1 %v5357_v11  ;;  %v109_v11 = vld [vmem:[#allocation2 + $0xa8] sm:$0xff]  ;;  %v216_v13 = vld [vmem:[#allocation2 + $0x400] sm:$0xff] }
  0xe3   :  { %4316 = vmatprep.subr.bf16.mxu1 %v5360_v12  ;;  %1514 = vmatmul.mubr.bf16.gmra.mrb[12].mxu1 %v496_v58  ;;  %v476_v12 = vpack.c.bf16 %v100_v14, %v92_v10  ;;  %v485_v38 = vpack.c.bf16 %v117_v35, %v109_v11  ;;  %v225_v58 = vld [vmem:[#allocation2 + $0x448] sm:$0xff]  ;;  %v224_v10 = vld [vmem:[#allocation2 + $0x440] sm:$0xff] }
  0xe4   :  { %1847 = vmatmul.mubr.bf16.gmra.mrb[36].mxu0 %v546_v44  ;;  %1523 = vmatprep.mubr.bf16.mxu1 %v505_v60  ;;  %v133_v44 = vld [vmem:[#allocation2 + $0x168] sm:$0xff]  ;;  %v537_v62 = vpack.c.bf16 %v225_v58, %v217_v57  ;;  %v164_v11 = vld [vmem:[#allocation2 + $0x260] sm:$0xff]  ;;  %v536_v35 = vpack.c.bf16 %v224_v10, %v216_v13  ;;  %v4929_v10 = vld [vmem:[#allocation7 + $0x3f4] ss:$8 sps:$4 sm:$0xff]  }
  0xe5   :  { %1856 = vmatprep.mubr.bf16.mxu0 %v555_v45  ;;  %v4862_v45 = vld [vmem:[#allocation7 + $0x324] ss:$8 sps:$4 sm:$0xff]  }
  0xe6   :  { %4332 = vmatpush1.bf16.msra.mxu1 %v5363_v16  ;;  %v168_v16 = vld [vmem:[#allocation2 + $0x280] sm:$0xff]  ;;  %v157_v60 = vld [vmem:[#allocation2 + $0x228] sm:$0xff] }
  0xe7   :  { %4317 = vmatprep.subr.bf16.mxu1 %v5366_v17  ;;  %v185_v17 = vld [vmem:[#allocation2 + $0x308] sm:$0xff]  ;;  %v248_v48 = vld [vmem:[#allocation2 + $0x500] sm:$0xff] }
  0xe8   :  { %v521_v46 = vpack.c.bf16 %v193_v41, %v185_v17  ;;  %v233_v14 = vld [vmem:[#allocation2 + $0x488] sm:$0xff]  ;;  %v240_v17 = vld [vmem:[#allocation2 + $0x4c0] sm:$0xff] }
  0xe9   :  { %v249_v41 = vld [vmem:[#allocation2 + $0x508] sm:$0xff]  ;;  %v256_v2 = vld [vmem:[#allocation2 + $0x540] sm:$0xff] }
  0xea   :  { %4333 = vmatpush1.bf16.msra.mxu1 %v5369_v18  ;;  %v108_v18 = vld [vmem:[#allocation2 + $0xa0] sm:$0xff]  ;;  %v273_v50 = vld [vmem:[#allocation2 + $0x5c8] sm:$0xff] }
  0xeb   :  { %4318 = vmatprep.subr.bf16.mxu1 %v5372_v19  ;;  %1524 = vmatmul.mubr.bf16.gmra.mrb[16].mxu1 %v504_v15  ;;  %v512_v19 = vpack.c.bf16 %v176_v40, %v168_v16  ;;  %v484_v1 = vpack.c.bf16 %v116_v0, %v108_v18  ;;  %v241_v15 = vld [vmem:[#allocation2 + $0x4c8] sm:$0xff]  ;;  %v232_v40 = vld [vmem:[#allocation2 + $0x480] sm:$0xff] }
  0xec   :  { %1857 = vmatmul.mubr.bf16.gmra.mrb[40].mxu0 %v554_v4  ;;  %1533 = vmatprep.mubr.bf16.mxu1 %v513_v36  ;;  %v149_v4 = vld [vmem:[#allocation2 + $0x1e8] sm:$0xff]  ;;  %v172_v0 = vld [vmem:[#allocation2 + $0x2a0] sm:$0xff] }
  0xed   :  { %1866 = vmatprep.mubr.bf16.mxu0 %v563_v53  ;;  %v4886_v53 = vld [vmem:[#allocation7 + $0x344] ss:$8 sps:$4 sm:$0xff]  }
  0xee   :  { %4334 = vmatpush1.bf16.msra.mxu1 %v5375_v20  ;;  %v493_v20 = vpack.c.bf16 %v133_v44, %v125_v43  ;;  %v173_v36 = vld [vmem:[#allocation2 + $0x2a8] sm:$0xff]  ;;  %v544_v43 = vpack.c.bf16 %v240_v17, %v232_v40  ;;  %v272_v56 = vld [vmem:[#allocation2 + $0x5c0] sm:$0xff] }
  0xef   :  { %4319 = vmatprep.subr.bf16.mxu1 %v5378_v21  ;;  %v4874_v21 = vld [vmem:[#allocation7 + $0x334] ss:$8 sps:$4 sm:$0xff]   ;;  %v257_v18 = vld [vmem:[#allocation2 + $0x548] sm:$0xff]  ;;  %v288_v13 = vld [vmem:[#allocation2 + $0x640] sm:$0xff] }
  0xf0   :  { %v197_v44 = vld [vmem:[#allocation2 + $0x368] sm:$0xff]  ;;  %v236_v17 = vld [vmem:[#allocation2 + $0x4a0] sm:$0xff] }
  0xf1   :  { %v281_v57 = vld [vmem:[#allocation2 + $0x608] sm:$0xff] }
  0xf2   :  { %4335 = vmatpush1.bf16.msra.mxu1 %v5381_v22  ;;  %v124_v22 = vld [vmem:[#allocation2 + $0x120] sm:$0xff]  ;;  %v289_v58 = vld [vmem:[#allocation2 + $0x648] sm:$0xff] }
  0xf3   :  { %4320 = vmatprep.subr.bf16.mxu1 %v5384_v23  ;;  %1534 = vmatmul.mubr.bf16.gmra.mrb[20].mxu1 %v512_v19  ;;  %v4872_v23 = vld [vmem:[#allocation7 + $0x330] ss:$8 sps:$4 sm:$0xff]   ;;  %v492_v5 = vpack.c.bf16 %v132_v3, %v124_v22  ;;  %v188_v22 = vld [vmem:[#allocation2 + $0x320] sm:$0xff]  ;;  %v321_v40 = vld [vmem:[#allocation2 + $0x748] sm:$0xff] }
  0xf4   :  { %1867 = vmatmul.mubr.bf16.gmra.mrb[44].mxu0 %v562_v8  ;;  %1543 = vmatprep.mubr.bf16.mxu1 %v521_v46  ;;  %v165_v8 = vld [vmem:[#allocation2 + $0x268] sm:$0xff]  ;;  %v4909_v19 = vld [vmem:[#allocation7 + $0x390] ss:$8 sps:$4 sm:$0xff]   ;;  %v553_v46 = vpack.c.bf16 %v257_v18, %v249_v41  ;;  %v196_v3 = vld [vmem:[#allocation2 + $0x360] sm:$0xff] }
  0xf5   :  { %2029 = vmatprep.mubr.bf16.mxu0 %v477_v61  ;;  %v4902_v61 = vld [vmem:[#allocation7 + $0x364] ss:$8 sps:$4 sm:$0xff]  }
  0xf6   :  { %4336 = vmatpush1.bf16.msra.mxu1 %v5387_v24  ;;  %v501_v24 = vpack.c.bf16 %v149_v4, %v141_v52  ;;  %v205_v52 = vld [vmem:[#allocation2 + $0x3a8] sm:$0xff]  ;;  %v244_v41 = vld [vmem:[#allocation2 + $0x4e0] sm:$0xff] }
  0xf7   :  { %4321 = vmatprep.subr.bf16.mxu1 %v5390_v25  ;;  %v4898_v25 = vld [vmem:[#allocation7 + $0x354] ss:$8 sps:$4 sm:$0xff]   ;;  %v213_v4 = vld [vmem:[#allocation2 + $0x3e8] sm:$0xff] }
  0xfa   :  { %4337 = vmatpush1.bf16.msra.mxu1 %v5393_v26  ;;  %v140_v26 = vld [vmem:[#allocation2 + $0x1a0] sm:$0xff] }
  0xfb   :  { %4322 = vmatprep.subr.bf16.mxu1 %v5396_v27  ;;  %1544 = vmatmul.mubr.bf16.gmra.mrb[24].mxu1 %v520_v51  ;;  %v4896_v27 = vld [vmem:[#allocation7 + $0x350] ss:$8 sps:$4 sm:$0xff]   ;;  %v500_v9 = vpack.c.bf16 %v148_v7, %v140_v26  ;;  %v552_v51 = vpack.c.bf16 %v256_v2, %v248_v48  ;;  %v204_v26 = vld [vmem:[#allocation2 + $0x3a0] sm:$0xff]  ;;  %v269_v48 = vld [vmem:[#allocation2 + $0x5a8] sm:$0xff] }
  0xfc   :  { %2030 = vmatmul.mubr.bf16.vlgmr.msra.gmra.mrb[0].mxu0 %v476_v12  ;;  %1553 = vmatprep.mubr.bf16.mxu1 %v529_v54  ;;  %v181_v12 = vld [vmem:[#allocation2 + $0x2e8] sm:$0xff]  ;;  %v561_v54 = vpack.c.bf16 %v273_v50, %v265_v49  ;;  %v212_v7 = vld [vmem:[#allocation2 + $0x3e0] sm:$0xff] }
  0xfd   :  { %2271 = vmatpush1.bf16.msra.mxu0 %v4836_v37  ;;  %2039 = vmatprep.mubr.bf16.mxu0 %v485_v38  ;;  %v4908_v37 = vld [vmem:[#allocation7 + $0x384] ss:$8 sps:$4 sm:$0xff]   ;;  %v545_v38 = vpack.c.bf16 %v241_v15, %v233_v14  ;;  %v517_v16 = vpack.c.bf16 %v181_v12, %v173_v36 }
  0xfe   :  { %2272 = vmatprep.subr.bf16.mxu0 %v4850_v39  ;;  %4338 = vmatpush1.bf16.msra.mxu1 %v5399_v28  ;;  %v509_v28 = vpack.c.bf16 %v165_v8, %v157_v60  ;;  %v221_v60 = vld [vmem:[#allocation2 + $0x428] sm:$0xff] }
  0xff   :  { %4323 = vmatprep.subr.bf16.mxu1 %v5402_v29  ;;  %v4905_v29 = vld [vmem:[#allocation7 + $0x374] ss:$8 sps:$4 sm:$0xff]   ;;  %v229_v8 = vld [vmem:[#allocation2 + $0x468] sm:$0xff] }
 0x100   :  { %v297_v14 = vld [vmem:[#allocation2 + $0x688] sm:$0xff] }
 0x101   :  { %2273 = vmatpush1.bf16.msra.mxu0 %v4848_v42  ;;  %v180_v42 = vld [vmem:[#allocation2 + $0x2e0] sm:$0xff]  ;;  %v305_v15 = vld [vmem:[#allocation2 + $0x6c8] sm:$0xff] }
 0x102   :  { %2274 = vmatprep.subr.bf16.mxu0 %v4862_v45  ;;  %4339 = vmatpush1.bf16.msra.mxu1 %v5405_v30  ;;  %v156_v30 = vld [vmem:[#allocation2 + $0x220] sm:$0xff]  ;;  %v237_v36 = vld [vmem:[#allocation2 + $0x4a8] sm:$0xff] }
 0x103   :  { %4324 = vmatprep.subr.bf16.mxu1 %v5408_v31  ;;  %1554 = vmatmul.mubr.bf16.gmra.mrb[28].mxu1 %v528_v59  ;;  %v4903_v31 = vld [vmem:[#allocation7 + $0x370] ss:$8 sps:$4 sm:$0xff]   ;;  %v508_v39 = vpack.c.bf16 %v164_v11, %v156_v30  ;;  %v4914_v45 = vld [vmem:[#allocation7 + $0x3a4] ss:$8 sps:$4 sm:$0xff]  }
 0x104   :  { %2040 = vmatmul.mubr.bf16.gmra.mrb[4].mxu0 %v484_v1  ;;  %1563 = vmatprep.mubr.bf16.mxu1 %v537_v62  ;;  %v516_v1 = vpack.c.bf16 %v180_v42, %v172_v0  ;;  %v4921_v59 = vld [vmem:[#allocation7 + $0x3d0] ss:$8 sps:$4 sm:$0xff]   ;;  %v4926_v62 = vld [vmem:[#allocation7 + $0x3e4] ss:$8 sps:$4 sm:$0xff]  }
 0x105   :  { %2049 = vmatprep.mubr.bf16.mxu0 %v493_v20  ;;  %2275 = vmatpush1.bf16.msra.mxu0 %v4860_v47  ;;  %v4912_v47 = vld [vmem:[#allocation7 + $0x3a0] ss:$8 sps:$4 sm:$0xff]  }
 0x106   :  { %2276 = vmatprep.subr.bf16.mxu0 %v4874_v21  ;;  %4340 = vmatpush1.bf16.msra.mxu1 %v5411_v32  ;;  %v4906_v32 = vld [vmem:[#allocation7 + $0x380] ss:$8 sps:$4 sm:$0xff]   ;;  %v4917_v21 = vld [vmem:[#allocation7 + $0x3b4] ss:$8 sps:$4 sm:$0xff]  }
 0x107   :  { %4325 = vmatprep.subr.bf16.mxu1 %v5414_v33  ;;  %v4911_v33 = vld [vmem:[#allocation7 + $0x394] ss:$8 sps:$4 sm:$0xff]   ;;  %v220_v30 = vld [vmem:[#allocation2 + $0x420] sm:$0xff]  ;;  %v245_v12 = vld [vmem:[#allocation2 + $0x4e8] sm:$0xff] }
 0x108   :  { %v228_v11 = vld [vmem:[#allocation2 + $0x460] sm:$0xff]  ;;  %v253_v0 = vld [vmem:[#allocation2 + $0x528] sm:$0xff] }
 0x109   :  { %2277 = vmatpush1.bf16.msra.mxu0 %v4872_v23  ;;  %v4915_v23 = vld [vmem:[#allocation7 + $0x3b0] ss:$8 sps:$4 sm:$0xff]   ;;  %v261_v42 = vld [vmem:[#allocation2 + $0x568] sm:$0xff] }
 0x10a   :  { %2278 = vmatprep.subr.bf16.mxu0 %v4886_v53  ;;  %4341 = vmatpush1.bf16.msra.mxu1 %v5416_v34  ;;  %v189_v34 = vld [vmem:[#allocation2 + $0x328] sm:$0xff] }
 0x10b   :  { %1564 = vmatmul.mubr.bf16.gmra.mrb[32].mxu1 %v536_v35  ;;  %v525_v20 = vpack.c.bf16 %v197_v44, %v189_v34  ;;  %v4920_v53 = vld [vmem:[#allocation7 + $0x3c4] ss:$8 sps:$4 sm:$0xff]   ;;  %v4927_v35 = vld [vmem:[#allocation7 + $0x3f0] ss:$8 sps:$4 sm:$0xff]   ;;  %v557_v34 = vpack.c.bf16 %v261_v42, %v253_v0 }
 0x10c   :  { %2050 = vmatmul.mubr.bf16.gmra.mrb[8].mxu0 %v492_v5  ;;  %1573 = vmatprep.mubr.bf16.mxu1 %v545_v38  ;;  %v524_v5 = vpack.c.bf16 %v196_v3, %v188_v22  ;;  %v540_v38 = vpack.c.bf16 %v228_v11, %v220_v30  ;;  %v312_v44 = vld [vmem:[#allocation2 + $0x700] sm:$0xff]  ;;  %v277_v2 = vld [vmem:[#allocation2 + $0x5e8] sm:$0xff] }
 0x10d   :  { %2059 = vmatprep.mubr.bf16.mxu0 %v501_v24  ;;  %2279 = vmatpush1.bf16.msra.mxu0 %v4884_v55  ;;  %v533_v24 = vpack.c.bf16 %v213_v4, %v205_v52  ;;  %v4918_v55 = vld [vmem:[#allocation7 + $0x3c0] ss:$8 sps:$4 sm:$0xff]   ;;  %v565_v22 = vpack.c.bf16 %v277_v2, %v269_v48 }
 0x10e   :  { %2280 = vmatprep.subr.bf16.mxu0 %v4898_v25  ;;  %v264_v25 = vld [vmem:[#allocation2 + $0x580] sm:$0xff]  ;;  %v353_v52 = vld [vmem:[#allocation2 + $0x848] sm:$0xff] }
 0x10f   :  { %v328_v3 = vld [vmem:[#allocation2 + $0x780] sm:$0xff]  ;;  %v317_v30 = vld [vmem:[#allocation2 + $0x728] sm:$0xff] }
 0x110   :  { %v268_v4 = vld [vmem:[#allocation2 + $0x5a0] sm:$0xff]  ;;  %v325_v11 = vld [vmem:[#allocation2 + $0x768] sm:$0xff] }
 0x111   :  { %2281 = vmatpush1.bf16.msra.mxu0 %v4896_v27  ;;  %v560_v27 = vpack.c.bf16 %v272_v56, %v264_v25  ;;  %v392_v42 = vld [vmem:[#allocation2 + $0x980] sm:$0xff] }
 0x112   :  { %2282 = vmatprep.subr.bf16.mxu0 %v4902_v61  ;;  %v569_v61 = vpack.c.bf16 %v289_v58, %v281_v57  ;;  %v352_v57 = vld [vmem:[#allocation2 + $0x840] sm:$0xff]  ;;  %v361_v58 = vld [vmem:[#allocation2 + $0x888] sm:$0xff] }
 0x113   :  { %1574 = vmatmul.mubr.bf16.gmra.mrb[36].mxu1 %v544_v43  ;;  %v548_v43 = vpack.c.bf16 %v244_v41, %v236_v17  ;;  %v341_v17 = vld [vmem:[#allocation2 + $0x7e8] sm:$0xff]  ;;  %v408_v2 = vld [vmem:[#allocation2 + $0xa00] sm:$0xff] }
 0x114   :  { %2060 = vmatmul.mubr.bf16.gmra.mrb[12].mxu0 %v500_v9  ;;  %1583 = vmatprep.mubr.bf16.mxu1 %v553_v46  ;;  %v532_v9 = vpack.c.bf16 %v212_v7, %v204_v26  ;;  %v329_v46 = vld [vmem:[#allocation2 + $0x788] sm:$0xff]  ;;  %v284_v7 = vld [vmem:[#allocation2 + $0x620] sm:$0xff] }
 0x115   :  { %2069 = vmatprep.mubr.bf16.mxu0 %v509_v28  ;;  %2283 = vmatpush1.bf16.msra.mxu0 %v4900_v63  ;;  %v541_v28 = vpack.c.bf16 %v229_v8, %v221_v60  ;;  %v4924_v63 = vld [vmem:[#allocation7 + $0x3e0] ss:$8 sps:$4 sm:$0xff]  }
 0x116   :  { %2284 = vmatprep.subr.bf16.mxu0 %v4905_v29  ;;  %v280_v29 = vld [vmem:[#allocation2 + $0x600] sm:$0xff]  ;;  %v369_v26 = vld [vmem:[#allocation2 + $0x8c8] sm:$0xff] }
 0x117   :  { %v301_v60 = vld [vmem:[#allocation2 + $0x6a8] sm:$0xff] }
 0x118   :  { %v309_v8 = vld [vmem:[#allocation2 + $0x6e8] sm:$0xff] }
 0x119   :  { %2285 = vmatpush1.bf16.msra.mxu0 %v4903_v31  ;;  %v568_v31 = vpack.c.bf16 %v288_v13, %v280_v29  ;;  %v377_v29 = vld [vmem:[#allocation2 + $0x908] sm:$0xff] }
 0x11a   :  { %2286 = vmatprep.subr.bf16.mxu0 %v4908_v37  ;;  %v577_v37 = vpack.c.bf16 %v305_v15, %v297_v14  ;;  %v385_v13 = vld [vmem:[#allocation2 + $0x948] sm:$0xff]  ;;  %v308_v14 = vld [vmem:[#allocation2 + $0x6e0] sm:$0xff] }
 0x11b   :  { %1584 = vmatmul.mubr.bf16.gmra.mrb[40].mxu1 %v552_v51  ;;  %v345_v51 = vld [vmem:[#allocation2 + $0x808] sm:$0xff] }
 0x11c   :  { %2070 = vmatmul.mubr.bf16.gmra.mrb[16].mxu0 %v508_v39  ;;  %1593 = vmatprep.mubr.bf16.mxu1 %v561_v54  ;;  %v549_v39 = vpack.c.bf16 %v245_v12, %v237_v36  ;;  %v589_v36 = vpack.c.bf16 %v325_v11, %v317_v30  ;;  %v376_v12 = vld [vmem:[#allocation2 + $0x900] sm:$0xff] }
 0x11d   :  { %2079 = vmatprep.mubr.bf16.mxu0 %v517_v16  ;;  %2287 = vmatpush1.bf16.msra.mxu0 %v4906_v32  ;;  %v296_v16 = vld [vmem:[#allocation2 + $0x680] sm:$0xff] }
 0x11e   :  { %2288 = vmatprep.subr.bf16.mxu0 %v4911_v33  ;;  %v304_v32 = vld [vmem:[#allocation2 + $0x6c0] sm:$0xff]  ;;  %v313_v33 = vld [vmem:[#allocation2 + $0x708] sm:$0xff] }
 0x11f   :  { %v576_v18 = vpack.c.bf16 %v304_v32, %v296_v16  ;;  %v316_v16 = vld [vmem:[#allocation2 + $0x720] sm:$0xff] }
 0x120   :  { %v324_v32 = vld [vmem:[#allocation2 + $0x760] sm:$0xff] }
 0x121   :  { %2289 = vmatpush1.bf16.msra.mxu0 %v4909_v19  ;;  %v585_v19 = vpack.c.bf16 %v321_v40, %v313_v33  ;;  %v333_v40 = vld [vmem:[#allocation2 + $0x7a8] sm:$0xff]  ;;  %v456_v11 = vld [vmem:[#allocation2 + $0xb80] sm:$0xff] }
 0x122   :  { %2290 = vmatprep.subr.bf16.mxu0 %v4914_v45  ;;  %v320_v45 = vld [vmem:[#allocation2 + $0x740] sm:$0xff]  ;;  %v597_v0 = vpack.c.bf16 %v341_v17, %v333_v40  ;;  %v282_v17 = vld [vmem:[#allocation2 + $0x610] sm:$0xff] }
 0x123   :  { %1594 = vmatmul.mubr.bf16.gmra.mrb[44].mxu1 %v560_v27  ;;  %v292_v27 = vld [vmem:[#allocation2 + $0x660] sm:$0xff] }
 0x124   :  { %2080 = vmatmul.mubr.bf16.gmra.mrb[20].mxu0 %v516_v1  ;;  %1603 = vmatprep.mubr.bf16.mxu1 %v569_v61  ;;  %v337_v1 = vld [vmem:[#allocation2 + $0x7c8] sm:$0xff]  ;;  %v609_v61 = vpack.c.bf16 %v369_v26, %v361_v58 }
 0x125   :  { %2089 = vmatprep.mubr.bf16.mxu0 %v525_v20  ;;  %2291 = vmatpush1.bf16.msra.mxu0 %v4912_v47  ;;  %v252_v20 = vld [vmem:[#allocation2 + $0x520] sm:$0xff]  ;;  %v593_v49 = vpack.c.bf16 %v337_v1, %v329_v46  ;;  %v349_v1 = vld [vmem:[#allocation2 + $0x828] sm:$0xff] }
 0x126   :  { %2292 = vmatprep.subr.bf16.mxu0 %v4917_v21  ;;  %v260_v47 = vld [vmem:[#allocation2 + $0x560] sm:$0xff]  ;;  %v584_v21 = vpack.c.bf16 %v320_v45, %v312_v44  ;;  %v381_v26 = vld [vmem:[#allocation2 + $0x928] sm:$0xff] }
 0x127   :  { %v556_v50 = vpack.c.bf16 %v260_v47, %v252_v20  ;;  %v332_v44 = vld [vmem:[#allocation2 + $0x7a0] sm:$0xff]  ;;  %v357_v20 = vld [vmem:[#allocation2 + $0x868] sm:$0xff] }
 0x128   :  { %v340_v45 = vld [vmem:[#allocation2 + $0x7e0] sm:$0xff]  ;;  %v605_v48 = vpack.c.bf16 %v357_v20, %v349_v1  ;;  %v298_v20 = vld [vmem:[#allocation2 + $0x690] sm:$0xff] }
 0x129   :  { %2293 = vmatpush1.bf16.msra.mxu0 %v4915_v23  ;;  %v336_v23 = vld [vmem:[#allocation2 + $0x7c0] sm:$0xff] }
 0x12a   :  { %2294 = vmatprep.subr.bf16.mxu0 %v4920_v53  ;;  %v276_v53 = vld [vmem:[#allocation2 + $0x5e0] sm:$0xff]  ;;  %v592_v54 = vpack.c.bf16 %v336_v23, %v328_v3 }
 0x12b   :  { %1604 = vmatmul.mubr.bf16.gmra.mrb[48].mxu1 %v568_v31  ;;  %v564_v25 = vpack.c.bf16 %v276_v53, %v268_v4  ;;  %v617_v31 = vpack.c.bf16 %v385_v13, %v377_v29  ;;  %v348_v3 = vld [vmem:[#allocation2 + $0x820] sm:$0xff]  ;;  %v373_v4 = vld [vmem:[#allocation2 + $0x8e8] sm:$0xff] }
 0x12c   :  { %2090 = vmatmul.mubr.bf16.gmra.mrb[24].mxu0 %v524_v5  ;;  %1613 = vmatprep.mubr.bf16.mxu1 %v577_v37  ;;  %v285_v5 = vld [vmem:[#allocation2 + $0x628] sm:$0xff]  ;;  %v384_v37 = vld [vmem:[#allocation2 + $0x940] sm:$0xff] }
 0x12d   :  { %2099 = vmatprep.mubr.bf16.mxu0 %v533_v24  ;;  %2295 = vmatpush1.bf16.msra.mxu0 %v4918_v55  ;;  %v293_v24 = vld [vmem:[#allocation2 + $0x668] sm:$0xff]  ;;  %v601_v55 = vpack.c.bf16 %v353_v52, %v345_v51  ;;  %v616_v33 = vpack.c.bf16 %v384_v37, %v376_v12  ;;  %v356_v23 = vld [vmem:[#allocation2 + $0x860] sm:$0xff] }
 0x12e   :  { %2296 = vmatprep.subr.bf16.mxu0 %v4923_v6  ;;  %v573_v56 = vpack.c.bf16 %v293_v24, %v285_v5  ;;  %v344_v6 = vld [vmem:[#allocation2 + $0x800] sm:$0xff]  ;;  %v365_v52 = vld [vmem:[#allocation2 + $0x8a8] sm:$0xff] }
 0x12f   :  { %v613_v5 = vpack.c.bf16 %v373_v4, %v365_v52  ;;  %v424_v24 = vld [vmem:[#allocation2 + $0xa80] sm:$0xff]  ;;  %v397_v13 = vld [vmem:[#allocation2 + $0x9a8] sm:$0xff]  ;;  %v314_v4 = vld [vmem:[#allocation2 + $0x710] sm:$0xff] }
 0x130   :  { %v396_v12 = vld [vmem:[#allocation2 + $0x9a0] sm:$0xff] }
 0x131   :  { %2297 = vmatpush1.bf16.msra.mxu0 %v4921_v59  ;;  %v600_v59 = vpack.c.bf16 %v352_v57, %v344_v6  ;;  %v364_v6 = vld [vmem:[#allocation2 + $0x8a0] sm:$0xff] }
 0x132   :  { %2298 = vmatprep.subr.bf16.mxu0 %v4926_v62  ;;  %v572_v62 = vpack.c.bf16 %v292_v27, %v284_v7  ;;  %v372_v57 = vld [vmem:[#allocation2 + $0x8e0] sm:$0xff]  ;;  %v389_v7 = vld [vmem:[#allocation2 + $0x968] sm:$0xff] }
 0x133   :  { %1614 = vmatmul.mubr.bf16.gmra.mrb[52].mxu1 %v576_v18  ;;  %v588_v18 = vpack.c.bf16 %v324_v32, %v316_v16  ;;  %v404_v37 = vld [vmem:[#allocation2 + $0x9e0] sm:$0xff]  ;;  %v421_v16 = vld [vmem:[#allocation2 + $0xa68] sm:$0xff] }
 0x134   :  { %2100 = vmatmul.mubr.bf16.gmra.mrb[28].mxu0 %v532_v9  ;;  %1623 = vmatprep.mubr.bf16.mxu1 %v585_v19  ;;  %v581_v9 = vpack.c.bf16 %v309_v8, %v301_v60  ;;  %v400_v19 = vld [vmem:[#allocation2 + $0x9c0] sm:$0xff]  ;;  %v621_v60 = vpack.c.bf16 %v389_v7, %v381_v26  ;;  %v330_v7 = vld [vmem:[#allocation2 + $0x790] sm:$0xff] }
 0x135   :  { %2109 = vmatprep.mubr.bf16.mxu0 %v541_v28  ;;  %2299 = vmatpush1.bf16.msra.mxu0 %v4924_v63  ;;  %v360_v28 = vld [vmem:[#allocation2 + $0x880] sm:$0xff]  ;;  %v624_v46 = vpack.c.bf16 %v400_v19, %v392_v42 }
 0x136   :  { %2300 = vmatprep.subr.bf16.mxu0 %v4929_v10  ;;  %v368_v63 = vld [vmem:[#allocation2 + $0x8c0] sm:$0xff] }
 0x137   :  { %v300_v10 = vld [vmem:[#allocation2 + $0x6a0] sm:$0xff]  ;;  %v608_v15 = vpack.c.bf16 %v368_v63, %v360_v28 }
 0x138   :  { %v440_v8 = vld [vmem:[#allocation2 + $0xb00] sm:$0xff] }
 0x139   :  { %2301 = vmatpush1.bf16.msra.mxu0 %v4927_v35  ;;  %v580_v35 = vpack.c.bf16 %v308_v14, %v300_v10  ;;  %v380_v28 = vld [vmem:[#allocation2 + $0x920] sm:$0xff]  ;;  %v405_v10 = vld [vmem:[#allocation2 + $0x9e8] sm:$0xff] }
 0x13a   :  { %v388_v63 = vld [vmem:[#allocation2 + $0x960] sm:$0xff]  ;;  %v629_v30 = vpack.c.bf16 %v405_v10, %v397_v13  ;;  %v346_v10 = vld [vmem:[#allocation2 + $0x810] sm:$0xff] }
 0x13b   :  { %1624 = vmatmul.mubr.bf16.gmra.mrb[56].mxu1 %v584_v21  ;;  %v596_v21 = vpack.c.bf16 %v340_v45, %v332_v44  ;;  %v412_v42 = vld [vmem:[#allocation2 + $0xa20] sm:$0xff]  ;;  %v437_v44 = vld [vmem:[#allocation2 + $0xae8] sm:$0xff] }
 0x13c   :  { %2110 = vmatmul.mubr.bf16.gmra.mrb[32].mxu0 %v540_v38  ;;  %1633 = vmatprep.mubr.bf16.mxu1 %v593_v49  ;;  %v393_v38 = vld [vmem:[#allocation2 + $0x988] sm:$0xff]  ;;  %v416_v49 = vld [vmem:[#allocation2 + $0xa40] sm:$0xff] }
 0x13d   :  { %2119 = vmatprep.mubr.bf16.mxu0 %v549_v39  ;;  %v401_v39 = vld [vmem:[#allocation2 + $0x9c8] sm:$0xff]  ;;  %v632_v51 = vpack.c.bf16 %v416_v49, %v408_v2  ;;  %v420_v19 = vld [vmem:[#allocation2 + $0xa60] sm:$0xff] }
 0x13e   :  { %v625_v41 = vpack.c.bf16 %v401_v39, %v393_v38  ;;  %v413_v39 = vld [vmem:[#allocation2 + $0xa28] sm:$0xff]  ;;  %v428_v2 = vld [vmem:[#allocation2 + $0xaa0] sm:$0xff] }
 0x13f   :  { %v637_v40 = vpack.c.bf16 %v421_v16, %v413_v39  ;;  %v436_v49 = vld [vmem:[#allocation2 + $0xae0] sm:$0xff]  ;;  %v362_v16 = vld [vmem:[#allocation2 + $0x890] sm:$0xff] }
 0x143   :  { %1634 = vmatmul.mubr.bf16.gmra.mrb[60].mxu1 %v592_v54  ;;  %v604_v54 = vpack.c.bf16 %v356_v23, %v348_v3  ;;  %v453_v3 = vld [vmem:[#allocation2 + $0xb68] sm:$0xff] }
 0x144   :  { %2120 = vmatmul.mubr.bf16.gmra.mrb[36].mxu0 %v548_v43  ;;  %1643 = vmatprep.mubr.bf16.mxu1 %v601_v55  ;;  %v409_v43 = vld [vmem:[#allocation2 + $0xa08] sm:$0xff]  ;;  %v432_v55 = vld [vmem:[#allocation2 + $0xac0] sm:$0xff] }
 0x145   :  { %2129 = vmatprep.mubr.bf16.mxu0 %v557_v34  ;;  %v417_v34 = vld [vmem:[#allocation2 + $0xa48] sm:$0xff]  ;;  %v640_v58 = vpack.c.bf16 %v432_v55, %v424_v24  ;;  %v444_v24 = vld [vmem:[#allocation2 + $0xb20] sm:$0xff] }
 0x146   :  { %v633_v47 = vpack.c.bf16 %v417_v34, %v409_v43  ;;  %v429_v34 = vld [vmem:[#allocation2 + $0xaa8] sm:$0xff]  ;;  %v452_v55 = vld [vmem:[#allocation2 + $0xb60] sm:$0xff] }
 0x147   :  { %v645_v1 = vpack.c.bf16 %v437_v44, %v429_v34  ;;  %v378_v44 = vld [vmem:[#allocation2 + $0x910] sm:$0xff] }
 0x14b   :  { %1644 = vmatmul.mubr.bf16.gmra.mrb[64].mxu1 %v600_v59  ;;  %v612_v59 = vpack.c.bf16 %v372_v57, %v364_v6  ;;  %v469_v6 = vld [vmem:[#allocation2 + $0xbe8] sm:$0xff] }
 0x14c   :  { %2130 = vmatmul.mubr.bf16.gmra.mrb[40].mxu0 %v556_v50  ;;  %1653 = vmatprep.mubr.bf16.mxu1 %v609_v61  ;;  %v425_v50 = vld [vmem:[#allocation2 + $0xa88] sm:$0xff]  ;;  %v448_v61 = vld [vmem:[#allocation2 + $0xb40] sm:$0xff] }
 0x14d   :  { %2139 = vmatprep.mubr.bf16.mxu0 %v565_v22  ;;  %v433_v22 = vld [vmem:[#allocation2 + $0xac8] sm:$0xff]  ;;  %v648_v29 = vpack.c.bf16 %v448_v61, %v440_v8  ;;  %v460_v8 = vld [vmem:[#allocation2 + $0xba0] sm:$0xff] }
 0x14e   :  { %v641_v53 = vpack.c.bf16 %v433_v22, %v425_v50  ;;  %v445_v22 = vld [vmem:[#allocation2 + $0xb28] sm:$0xff]  ;;  %v468_v61 = vld [vmem:[#allocation2 + $0xbe0] sm:$0xff] }
 0x14f   :  { %v653_v52 = vpack.c.bf16 %v453_v3, %v445_v22  ;;  %v394_v3 = vld [vmem:[#allocation2 + $0x990] sm:$0xff] }
 0x153   :  { %1654 = vmatmul.mubr.bf16.gmra.mrb[68].mxu1 %v608_v15  ;;  %v620_v15 = vpack.c.bf16 %v388_v63, %v380_v28  ;;  %v103_v28 = vld [vmem:[#allocation2 + $0x78] sm:$0xff] }
 0x154   :  { %2140 = vmatmul.mubr.bf16.gmra.mrb[44].mxu0 %v564_v25  ;;  %1663 = vmatprep.mubr.bf16.mxu1 %v617_v31  ;;  %v441_v25 = vld [vmem:[#allocation2 + $0xb08] sm:$0xff]  ;;  %v464_v31 = vld [vmem:[#allocation2 + $0xbc0] sm:$0xff] }
 0x155   :  { %2149 = vmatprep.mubr.bf16.mxu0 %v573_v56  ;;  %v449_v56 = vld [vmem:[#allocation2 + $0xb48] sm:$0xff]  ;;  %v656_v38 = vpack.c.bf16 %v464_v31, %v456_v11  ;;  %v94_v11 = vld [vmem:[#allocation2 + $0x30] sm:$0xff] }
 0x156   :  { %v649_v27 = vpack.c.bf16 %v449_v56, %v441_v25  ;;  %v461_v56 = vld [vmem:[#allocation2 + $0xba8] sm:$0xff]  ;;  %v102_v31 = vld [vmem:[#allocation2 + $0x70] sm:$0xff] }
 0x157   :  { %v661_v26 = vpack.c.bf16 %v469_v6, %v461_v56  ;;  %v410_v6 = vld [vmem:[#allocation2 + $0xa10] sm:$0xff] }
 0x15b   :  { %1664 = vmatmul.mubr.bf16.gmra.mrb[72].mxu1 %v616_v33  ;;  %v628_v33 = vpack.c.bf16 %v404_v37, %v396_v12  ;;  %v119_v12 = vld [vmem:[#allocation2 + $0xf8] sm:$0xff] }
 0x15c   :  { %2150 = vmatmul.mubr.bf16.gmra.mrb[48].mxu0 %v572_v62  ;;  %1673 = vmatprep.mubr.bf16.mxu1 %v625_v41  ;;  %v457_v62 = vld [vmem:[#allocation2 + $0xb88] sm:$0xff]  ;;  %v290_v41 = vld [vmem:[#allocation2 + $0x650] sm:$0xff] }
 0x15d   :  { %2159 = vmatprep.mubr.bf16.mxu0 %v581_v9  ;;  %v465_v9 = vld [vmem:[#allocation2 + $0xbc8] sm:$0xff]  ;;  %v570_v43 = vpack.c.bf16 %v290_v41, %v282_v17  ;;  %v110_v17 = vld [vmem:[#allocation2 + $0xb0] sm:$0xff] }
 0x15e   :  { %v657_v14 = vpack.c.bf16 %v465_v9, %v457_v62  ;;  %v95_v9 = vld [vmem:[#allocation2 + $0x38] sm:$0xff]  ;;  %v118_v41 = vld [vmem:[#allocation2 + $0xf0] sm:$0xff] }
 0x15f   :  { %v479_v13 = vpack.c.bf16 %v103_v28, %v95_v9  ;;  %v426_v28 = vld [vmem:[#allocation2 + $0xa90] sm:$0xff] }
 0x163   :  { %1674 = vmatmul.mubr.bf16.gmra.mrb[76].mxu1 %v624_v46  ;;  %v636_v46 = vpack.c.bf16 %v420_v19, %v412_v42  ;;  %v135_v42 = vld [vmem:[#allocation2 + $0x178] sm:$0xff] }
 0x164   :  { %2160 = vmatmul.mubr.bf16.gmra.mrb[52].mxu0 %v580_v35  ;;  %1683 = vmatprep.mubr.bf16.mxu1 %v633_v47  ;;  %v283_v35 = vld [vmem:[#allocation2 + $0x618] sm:$0xff]  ;;  %v306_v47 = vld [vmem:[#allocation2 + $0x6d0] sm:$0xff] }
 0x165   :  { %2169 = vmatprep.mubr.bf16.mxu0 %v589_v36  ;;  %v291_v36 = vld [vmem:[#allocation2 + $0x658] sm:$0xff]  ;;  %v578_v50 = vpack.c.bf16 %v306_v47, %v298_v20  ;;  %v126_v20 = vld [vmem:[#allocation2 + $0x130] sm:$0xff] }
 0x166   :  { %v571_v32 = vpack.c.bf16 %v291_v36, %v283_v35  ;;  %v111_v36 = vld [vmem:[#allocation2 + $0xb8] sm:$0xff]  ;;  %v134_v47 = vld [vmem:[#allocation2 + $0x170] sm:$0xff] }
 0x167   :  { %v487_v39 = vpack.c.bf16 %v119_v12, %v111_v36  ;;  %v442_v12 = vld [vmem:[#allocation2 + $0xb10] sm:$0xff] }
 0x16b   :  { %1684 = vmatmul.mubr.bf16.gmra.mrb[80].mxu1 %v632_v51  ;;  %v644_v51 = vpack.c.bf16 %v436_v49, %v428_v2  ;;  %v151_v2 = vld [vmem:[#allocation2 + $0x1f8] sm:$0xff] }
 0x16c   :  { %2170 = vmatmul.mubr.bf16.gmra.mrb[56].mxu0 %v588_v18  ;;  %1693 = vmatprep.mubr.bf16.mxu1 %v641_v53  ;;  %v299_v18 = vld [vmem:[#allocation2 + $0x698] sm:$0xff]  ;;  %v322_v53 = vld [vmem:[#allocation2 + $0x750] sm:$0xff] }
 0x16d   :  { %2179 = vmatprep.mubr.bf16.mxu0 %v597_v0  ;;  %v307_v0 = vld [vmem:[#allocation2 + $0x6d8] sm:$0xff]  ;;  %v586_v25 = vpack.c.bf16 %v322_v53, %v314_v4  ;;  %v142_v4 = vld [vmem:[#allocation2 + $0x1b0] sm:$0xff] }
 0x16e   :  { %v579_v45 = vpack.c.bf16 %v307_v0, %v299_v18  ;;  %v127_v0 = vld [vmem:[#allocation2 + $0x138] sm:$0xff]  ;;  %v150_v53 = vld [vmem:[#allocation2 + $0x1f0] sm:$0xff] }
 0x16f   :  { %v495_v34 = vpack.c.bf16 %v135_v42, %v127_v0  ;;  %v458_v42 = vld [vmem:[#allocation2 + $0xb90] sm:$0xff] }
 0x173   :  { %1694 = vmatmul.mubr.bf16.gmra.mrb[84].mxu1 %v640_v58  ;;  %v652_v58 = vpack.c.bf16 %v452_v55, %v444_v24  ;;  %v167_v24 = vld [vmem:[#allocation2 + $0x278] sm:$0xff] }
 0x174   :  { %2180 = vmatmul.mubr.bf16.gmra.mrb[60].mxu0 %v596_v21  ;;  %1703 = vmatprep.mubr.bf16.mxu1 %v649_v27  ;;  %v315_v21 = vld [vmem:[#allocation2 + $0x718] sm:$0xff]  ;;  %v338_v27 = vld [vmem:[#allocation2 + $0x7d0] sm:$0xff] }
 0x175   :  { %2189 = vmatprep.mubr.bf16.mxu0 %v605_v48  ;;  %v323_v48 = vld [vmem:[#allocation2 + $0x758] sm:$0xff]  ;;  %v594_v62 = vpack.c.bf16 %v338_v27, %v330_v7  ;;  %v158_v7 = vld [vmem:[#allocation2 + $0x230] sm:$0xff] }
 0x176   :  { %v587_v23 = vpack.c.bf16 %v323_v48, %v315_v21  ;;  %v143_v48 = vld [vmem:[#allocation2 + $0x1b8] sm:$0xff]  ;;  %v166_v27 = vld [vmem:[#allocation2 + $0x270] sm:$0xff] }
 0x177   :  { %v503_v22 = vpack.c.bf16 %v151_v2, %v143_v48 }
 0x17b   :  { %1704 = vmatmul.mubr.bf16.gmra.mrb[88].mxu1 %v648_v29  ;;  %v660_v29 = vpack.c.bf16 %v468_v61, %v460_v8  ;;  %v183_v8 = vld [vmem:[#allocation2 + $0x2f8] sm:$0xff] }
 0x17c   :  { %2190 = vmatmul.mubr.bf16.gmra.mrb[64].mxu0 %v604_v54  ;;  %1713 = vmatprep.mubr.bf16.mxu1 %v657_v14  ;;  %v331_v54 = vld [vmem:[#allocation2 + $0x798] sm:$0xff]  ;;  %v354_v14 = vld [vmem:[#allocation2 + $0x850] sm:$0xff] }
 0x17d   :  { %2199 = vmatprep.mubr.bf16.mxu0 %v613_v5  ;;  %v339_v5 = vld [vmem:[#allocation2 + $0x7d8] sm:$0xff]  ;;  %v602_v35 = vpack.c.bf16 %v354_v14, %v346_v10  ;;  %v174_v10 = vld [vmem:[#allocation2 + $0x2b0] sm:$0xff] }
 0x17e   :  { %v595_v57 = vpack.c.bf16 %v339_v5, %v331_v54  ;;  %v159_v5 = vld [vmem:[#allocation2 + $0x238] sm:$0xff]  ;;  %v182_v14 = vld [vmem:[#allocation2 + $0x2f0] sm:$0xff] }
 0x17f   :  { %v511_v56 = vpack.c.bf16 %v167_v24, %v159_v5 }
 0x183   :  { %1714 = vmatmul.mubr.bf16.gmra.mrb[92].mxu1 %v656_v38  ;;  %v478_v38 = vpack.c.bf16 %v102_v31, %v94_v11  ;;  %v199_v11 = vld [vmem:[#allocation2 + $0x378] sm:$0xff] }
 0x184   :  { %2200 = vmatmul.mubr.bf16.gmra.mrb[68].mxu0 %v612_v59  ;;  %1876 = vmatprep.mubr.bf16.mxu1 %v571_v32  ;;  %v347_v59 = vld [vmem:[#allocation2 + $0x818] sm:$0xff]  ;;  %v370_v32 = vld [vmem:[#allocation2 + $0x8d0] sm:$0xff] }
 0x185   :  { %2209 = vmatprep.mubr.bf16.mxu0 %v621_v60  ;;  %v355_v60 = vld [vmem:[#allocation2 + $0x858] sm:$0xff]  ;;  %v610_v18 = vpack.c.bf16 %v370_v32, %v362_v16  ;;  %v190_v16 = vld [vmem:[#allocation2 + $0x330] sm:$0xff] }
 0x186   :  { %v603_v63 = vpack.c.bf16 %v355_v60, %v347_v59  ;;  %v175_v60 = vld [vmem:[#allocation2 + $0x2b8] sm:$0xff]  ;;  %v198_v32 = vld [vmem:[#allocation2 + $0x370] sm:$0xff] }
 0x187   :  { %v519_v9 = vpack.c.bf16 %v183_v8, %v175_v60 }
 0x18b   :  { %1877 = vmatmul.mubr.bf16.vlgmr.msra.gmra.mrb[48].mxu1 %v570_v43  ;;  %v486_v43 = vpack.c.bf16 %v118_v41, %v110_v17  ;;  %v215_v17 = vld [vmem:[#allocation2 + $0x3f8] sm:$0xff] }
 0x18c   :  { %2210 = vmatmul.mubr.bf16.gmra.mrb[72].mxu0 %v620_v15  ;;  %1886 = vmatprep.mubr.bf16.mxu1 %v579_v45  ;;  %v363_v15 = vld [vmem:[#allocation2 + $0x898] sm:$0xff]  ;;  %v386_v45 = vld [vmem:[#allocation2 + $0x950] sm:$0xff] }
 0x18d   :  { %2219 = vmatprep.mubr.bf16.mxu0 %v629_v30  ;;  %v371_v30 = vld [vmem:[#allocation2 + $0x8d8] sm:$0xff]  ;;  %v618_v21 = vpack.c.bf16 %v386_v45, %v378_v44  ;;  %v214_v44 = vld [vmem:[#allocation2 + $0x3f0] sm:$0xff] }
 0x18e   :  { %v611_v37 = vpack.c.bf16 %v371_v30, %v363_v15  ;;  %v191_v30 = vld [vmem:[#allocation2 + $0x338] sm:$0xff] }
 0x18f   :  { %v527_v36 = vpack.c.bf16 %v199_v11, %v191_v30  ;;  %v295_v30 = vld [vmem:[#allocation2 + $0x678] sm:$0xff] }
 0x193   :  { %1887 = vmatmul.mubr.bf16.gmra.mrb[52].mxu1 %v578_v50  ;;  %v494_v50 = vpack.c.bf16 %v134_v47, %v126_v20  ;;  %v231_v20 = vld [vmem:[#allocation2 + $0x478] sm:$0xff] }
 0x194   :  { %2220 = vmatmul.mubr.bf16.gmra.mrb[76].mxu0 %v628_v33  ;;  %1896 = vmatprep.mubr.bf16.mxu1 %v587_v23  ;;  %v379_v33 = vld [vmem:[#allocation2 + $0x918] sm:$0xff]  ;;  %v402_v23 = vld [vmem:[#allocation2 + $0x9d0] sm:$0xff] }
 0x195   :  { %2229 = vmatprep.mubr.bf16.mxu0 %v637_v40  ;;  %v387_v40 = vld [vmem:[#allocation2 + $0x958] sm:$0xff]  ;;  %v626_v54 = vpack.c.bf16 %v402_v23, %v394_v3 }
 0x196   :  { %v619_v19 = vpack.c.bf16 %v387_v40, %v379_v33  ;;  %v207_v40 = vld [vmem:[#allocation2 + $0x3b8] sm:$0xff] }
 0x197   :  { %v535_v0 = vpack.c.bf16 %v215_v17, %v207_v40  ;;  %v239_v23 = vld [vmem:[#allocation2 + $0x4b8] sm:$0xff] }
 0x19b   :  { %1897 = vmatmul.mubr.bf16.gmra.mrb[56].mxu1 %v586_v25  ;;  %v502_v25 = vpack.c.bf16 %v150_v53, %v142_v4 }
 0x19c   :  { %2230 = vmatmul.mubr.bf16.gmra.mrb[80].mxu0 %v636_v46  ;;  %1906 = vmatprep.mubr.bf16.mxu1 %v595_v57  ;;  %v395_v46 = vld [vmem:[#allocation2 + $0x998] sm:$0xff]  ;;  %v418_v57 = vld [vmem:[#allocation2 + $0xa50] sm:$0xff] }
 0x19d   :  { %2239 = vmatprep.mubr.bf16.mxu0 %v645_v1  ;;  %v403_v1 = vld [vmem:[#allocation2 + $0x9d8] sm:$0xff]  ;;  %v634_v59 = vpack.c.bf16 %v418_v57, %v410_v6  ;;  %v238_v6 = vld [vmem:[#allocation2 + $0x4b0] sm:$0xff] }
 0x19e   :  { %v627_v49 = vpack.c.bf16 %v403_v1, %v395_v46  ;;  %v223_v1 = vld [vmem:[#allocation2 + $0x438] sm:$0xff]  ;;  %v246_v57 = vld [vmem:[#allocation2 + $0x4f0] sm:$0xff] }
 0x19f   :  { %v543_v2 = vpack.c.bf16 %v231_v20, %v223_v1  ;;  %v550_v60 = vpack.c.bf16 %v246_v57, %v238_v6  ;;  %v302_v20 = vld [vmem:[#allocation2 + $0x6b0] sm:$0xff] }
 0x1a0   :  { %v318_v57 = vld [vmem:[#allocation2 + $0x730] sm:$0xff] }
 0x1a3   :  { %1907 = vmatmul.mubr.bf16.gmra.mrb[60].mxu1 %v594_v62  ;;  %v510_v62 = vpack.c.bf16 %v166_v27, %v158_v7  ;;  %v263_v7 = vld [vmem:[#allocation2 + $0x578] sm:$0xff] }
 0x1a4   :  { %2240 = vmatmul.mubr.bf16.gmra.mrb[84].mxu0 %v644_v51  ;;  %1916 = vmatprep.mubr.bf16.mxu1 %v603_v63  ;;  %v411_v51 = vld [vmem:[#allocation2 + $0xa18] sm:$0xff]  ;;  %v434_v63 = vld [vmem:[#allocation2 + $0xad0] sm:$0xff] }
 0x1a5   :  { %2249 = vmatprep.mubr.bf16.mxu0 %v653_v52  ;;  %v419_v52 = vld [vmem:[#allocation2 + $0xa58] sm:$0xff]  ;;  %v642_v15 = vpack.c.bf16 %v434_v63, %v426_v28 }
 0x1a6   :  { %v635_v55 = vpack.c.bf16 %v419_v52, %v411_v51  ;;  %v247_v51 = vld [vmem:[#allocation2 + $0x4f8] sm:$0xff] }
 0x1a7   :  { %v551_v5 = vpack.c.bf16 %v247_v51, %v239_v23  ;;  %v271_v28 = vld [vmem:[#allocation2 + $0x5b8] sm:$0xff] }
 0x1a8   :  { %v279_v63 = vld [vmem:[#allocation2 + $0x5f8] sm:$0xff] }
 0x1ab   :  { %1917 = vmatmul.mubr.bf16.gmra.mrb[64].mxu1 %v602_v35  ;;  %v518_v35 = vpack.c.bf16 %v182_v14, %v174_v10  ;;  %v270_v10 = vld [vmem:[#allocation2 + $0x5b0] sm:$0xff] }
 0x1ac   :  { %2250 = vmatmul.mubr.bf16.gmra.mrb[88].mxu0 %v652_v58  ;;  %1926 = vmatprep.mubr.bf16.mxu1 %v611_v37  ;;  %v427_v58 = vld [vmem:[#allocation2 + $0xa98] sm:$0xff]  ;;  %v450_v37 = vld [vmem:[#allocation2 + $0xb50] sm:$0xff] }
 0x1ad   :  { %2259 = vmatprep.mubr.bf16.mxu0 %v661_v26  ;;  %v435_v26 = vld [vmem:[#allocation2 + $0xad8] sm:$0xff]  ;;  %v650_v33 = vpack.c.bf16 %v450_v37, %v442_v12  ;;  %v278_v14 = vld [vmem:[#allocation2 + $0x5f0] sm:$0xff]  ;;  %v793_v37 = vlaneseq }
 0x1ae   :  { %v643_v61 = vpack.c.bf16 %v435_v26, %v427_v58  ;;  %v255_v26 = vld [vmem:[#allocation2 + $0x538] sm:$0xff] }
 0x1af   :  { %v5495_v40 = vshrl.u32 %v793_v37, 7 }
 0x1b3   :  { %1927 = vmatmul.mubr.bf16.gmra.mrb[68].mxu1 %v610_v18  ;;  %v526_v18 = vpack.c.bf16 %v198_v32, %v190_v16  ;;  %v303_v32 = vld [vmem:[#allocation2 + $0x6b8] sm:$0xff] }
 0x1b4   :  { %2260 = vmatmul.mubr.bf16.gmra.mrb[92].mxu0 %v660_v29  ;;  %1936 = vmatprep.mubr.bf16.mxu1 %v619_v19  ;;  %v443_v29 = vld [vmem:[#allocation2 + $0xb18] sm:$0xff]  ;;  %v466_v19 = vld [vmem:[#allocation2 + $0xbd0] sm:$0xff] }
 0x1b5   :  { %2302 = vmatprep.mubr.bf16.mxu0 %v479_v13  ;;  %v451_v13 = vld [vmem:[#allocation2 + $0xb58] sm:$0xff]  ;;  %v658_v45 = vpack.c.bf16 %v466_v19, %v458_v42 }
 0x1b6   :  { %v651_v31 = vpack.c.bf16 %v451_v13, %v443_v29  ;;  %v567_v13 = vpack.c.bf16 %v279_v63, %v271_v28 }
 0x1bb   :  { %1937 = vmatmul.mubr.bf16.gmra.mrb[72].mxu1 %v618_v21 }
 0x1bc   :  { %2303 = vmatmul.mubr.bf16.vlgmr.msra.gmra.mrb[0].mxu0 %v478_v38  ;;  %1946 = vmatprep.mubr.bf16.mxu1 %v627_v49  ;;  %v459_v38 = vld [vmem:[#allocation2 + $0xb98] sm:$0xff] }
 0x1bd   :  { %2312 = vmatprep.mubr.bf16.mxu0 %v487_v39  ;;  %v467_v39 = vld [vmem:[#allocation2 + $0xbd8] sm:$0xff] }
 0x1be   :  { %v659_v41 = vpack.c.bf16 %v467_v39, %v459_v38  ;;  %v286_v38 = vld [vmem:[#allocation2 + $0x630] sm:$0xff] }
 0x1bf   :  { %v294_v39 = vld [vmem:[#allocation2 + $0x670] sm:$0xff] }
 0x1c3   :  { %1947 = vmatmul.mubr.bf16.gmra.mrb[76].mxu1 %v626_v54 }
 0x1c4   :  { %2313 = vmatmul.mubr.bf16.gmra.mrb[4].mxu0 %v486_v43  ;;  %1956 = vmatprep.mubr.bf16.mxu1 %v635_v55  ;;  %v5453_v43 = vpop.f32.mrb[0].mxu1 }
 0x1c5   :  { %2322 = vmatprep.mubr.bf16.mxu0 %v495_v34  ;;  %v206_v34 = vld [vmem:[#allocation2 + $0x3b0] sm:$0xff]  ;;  %v5455_v46 = vpop.f32.mrb[1].mxu1 }
 0x1c6   :  { %v5457_v47 = vpop.f32.mrb[2].mxu1  ;;  %v534_v48 = vpack.c.bf16 %v214_v44, %v206_v34  ;;  %v5505_v34 = vld [vmem:[#allocation10] sm:$0xf] }
 0x1c7   :  { %v5459_v21 = vpop.f32.mrb[3].mxu1  ;;  %7115 = vst [vmem:[#allocation17_spill] sm:$0xff] %v5505_v34 }
 0x1c8   :  { %v5461_v49 = vpop.f32.mrb[4].mxu1 }
 0x1c9   :  { %v5463_v3 = vpop.f32.mrb[5].mxu1 }
 0x1ca   :  { %v5465_v52 = vpop.f32.mrb[6].mxu1 }
 0x1cb   :  { %1957 = vmatmul.mubr.bf16.gmra.mrb[80].mxu1 %v634_v59  ;;  %v5467_v4 = vpop.f32.mrb[7].mxu1 }
 0x1cc   :  { %2323 = vmatmul.mubr.bf16.gmra.mrb[8].mxu0 %v494_v50  ;;  %1966 = vmatprep.mubr.bf16.mxu1 %v643_v61  ;;  %v222_v50 = vld [vmem:[#allocation2 + $0x430] sm:$0xff]  ;;  %v5469_v54 = vpop.f32.mrb[8].mxu1  ;;  %v559_v61 = vpack.c.bf16 %v263_v7, %v255_v26 }
 0x1cd   :  { %2332 = vmatprep.mubr.bf16.mxu0 %v503_v22  ;;  %v230_v22 = vld [vmem:[#allocation2 + $0x470] sm:$0xff]  ;;  %v5471_v24 = vpop.f32.mrb[9].mxu1 }
 0x1ce   :  { %v542_v53 = vpack.c.bf16 %v230_v22, %v222_v50  ;;  %v5473_v55 = vpop.f32.mrb[10].mxu1  ;;  %v319_v50 = vld [vmem:[#allocation2 + $0x738] sm:$0xff]  ;;  %v326_v26 = vld [vmem:[#allocation2 + $0x770] sm:$0xff] }
 0x1cf   :  { %v327_v22 = vld [vmem:[#allocation2 + $0x778] sm:$0xff] }
 0x1d3   :  { %1967 = vmatmul.mubr.bf16.gmra.mrb[84].mxu1 %v642_v15  ;;  %v287_v15 = vld [vmem:[#allocation2 + $0x638] sm:$0xff] }
 0x1d4   :  { %2333 = vmatmul.mubr.bf16.gmra.mrb[12].mxu0 %v502_v25  ;;  %1976 = vmatprep.mubr.bf16.mxu1 %v651_v31  ;;  %v5475_v25 = vpop.f32.mrb[11].mxu1  ;;  %v566_v31 = vpack.c.bf16 %v278_v14, %v270_v10  ;;  %v342_v10 = vld [vmem:[#allocation2 + $0x7f0] sm:$0xff] }
 0x1d5   :  { %2342 = vmatprep.mubr.bf16.mxu0 %v511_v56  ;;  %v5477_v56 = vpop.f32.mrb[12].mxu1 }
 0x1d6   :  { %v5479_v58 = vpop.f32.mrb[13].mxu1 }
 0x1d7   :  { %v5481_v27 = vpop.f32.mrb[14].mxu1 }
 0x1d8   :  { %v5483_v59 = vpop.f32.mrb[15].mxu1 }
 0x1d9   :  { %v5485_v8 = vpop.f32.mrb[16].mxu1 }
 0x1da   :  { %v5487_v11 = vpop.f32.mrb[17].mxu1 }
 0x1db   :  { %1977 = vmatmul.mubr.bf16.gmra.mrb[88].mxu1 %v650_v33  ;;  %v311_v33 = vld [vmem:[#allocation2 + $0x6f8] sm:$0xff] }
 0x1dc   :  { %2343 = vmatmul.mubr.bf16.gmra.mrb[16].mxu0 %v510_v62  ;;  %1986 = vmatprep.mubr.bf16.mxu1 %v659_v41  ;;  %v254_v62 = vld [vmem:[#allocation2 + $0x530] sm:$0xff]  ;;  %v574_v41 = vpack.c.bf16 %v294_v39, %v286_v38  ;;  %v583_v19 = vpack.c.bf16 %v311_v33, %v303_v32 }
 0x1dd   :  { %2352 = vmatprep.mubr.bf16.mxu0 %v519_v9  ;;  %v262_v9 = vld [vmem:[#allocation2 + $0x570] sm:$0xff] }
 0x1de   :  { %v558_v29 = vpack.c.bf16 %v262_v9, %v254_v62  ;;  %v590_v9 = vpack.c.bf16 %v326_v26, %v318_v57  ;;  %v350_v32 = vld [vmem:[#allocation2 + $0x830] sm:$0xff] }
 0x1df   :  { %v358_v33 = vld [vmem:[#allocation2 + $0x870] sm:$0xff] }
 0x1e0   :  { %v374_v57 = vld [vmem:[#allocation2 + $0x8f0] sm:$0xff] }
 0x1e3   :  { %1987 = vmatmul.mubr.bf16.gmra.mrb[92].mxu1 %v658_v45 }
 0x1e4   :  { %2353 = vmatmul.mubr.bf16.gmra.mrb[20].mxu0 %v518_v35  ;;  %v5489_v35 = vpop.f32.mrb[18].mxu1 }
 0x1e5   :  { %2362 = vmatprep.mubr.bf16.mxu0 %v527_v36  ;;  %v575_v36 = vpack.c.bf16 %v295_v30, %v287_v15  ;;  %v5491_v12 = vpop.f32.mrb[19].mxu1  ;;  %v351_v15 = vld [vmem:[#allocation2 + $0x838] sm:$0xff] }
 0x1e6   :  { %v5493_v16 = vpop.f32.mrb[20].mxu1  ;;  %v359_v30 = vld [vmem:[#allocation2 + $0x878] sm:$0xff] }
 0x1e7   :  { %v5497_v17 = vpop.f32.mrb[21].mxu1  ;;  %v607_v38 = vpack.c.bf16 %v359_v30, %v351_v15  ;;  %v382_v30 = vld [vmem:[#allocation2 + $0x930] sm:$0xff] }
 0x1e8   :  { %v5503_v42 = vpop.f32.mrb[22].mxu1 }
 0x1e9   :  { %v5507_v44 = vpop.f32.mrb[23].mxu1 }
 0x1ec   :  { %2363 = vmatmul.mubr.bf16.gmra.mrb[24].mxu0 %v526_v18  ;;  %v5500_v18 = vsub.s32 1, %v5495_v40 }
 0x1ed   :  { %2372 = vmatprep.mubr.bf16.mxu0 %v535_v0  ;;  %v3590_v0 = vsub.s32 3, %v5495_v40 }
 0x1ee   :  { %7114 = vst [vmem:[#allocation16_spill] sm:$0xff] %v5500_v18  ;;  %v422_v18 = vld [vmem:[#allocation2 + $0xa70] sm:$0xff] }
 0x1ef   :  { %v5512_v1 = vrot.slane %v5505_v34, %v3590_v0  ;;  %v367_v0 = vld [vmem:[#allocation2 + $0x8b8] sm:$0xff] }
 0x1f1   :  { %7116 = vst [vmem:[#allocation18_spill] sm:$0xff] %v5512_v1  ;;  %v414_v1 = vld [vmem:[#allocation2 + $0xa30] sm:$0xff] }
 0x1f4   :  { %2373 = vmatmul.mubr.bf16.gmra.mrb[28].mxu0 %v534_v48  ;;  %v310_v48 = vld [vmem:[#allocation2 + $0x6f0] sm:$0xff] }
 0x1f5   :  { %2382 = vmatprep.mubr.bf16.mxu0 %v543_v2  ;;  %v5514_v2 = vpop.f32.mrb[24].mxu1  ;;  %v582_v51 = vpack.c.bf16 %v310_v48, %v302_v20  ;;  %v606_v48 = vpack.c.bf16 %v358_v33, %v350_v32  ;;  %v399_v32 = vld [vmem:[#allocation2 + $0x9b8] sm:$0xff] }
 0x1f6   :  { %v5516_v23 = vpop.f32.mrb[25].mxu1  ;;  %v407_v33 = vld [vmem:[#allocation2 + $0x9f8] sm:$0xff] }
 0x1fc   :  { %2383 = vmatmul.mubr.bf16.gmra.mrb[32].mxu0 %v542_v53  ;;  %v5518_v53 = vpop.f32.mrb[26].mxu1 }
 0x1fd   :  { %2392 = vmatprep.mubr.bf16.mxu0 %v551_v5  ;;  %v591_v5 = vpack.c.bf16 %v327_v22, %v319_v50  ;;  %v5520_v6 = vpop.f32.mrb[27].mxu1 }
 0x1fe   :  { %v5522_v7 = vpop.f32.mrb[28].mxu1 }
 0x1ff   :  { %v5524_v62 = vpop.f32.mrb[29].mxu1 }
 0x200   :  { %v5526_v28 = vpop.f32.mrb[30].mxu1 }
 0x204   :  { %2393 = vmatmul.mubr.bf16.gmra.mrb[36].mxu0 %v550_v60  ;;  %v335_v60 = vld [vmem:[#allocation2 + $0x7b8] sm:$0xff] }
 0x205   :  { %2402 = vmatprep.mubr.bf16.mxu0 %v559_v61  ;;  %v343_v61 = vld [vmem:[#allocation2 + $0x7f8] sm:$0xff] }
 0x206   :  { %v599_v63 = vpack.c.bf16 %v343_v61, %v335_v60  ;;  %v383_v60 = vld [vmem:[#allocation2 + $0x938] sm:$0xff] }
 0x207   :  { %v391_v61 = vld [vmem:[#allocation2 + $0x978] sm:$0xff] }
 0x20c   :  { %2403 = vmatmul.mubr.bf16.gmra.mrb[40].mxu0 %v558_v29  ;;  %v5528_v29 = vpop.f32.mrb[31].mxu1 }
 0x20d   :  { %2412 = vmatprep.mubr.bf16.mxu0 %v567_v13  ;;  %v334_v13 = vld [vmem:[#allocation2 + $0x7b0] sm:$0xff]  ;;  %v5530_v14 = vpop.f32.mrb[32].mxu1 }
 0x214   :  { %2413 = vmatmul.mubr.bf16.gmra.mrb[44].mxu0 %v566_v31  ;;  %v5532_v31 = vpop.f32.mrb[33].mxu1 }
 0x215   :  { %2422 = vmatprep.mubr.bf16.mxu0 %v575_v36  ;;  %v598_v36 = vpack.c.bf16 %v342_v10, %v334_v13  ;;  %v5534_v37 = vpop.f32.mrb[34].mxu1  ;;  %v623_v10 = vpack.c.bf16 %v391_v61, %v383_v60  ;;  %v406_v60 = vld [vmem:[#allocation2 + $0x9f0] sm:$0xff]  ;;  %v415_v61 = vld [vmem:[#allocation2 + $0xa38] sm:$0xff] }
 0x216   :  { %v5536_v39 = vpop.f32.mrb[35].mxu1 }
 0x21c   :  { %2423 = vmatmul.mubr.bf16.gmra.mrb[48].mxu0 %v574_v41  ;;  %v5538_v41 = vpop.f32.mrb[36].mxu1 }
 0x21d   :  { %2432 = vmatprep.mubr.bf16.mxu0 %v583_v19  ;;  %v375_v19 = vld [vmem:[#allocation2 + $0x8f8] sm:$0xff]  ;;  %v5540_v20 = vpop.f32.mrb[37].mxu1 }
 0x21e   :  { %v5542_v50 = vpop.f32.mrb[38].mxu1  ;;  %v615_v22 = vpack.c.bf16 %v375_v19, %v367_v0 }
 0x224   :  { %2433 = vmatmul.mubr.bf16.gmra.mrb[52].mxu0 %v582_v51  ;;  %v5544_v51 = vpop.f32.mrb[39].mxu1 }
 0x225   :  { %2442 = vmatprep.mubr.bf16.mxu0 %v591_v5  ;;  %v366_v5 = vld [vmem:[#allocation2 + $0x8b0] sm:$0xff]  ;;  %v5546_v26 = vpop.f32.mrb[40].mxu1 }
 0x22c   :  { %2443 = vmatmul.mubr.bf16.gmra.mrb[56].mxu0 %v590_v9  ;;  %v5548_v9 = vpop.f32.mrb[41].mxu1 }
 0x22d   :  { %2452 = vmatprep.mubr.bf16.mxu0 %v599_v63  ;;  %v614_v63 = vpack.c.bf16 %v374_v57, %v366_v5  ;;  %v5550_v13 = vpop.f32.mrb[42].mxu1  ;;  %v398_v57 = vld [vmem:[#allocation2 + $0x9b0] sm:$0xff] }
 0x22e   :  { %v5552_v15 = vpop.f32.mrb[43].mxu1 }
 0x22f   :  { %7117 = vst [vmem:[#allocation19_spill] sm:$0xff] %v5552_v15 }
 0x234   :  { %2453 = vmatmul.mubr.bf16.gmra.mrb[60].mxu0 %v598_v36  ;;  %v390_v36 = vld [vmem:[#allocation2 + $0x970] sm:$0xff] }
 0x235   :  { %2462 = vmatprep.mubr.bf16.mxu0 %v607_v38  ;;  %v5554_v38 = vpop.f32.mrb[44].mxu1  ;;  %v622_v19 = vpack.c.bf16 %v390_v36, %v382_v30  ;;  %v638_v30 = vpack.c.bf16 %v422_v18, %v414_v1  ;;  %v462_v18 = vld [vmem:[#allocation2 + $0xbb0] sm:$0xff] }
 0x236   :  { %7118 = vst [vmem:[#allocation20_spill] sm:$0xff] %v5554_v38  ;;  %v5556_v0 = vpop.f32.mrb[45].mxu1  ;;  %v431_v38 = vld [vmem:[#allocation2 + $0xab8] sm:$0xff]  ;;  %v470_v1 = vld [vmem:[#allocation2 + $0xbf0] sm:$0xff] }
 0x237   :  { %7119 = vst [vmem:[#allocation21_spill] sm:$0xff] %v5556_v0  ;;  %v439_v0 = vld [vmem:[#allocation2 + $0xaf8] sm:$0xff] }
 0x238   :  { %v647_v36 = vpack.c.bf16 %v439_v0, %v431_v38 }
 0x23c   :  { %2463 = vmatmul.mubr.bf16.gmra.mrb[64].mxu0 %v606_v48  ;;  %v5558_v48 = vpop.f32.mrb[46].mxu1 }
 0x23d   :  { %2472 = vmatprep.mubr.bf16.mxu0 %v615_v22  ;;  %7120 = vst [vmem:[#allocation22_spill] sm:$0xff] %v5558_v48  ;;  %v631_v22 = vpack.c.bf16 %v407_v33, %v399_v32  ;;  %v5560_v5 = vpop.f32.mrb[47].mxu1  ;;  %v430_v32 = vld [vmem:[#allocation2 + $0xab0] sm:$0xff] }
 0x23e   :  { %7121 = vst [vmem:[#allocation23_spill] sm:$0xff] %v5560_v5  ;;  %v438_v33 = vld [vmem:[#allocation2 + $0xaf0] sm:$0xff] }
 0x23f   :  { %v646_v5 = vpack.c.bf16 %v438_v33, %v430_v32 }
 0x244   :  { %2473 = vmatmul.mubr.bf16.gmra.mrb[68].mxu0 %v614_v63  ;;  %v423_v63 = vld [vmem:[#allocation2 + $0xa78] sm:$0xff] }
 0x245   :  { %2482 = vmatprep.mubr.bf16.mxu0 %v623_v10  ;;  %v630_v10 = vpack.c.bf16 %v406_v60, %v398_v57  ;;  %v639_v45 = vpack.c.bf16 %v423_v63, %v415_v61  ;;  %v446_v57 = vld [vmem:[#allocation2 + $0xb30] sm:$0xff]  ;;  %v463_v61 = vld [vmem:[#allocation2 + $0xbb8] sm:$0xff] }
 0x246   :  { %v454_v60 = vld [vmem:[#allocation2 + $0xb70] sm:$0xff] }
 0x247   :  { %v654_v63 = vpack.c.bf16 %v454_v60, %v446_v57 }
 0x24c   :  { %2483 = vmatmul.mubr.bf16.gmra.mrb[72].mxu0 %v622_v19  ;;  %v447_v19 = vld [vmem:[#allocation2 + $0xb38] sm:$0xff] }
 0x24d   :  { %2492 = vmatprep.mubr.bf16.mxu0 %v631_v22  ;;  %v455_v22 = vld [vmem:[#allocation2 + $0xb78] sm:$0xff] }
 0x24e   :  { %v655_v48 = vpack.c.bf16 %v455_v22, %v447_v19 }
 0x254   :  { %2493 = vmatmul.mubr.bf16.gmra.mrb[76].mxu0 %v630_v10 }
 0x255   :  { %2502 = vmatprep.mubr.bf16.mxu0 %v639_v45  ;;  %v471_v45 = vld [vmem:[#allocation2 + $0xbf8] sm:$0xff] }
 0x256   :  { %v663_v10 = vpack.c.bf16 %v471_v45, %v463_v61  ;;  %v795_v61 = vsub.s32 0, %v5495_v40  ;;  %v799_v45 = vsub.s32 2, %v5495_v40 }
 0x25c   :  { %2503 = vmatmul.mubr.bf16.gmra.mrb[80].mxu0 %v638_v30 }
 0x25d   :  { %2512 = vmatprep.mubr.bf16.mxu0 %v647_v36 }
 0x25e   :  { %v5562_v15 = vpop.f32.mrb[48].mxu1 }
 0x25f   :  { %v5564_v38 = vpop.f32.mrb[49].mxu1 }
 0x260   :  { %v5566_v0 = vpop.f32.mrb[50].mxu1 }
 0x261   :  { %7122 = vst [vmem:[#allocation24_spill] sm:$0xff] %v5566_v0  ;;  %v5568_v30 = vpop.f32.mrb[51].mxu1 }
 0x262   :  { %7123 = vst [vmem:[#allocation25_spill] sm:$0xff] %v5568_v30 }
 0x264   :  { %2513 = vmatmul.mubr.bf16.gmra.mrb[84].mxu0 %v646_v5  ;;  %v662_v5 = vpack.c.bf16 %v470_v1, %v462_v18  ;;  %v796_v18 = vrot.slane %v5505_v34, %v795_v61 }
 0x265   :  { %2522 = vmatprep.mubr.bf16.mxu0 %v655_v48 }
 0x266   :  { %v5570_v48 = vpop.f32.mrb[52].mxu1 }
 0x267   :  { %7124 = vst [vmem:[#allocation26_spill] sm:$0xff] %v5570_v48  ;;  %v5572_v36 = vpop.f32.mrb[53].mxu1  ;;  %v2546_v48 = vld [vmem:[#allocation5 + $0x18] sm:$0xff] }
 0x268   :  { %7125 = vst [vmem:[#allocation27_spill] sm:$0xff] %v5572_v36  ;;  %v5574_v32 = vpop.f32.mrb[54].mxu1 }
 0x269   :  { %7126 = vst [vmem:[#allocation28_spill] sm:$0xff] %v5574_v32  ;;  %v5576_v33 = vpop.f32.mrb[55].mxu1 }
 0x26a   :  { %7127 = vst [vmem:[#allocation29_spill] sm:$0xff] %v5576_v33 }
 0x26c   :  { %2523 = vmatmul.mubr.bf16.gmra.mrb[88].mxu0 %v654_v63 }
 0x26d   :  { %2532 = vmatprep.mubr.bf16.mxu0 %v663_v10 }
 0x26e   :  { %v5578_v19 = vpop.f32.mrb[56].mxu1 }
 0x26f   :  { %7128 = vst [vmem:[#allocation30_spill] sm:$0xff] %v5578_v19  ;;  %v5580_v22 = vpop.f32.mrb[57].mxu1 }
 0x270   :  { %7129 = vst [vmem:[#allocation31_spill] sm:$0xff] %v5580_v22  ;;  %v5582_v57 = vpop.f32.mrb[58].mxu1  ;;  %v5598_v22 = vrot.slane %v796_v18, %v795_v61 }
 0x271   :  { %7130 = vst [vmem:[#allocation32_spill] sm:$0xff] %v5582_v57  ;;  %v5584_v60 = vpop.f32.mrb[59].mxu1 }
 0x272   :  { %7131 = vst [vmem:[#allocation33_spill] sm:$0xff] %v5584_v60  ;;  %v1486_v40 = vadd.f32 %v5453_v43, %v5598_v22 }
 0x274   :  { %2533 = vmatmul.mubr.bf16.gmra.mrb[92].mxu0 %v662_v5  ;;  %v800_v5 = vrot.slane %v5505_v34, %v799_v45  ;;  %v2543_v45 = vld [vmem:[#allocation5] sm:$0xff] }
 0x276   :  { %v5588_v63 = vpop.f32.mrb[60].mxu1  ;;  %v5600_v57 = vrot.slane %v800_v5, %v795_v61  ;;  %v1490_v61 = vadd.f32 %v5457_v47, %v5598_v22 }
 0x277   :  { %7132 = vst [vmem:[#allocation34_spill] sm:$0xff] %v5588_v63  ;;  %v5590_v10 = vpop.f32.mrb[61].mxu1 }
 0x278   :  { %7133 = vst [vmem:[#allocation35_spill] sm:$0xff] %v5590_v10  ;;  %v5593_v1 = vpop.f32.mrb[62].mxu1 }
 0x279   :  { %7134 = vst [vmem:[#allocation36_spill] sm:$0xff] %v5593_v1  ;;  %v5596_v19 = vpop.f32.mrb[63].mxu1  ;;  %v1488_v1 = vadd.f32 %v5455_v46, %v5600_v57 }
 0x27a   :  { %7135 = vst [vmem:[#allocation37_spill] sm:$0xff] %v5596_v19 }
 0x27e   :  { %v5602_v60 = vpop.f32.mrb[64].mxu1 }
 0x27f   :  { %7136 = vst [vmem:[#allocation38_spill] sm:$0xff] %v5602_v60  ;;  %v5604_v33 = vpop.f32.mrb[65].mxu1  ;;  %v2544_v60 = vld [vmem:[#allocation5 + $0x8] sm:$0xff] }
 0x280   :  { %7137 = vst [vmem:[#allocation39_spill] sm:$0xff] %v5604_v33  ;;  %v5608_v10 = vpop.f32.mrb[66].mxu1  ;;  %v1492_v33 = vadd.f32 %v5459_v21, %v5600_v57 }
 0x281   :  { %7138 = vst [vmem:[#allocation40_spill] sm:$0xff] %v5608_v10  ;;  %v5612_v34 = vpop.f32.mrb[67].mxu1  ;;  %v2545_v10 = vld [vmem:[#allocation5 + $0x10] sm:$0xff] }
 0x282   :  { %7139 = vst [vmem:[#allocation41_spill] sm:$0xff] %v5612_v34 }
 0x286   :  { %v5622_v34 = vpop.f32.mrb[68].mxu1 }
 0x28f   :  { %v2304_v63 = vpop.f32.mrb[0].mxu0 }
 0x290   :  { %v4343_v18 = vadd.f32 %v2304_v63, %v1486_v40  ;;  %v2306_v5 = vpop.f32.mrb[1].mxu0  ;;  %v1496_v40 = vadd.f32 %v5461_v49, %v5598_v22 }
 0x291   :  { %v4345_v19 = vadd.f32 %v2306_v5, %v1488_v1  ;;  %v2308_v43 = vpop.f32.mrb[2].mxu0  ;;  %v5630_v1 = vpop.f32.mrb[69].mxu1 }
 0x292   :  { %v4347_v32 = vadd.f32 %v2308_v43, %v1490_v61  ;;  %v2310_v36 = vpop.f32.mrb[3].mxu0  ;;  %v5618_v46 = vadd.f32 %v4343_v18, %v2543_v45  ;;  %v5634_v61 = vpop.f32.mrb[70].mxu1  ;;  %v1502_v45 = vadd.f32 %v5467_v4, %v5600_v57  ;;  %v2549_v43 = vld [vmem:[#allocation5 + $0x30] sm:$0xff] }
 0x293   :  { %v4349_v30 = vadd.f32 %v2310_v36, %v1492_v33  ;;  %v5620_v0 = vadd.f32 %v4345_v19, %v2544_v60  ;;  %v1498_v36 = vadd.f32 %v5463_v3, %v5600_v57  ;;  %v2547_v19 = vld [vmem:[#allocation5 + $0x20] sm:$0xff] }
 0x294   :  { %7140 = vst [vmem:[#allocation42_spill] sm:$0xff] %v5618_v46  ;;  %v5624_v47 = vadd.f32 %v4347_v32, %v2545_v10  ;;  %v5638_v32 = vpop.f32.mrb[71].mxu1  ;;  %v2548_v10 = vld [vmem:[#allocation5 + $0x28] sm:$0xff] }
 0x295   :  { %7141 = vst [vmem:[#allocation43_spill] sm:$0xff] %v5620_v0  ;;  %v5626_v63 = vadd.f32 %v4349_v30, %v2546_v48  ;;  %v2735_v21 = vadd.f32 %v5620_v0, %v5618_v46  ;;  %7144 = vst [vmem:[#allocation46_spill] sm:$0xff] %v5638_v32  ;;  %v1500_v30 = vadd.f32 %v5465_v52, %v5598_v22  ;;  %v2550_v0 = vld [vmem:[#allocation5 + $0x38] sm:$0xff] }
 0x296   :  { %7142 = vst [vmem:[#allocation44_spill] sm:$0xff] %v5624_v47 }
 0x297   :  { %7143 = vst [vmem:[#allocation45_spill] sm:$0xff] %v5626_v63  ;;  %v2314_v33 = vpop.f32.mrb[4].mxu0  ;;  %2736 = vadd.xlane.f32.xlu0 %v2735_v21  ;;  %v2738_v5 = vadd.f32 %v5626_v63, %v5624_v47  ;;  %v2554_v63 = vld [vmem:[#allocation5 + $0x58] sm:$0xff] }
 0x298   :  { %v4351_v48 = vadd.f32 %v2314_v33, %v1496_v40  ;;  %v2316_v60 = vpop.f32.mrb[5].mxu0  ;;  %v5650_v40 = vpop.f32.mrb[72].mxu1 }
 0x299   :  { %v4353_v49 = vadd.f32 %v2316_v60, %v1498_v36  ;;  %v2318_v18 = vpop.f32.mrb[6].mxu0  ;;  %v5658_v60 = vpop.f32.mrb[73].mxu1 }
 0x29a   :  { %v4355_v3 = vadd.f32 %v2318_v18, %v1500_v30  ;;  %v2320_v21 = vpop.f32.mrb[7].mxu0  ;;  %v5646_v46 = vadd.f32 %v4351_v48, %v2547_v19  ;;  %v1506_v30 = vadd.f32 %v5469_v54, %v5598_v22  ;;  %v5662_v19 = vpop.f32.mrb[74].mxu1  ;;  %v1508_v48 = vadd.f32 %v5471_v24, %v5600_v57 }
 0x29b   :  { %v4357_v32 = vadd.f32 %v2320_v21, %v1502_v45  ;;  %2739 = vadd.xlane.f32.xlu0 %v2738_v5  ;;  %v5648_v52 = vadd.f32 %v4353_v49, %v2548_v10  ;;  %v2551_v45 = vld [vmem:[#allocation5 + $0x40] sm:$0xff]  ;;  %v5666_v49 = vpop.f32.mrb[75].mxu1  ;;  %v2552_v5 = vld [vmem:[#allocation5 + $0x48] sm:$0xff]  ;;  %v2553_v21 = vld [vmem:[#allocation5 + $0x50] sm:$0xff] }
 0x29c   :  { %7145 = vst [vmem:[#allocation47_spill] sm:$0xff] %v5646_v46  ;;  %v5652_v33 = vadd.f32 %v4355_v3, %v2549_v43  ;;  %v1512_v3 = vadd.f32 %v5475_v25, %v5600_v57 }
 0x29d   :  { %7146 = vst [vmem:[#allocation48_spill] sm:$0xff] %v5648_v52  ;;  %v5654_v4 = vadd.f32 %v4357_v32, %v2550_v0  ;;  %v2741_v36 = vadd.f32 %v5648_v52, %v5646_v46  ;;  %v1510_v0 = vadd.f32 %v5473_v55, %v5598_v22 }
 0x29e   :  { %7147 = vst [vmem:[#allocation49_spill] sm:$0xff] %v5652_v33 }
 0x29f   :  { %7148 = vst [vmem:[#allocation50_spill] sm:$0xff] %v5654_v4  ;;  %v2324_v10 = vpop.f32.mrb[8].mxu0  ;;  %2742 = vadd.xlane.f32.xlu1 %v2741_v36  ;;  %v2744_v24 = vadd.f32 %v5654_v4, %v5652_v33 }
 0x2a0   :  { %v4359_v32 = vadd.f32 %v2324_v10, %v1506_v30  ;;  %v2326_v18 = vpop.f32.mrb[9].mxu0  ;;  %v5680_v10 = vpop.f32.mrb[76].mxu1 }
 0x2a1   :  { %v4361_v54 = vadd.f32 %v2326_v18, %v1508_v48  ;;  %v2328_v43 = vpop.f32.mrb[10].mxu0  ;;  %v5686_v18 = vpop.f32.mrb[77].mxu1 }
 0x2a2   :  { %v5674_v52 = vadd.f32 %v4359_v32, %v2551_v45  ;;  %v4363_v36 = vadd.f32 %v2328_v43, %v1510_v0  ;;  %v2330_v46 = vpop.f32.mrb[11].mxu0  ;;  %v1516_v45 = vadd.f32 %v5477_v56, %v5598_v22  ;;  %v5690_v0 = vpop.f32.mrb[78].mxu1  ;;  %v1522_v56 = vadd.f32 %v5483_v59, %v5600_v57 }
 0x2a3   :  { %v5676_v47 = vadd.f32 %v4361_v54, %v2552_v5  ;;  %v4365_v55 = vadd.f32 %v2330_v46, %v1512_v3  ;;  %2745 = vadd.xlane.f32.xlu1 %v2744_v24  ;;  %v1518_v46 = vadd.f32 %v5479_v58, %v5600_v57  ;;  %v2555_v5 = vld [vmem:[#allocation5 + $0x60] sm:$0xff]  ;;  %v5696_v3 = vpop.f32.mrb[79].mxu1  ;;  %v1520_v54 = vadd.f32 %v5481_v27, %v5598_v22  ;;  %v2556_v24 = vld [vmem:[#allocation5 + $0x68] sm:$0xff]  ;;  %v2557_v58 = vld [vmem:[#allocation5 + $0x70] sm:$0xff] }
 0x2a4   :  { %7149 = vst [vmem:[#allocation51_spill] sm:$0xff] %v5674_v52  ;;  %v5678_v30 = vadd.f32 %v4363_v36, %v2553_v21  ;;  %v5708_v27 = vpop.f32.mrb[80].mxu1 }
 0x2a5   :  { %7150 = vst [vmem:[#allocation52_spill] sm:$0xff] %v5676_v47  ;;  %v5682_v25 = vadd.f32 %v4365_v55, %v2554_v63  ;;  %v2747_v48 = vadd.f32 %v5676_v47, %v5674_v52 }
 0x2a6   :  { %7151 = vst [vmem:[#allocation53_spill] sm:$0xff] %v5678_v30 }
 0x2a7   :  { %7152 = vst [vmem:[#allocation54_spill] sm:$0xff] %v5682_v25  ;;  %v2334_v32 = vpop.f32.mrb[12].mxu0  ;;  %2748 = vadd.xlane.f32.xlu0 %v2747_v48  ;;  %v2750_v63 = vadd.f32 %v5682_v25, %v5678_v30  ;;  %v2558_v25 = vld [vmem:[#allocation5 + $0x78] sm:$0xff] }
 0x2a8   :  { %v4367_v43 = vadd.f32 %v2334_v32, %v1516_v45  ;;  %v2336_v21 = vpop.f32.mrb[13].mxu0  ;;  %v1526_v32 = vadd.f32 %v5485_v8, %v5598_v22  ;;  %v1532_v8 = vadd.f32 %v5491_v12, %v5600_v57 }
 0x2a9   :  { %v4369_v36 = vadd.f32 %v2336_v21, %v1518_v46  ;;  %v2338_v55 = vpop.f32.mrb[14].mxu0  ;;  %2751 = vadd.xlane.f32.xlu1 %v2750_v63  ;;  %v5714_v46 = vpop.f32.mrb[81].mxu1  ;;  %v1528_v63 = vadd.f32 %v5487_v11, %v5600_v57  ;;  %v2561_v11 = vld [vmem:[#allocation5 + $0x90] sm:$0xff] }
 0x2aa   :  { %v5702_v47 = vadd.f32 %v4367_v43, %v2555_v5  ;;  %v4371_v48 = vadd.f32 %v2338_v55, %v1520_v54  ;;  %v2340_v52 = vpop.f32.mrb[15].mxu0  ;;  %v5718_v5 = vpop.f32.mrb[82].mxu1  ;;  %v2559_v54 = vld [vmem:[#allocation5 + $0x80] sm:$0xff]  ;;  %v1530_v43 = vadd.f32 %v5489_v35, %v5598_v22 }
 0x2ab   :  { %v5704_v30 = vadd.f32 %v4369_v36, %v2556_v24  ;;  %v4373_v4 = vadd.f32 %v2340_v52, %v1522_v56  ;;  %v2560_v56 = vld [vmem:[#allocation5 + $0x88] sm:$0xff] }
 0x2ac   :  { %7153 = vst [vmem:[#allocation55_spill] sm:$0xff] %v5702_v47  ;;  %v5706_v33 = vadd.f32 %v4371_v48, %v2557_v58 }
 0x2ad   :  { %7154 = vst [vmem:[#allocation56_spill] sm:$0xff] %v5704_v30  ;;  %v5710_v45 = vadd.f32 %v4373_v4, %v2558_v25  ;;  %v2753_v59 = vadd.f32 %v5704_v30, %v5702_v47  ;;  %v5724_v25 = vpop.f32.mrb[83].mxu1 }
 0x2ae   :  { %7155 = vst [vmem:[#allocation57_spill] sm:$0xff] %v5706_v33  ;;  %v5736_v35 = vpop.f32.mrb[84].mxu1 }
 0x2af   :  { %7156 = vst [vmem:[#allocation58_spill] sm:$0xff] %v5710_v45  ;;  %v2344_v52 = vpop.f32.mrb[16].mxu0  ;;  %2754 = vadd.xlane.f32.xlu0 %v2753_v59  ;;  %v2756_v4 = vadd.f32 %v5710_v45, %v5706_v33  ;;  %v2562_v45 = vld [vmem:[#allocation5 + $0x98] sm:$0xff] }
 0x2b0   :  { %v4375_v21 = vadd.f32 %v2344_v52, %v1526_v32  ;;  %v2346_v24 = vpop.f32.mrb[17].mxu0  ;;  %v1536_v52 = vadd.f32 %v5493_v16, %v5598_v22  ;;  %v1542_v16 = vadd.f32 %v5507_v44, %v5600_v57 }
 0x2b1   :  { %v4377_v36 = vadd.f32 %v2346_v24, %v1528_v63  ;;  %v2348_v55 = vpop.f32.mrb[18].mxu0  ;;  %2757 = vadd.xlane.f32.xlu1 %v2756_v4  ;;  %v5742_v63 = vpop.f32.mrb[85].mxu1  ;;  %v1538_v4 = vadd.f32 %v5497_v17, %v5600_v57  ;;  %v1540_v24 = vadd.f32 %v5503_v42, %v5598_v22  ;;  %v2565_v17 = vld [vmem:[#allocation5 + $0xb0] sm:$0xff] }
 0x2b2   :  { %v5730_v58 = vadd.f32 %v4375_v21, %v2559_v54  ;;  %v4379_v48 = vadd.f32 %v2348_v55, %v1530_v43  ;;  %v2350_v59 = vpop.f32.mrb[19].mxu0  ;;  %v5746_v54 = vpop.f32.mrb[86].mxu1  ;;  %v2563_v21 = vld [vmem:[#allocation5 + $0xa0] sm:$0xff] }
 0x2b3   :  { %v5732_v33 = vadd.f32 %v4377_v36, %v2560_v56  ;;  %v4381_v30 = vadd.f32 %v2350_v59, %v1532_v8  ;;  %v2564_v36 = vld [vmem:[#allocation5 + $0xa8] sm:$0xff] }
 0x2b4   :  { %7157 = vst [vmem:[#allocation59_spill] sm:$0xff] %v5730_v58  ;;  %v5734_v47 = vadd.f32 %v4379_v48, %v2561_v11 }
 0x2b5   :  { %7158 = vst [vmem:[#allocation60_spill] sm:$0xff] %v5732_v33  ;;  %v5738_v32 = vadd.f32 %v4381_v30, %v2562_v45  ;;  %v2759_v12 = vadd.f32 %v5732_v33, %v5730_v58  ;;  %v5752_v45 = vpop.f32.mrb[87].mxu1 }
 0x2b6   :  { %7159 = vst [vmem:[#allocation61_spill] sm:$0xff] %v5734_v47  ;;  %v5764_v42 = vpop.f32.mrb[88].mxu1 }
 0x2b7   :  { %7160 = vst [vmem:[#allocation62_spill] sm:$0xff] %v5738_v32  ;;  %v2354_v43 = vpop.f32.mrb[20].mxu0  ;;  %2760 = vadd.xlane.f32.xlu0 %v2759_v12  ;;  %v2762_v30 = vadd.f32 %v5738_v32, %v5734_v47  ;;  %v2566_v32 = vld [vmem:[#allocation5 + $0xb8] sm:$0xff] }
 0x2b8   :  { %v4383_v56 = vadd.f32 %v2354_v43, %v1536_v52  ;;  %v2356_v8 = vpop.f32.mrb[21].mxu0  ;;  %v1546_v43 = vadd.f32 %v5514_v2, %v5598_v22  ;;  %v1552_v2 = vadd.f32 %v5520_v6, %v5600_v57 }
 0x2b9   :  { %v4385_v55 = vadd.f32 %v2356_v8, %v1538_v4  ;;  %v2358_v11 = vpop.f32.mrb[22].mxu0  ;;  %2763 = vadd.xlane.f32.xlu1 %v2762_v30  ;;  %v5770_v4 = vpop.f32.mrb[89].mxu1  ;;  %v1548_v30 = vadd.f32 %v5516_v23, %v5600_v57  ;;  %v1550_v8 = vadd.f32 %v5518_v53, %v5598_v22  ;;  %v2569_v23 = vld [vmem:[#allocation5 + $0xd0] sm:$0xff] }
 0x2ba   :  { %v5758_v48 = vadd.f32 %v4383_v56, %v2563_v21  ;;  %v4387_v59 = vadd.f32 %v2358_v11, %v1540_v24  ;;  %v2360_v12 = vpop.f32.mrb[23].mxu0  ;;  %v5774_v21 = vpop.f32.mrb[90].mxu1  ;;  %v2567_v56 = vld [vmem:[#allocation5 + $0xc0] sm:$0xff] }
 0x2bb   :  { %v5760_v47 = vadd.f32 %v4385_v55, %v2564_v36  ;;  %v4389_v33 = vadd.f32 %v2360_v12, %v1542_v16  ;;  %v2568_v55 = vld [vmem:[#allocation5 + $0xc8] sm:$0xff] }
 0x2bc   :  { %7161 = vst [vmem:[#allocation63_spill] sm:$0xff] %v5758_v48  ;;  %v5762_v58 = vadd.f32 %v4387_v59, %v2565_v17 }
 0x2bd   :  { %7162 = vst [vmem:[#allocation64_spill] sm:$0xff] %v5760_v47  ;;  %v5766_v52 = vadd.f32 %v4389_v33, %v2566_v32  ;;  %v2765_v44 = vadd.f32 %v5760_v47, %v5758_v48  ;;  %v5780_v32 = vpop.f32.mrb[91].mxu1 }
 0x2be   :  { %7163 = vst [vmem:[#allocation65_spill] sm:$0xff] %v5762_v58  ;;  %v5792_v53 = vpop.f32.mrb[92].mxu1 }
 0x2bf   :  { %7164 = vst [vmem:[#allocation66_spill] sm:$0xff] %v5766_v52  ;;  %v2364_v24 = vpop.f32.mrb[24].mxu0  ;;  %2766 = vadd.xlane.f32.xlu0 %v2765_v44  ;;  %v2768_v33 = vadd.f32 %v5766_v52, %v5762_v58  ;;  %v2570_v52 = vld [vmem:[#allocation5 + $0xd8] sm:$0xff] }
 0x2c0   :  { %v4391_v36 = vadd.f32 %v2364_v24, %v1546_v43  ;;  %v2366_v16 = vpop.f32.mrb[25].mxu0  ;;  %v1556_v24 = vadd.f32 %v5522_v7, %v5598_v22  ;;  %v1562_v7 = vadd.f32 %v5528_v29, %v5600_v57  ;;  %v1566_v29 = vadd.f32 %v5530_v14, %v5598_v22 }
 0x2c1   :  { %v4393_v11 = vadd.f32 %v2366_v16, %v1548_v30  ;;  %v2368_v17 = vpop.f32.mrb[26].mxu0  ;;  %2769 = vadd.xlane.f32.xlu1 %v2768_v33  ;;  %v5798_v30 = vpop.f32.mrb[93].mxu1  ;;  %v1558_v33 = vadd.f32 %v5524_v62, %v5600_v57  ;;  %v1560_v16 = vadd.f32 %v5526_v28, %v5598_v22  ;;  %v2573_v62 = vld [vmem:[#allocation5 + $0xf0] sm:$0xff] }
 0x2c2   :  { %v5786_v59 = vadd.f32 %v4391_v36, %v2567_v56  ;;  %v4395_v12 = vadd.f32 %v2368_v17, %v1550_v8  ;;  %v2370_v44 = vpop.f32.mrb[27].mxu0  ;;  %v5802_v56 = vpop.f32.mrb[94].mxu1  ;;  %v2571_v36 = vld [vmem:[#allocation5 + $0xe0] sm:$0xff] }
 0x2c3   :  { %v5788_v58 = vadd.f32 %v4393_v11, %v2568_v55  ;;  %v4397_v47 = vadd.f32 %v2370_v44, %v1552_v2  ;;  %v2572_v11 = vld [vmem:[#allocation5 + $0xe8] sm:$0xff] }
 0x2c4   :  { %7165 = vst [vmem:[#allocation67_spill] sm:$0xff] %v5786_v59  ;;  %v5790_v48 = vadd.f32 %v4395_v12, %v2569_v23 }
 0x2c5   :  { %7166 = vst [vmem:[#allocation68_spill] sm:$0xff] %v5788_v58  ;;  %v5794_v43 = vadd.f32 %v4397_v47, %v2570_v52  ;;  %v2771_v6 = vadd.f32 %v5788_v58, %v5786_v59  ;;  %v5808_v52 = vpop.f32.mrb[95].mxu1 }
 0x2c6   :  { %7167 = vst [vmem:[#allocation69_spill] sm:$0xff] %v5790_v48 }
 0x2c7   :  { %7168 = vst [vmem:[#allocation70_spill] sm:$0xff] %v5794_v43  ;;  %v2374_v8 = vpop.f32.mrb[28].mxu0  ;;  %2772 = vadd.xlane.f32.xlu0 %v2771_v6  ;;  %v2774_v47 = vadd.f32 %v5794_v43, %v5790_v48  ;;  %v2574_v43 = vld [vmem:[#allocation5 + $0xf8] sm:$0xff] }
 0x2c8   :  { %v4399_v55 = vadd.f32 %v2374_v8, %v1556_v24  ;;  %v2376_v2 = vpop.f32.mrb[29].mxu0 }
 0x2c9   :  { %v4401_v17 = vadd.f32 %v2376_v2, %v1558_v33  ;;  %v2378_v23 = vpop.f32.mrb[30].mxu0  ;;  %2775 = vadd.xlane.f32.xlu1 %v2774_v47  ;;  %v1568_v33 = vadd.f32 %v5532_v31, %v5600_v57  ;;  %v1572_v2 = vadd.f32 %v5536_v39, %v5600_v57  ;;  %v1576_v39 = vadd.f32 %v5538_v41, %v5598_v22 }
 0x2ca   :  { %v5814_v12 = vadd.f32 %v4399_v55, %v2571_v36  ;;  %v4403_v44 = vadd.f32 %v2378_v23, %v1560_v16  ;;  %v2380_v6 = vpop.f32.mrb[31].mxu0  ;;  %v2575_v36 = vld [vmem:[#allocation5 + $0x100] sm:$0xff]  ;;  %v1570_v16 = vadd.f32 %v5534_v37, %v5598_v22  ;;  %v2576_v55 = vld [vmem:[#allocation5 + $0x108] sm:$0xff] }
 0x2cb   :  { %v5816_v48 = vadd.f32 %v4401_v17, %v2572_v11  ;;  %v4405_v58 = vadd.f32 %v2380_v6, %v1562_v7  ;;  %v2577_v7 = vld [vmem:[#allocation5 + $0x110] sm:$0xff] }
 0x2cc   :  { %7169 = vst [vmem:[#allocation71_spill] sm:$0xff] %v5814_v12  ;;  %v5818_v59 = vadd.f32 %v4403_v44, %v2573_v62  ;;  %v2578_v62 = vld [vmem:[#allocation5 + $0x118] sm:$0xff] }
 0x2cd   :  { %7170 = vst [vmem:[#allocation72_spill] sm:$0xff] %v5816_v48  ;;  %v5820_v28 = vadd.f32 %v4405_v58, %v2574_v43  ;;  %v2777_v24 = vadd.f32 %v5816_v48, %v5814_v12  ;;  %v7208_v12 = vld [vmem:[#allocation39_spill] sm:$0xff] }
 0x2ce   :  { %7171 = vst [vmem:[#allocation73_spill] sm:$0xff] %v5818_v59 }
 0x2cf   :  { %7172 = vst [vmem:[#allocation74_spill] sm:$0xff] %v5820_v28  ;;  %v2384_v8 = vpop.f32.mrb[32].mxu0  ;;  %2778 = vadd.xlane.f32.xlu0 %v2777_v24  ;;  %v2780_v47 = vadd.f32 %v5820_v28, %v5818_v59  ;;  %v4938_v59 = vld [vmem:[#allocation8 + $0x24] ss:$8 sps:$4 sm:$0xff]  }
 0x2d0   :  { %v4407_v58 = vadd.f32 %v2384_v8, %v1566_v29  ;;  %v2386_v43 = vpop.f32.mrb[33].mxu0 }
 0x2d1   :  { %v4409_v11 = vadd.f32 %v2386_v43, %v1568_v33  ;;  %v2388_v14 = vpop.f32.mrb[34].mxu0  ;;  %2781 = vadd.xlane.f32.xlu1 %v2780_v47  ;;  %v1578_v33 = vadd.f32 %v5540_v20, %v5600_v57 }
 0x2d2   :  { %v5834_v31 = vadd.f32 %v4407_v58, %v2575_v36  ;;  %v4411_v17 = vadd.f32 %v2388_v14, %v1570_v16  ;;  %v2390_v23 = vpop.f32.mrb[35].mxu0  ;;  %v2579_v36 = vld [vmem:[#allocation5 + $0x120] sm:$0xff]  ;;  %v1580_v16 = vadd.f32 %v5542_v50, %v5598_v22  ;;  %v2581_v14 = vld [vmem:[#allocation5 + $0x130] sm:$0xff] }
 0x2d3   :  { %v5836_v44 = vadd.f32 %v4409_v11, %v2576_v55  ;;  %v4413_v6 = vadd.f32 %v2390_v23, %v1572_v2  ;;  %v2580_v55 = vld [vmem:[#allocation5 + $0x128] sm:$0xff]  ;;  %v1582_v2 = vadd.f32 %v5544_v51, %v5600_v57  ;;  %v2582_v23 = vld [vmem:[#allocation5 + $0x138] sm:$0xff]  ;;  %v1586_v51 = vadd.f32 %v5546_v26, %v5598_v22 }
 0x2d4   :  { %7173 = vst [vmem:[#allocation75_spill] sm:$0xff] %v5834_v31  ;;  %v5838_v24 = vadd.f32 %v4411_v17, %v2577_v7 }
 0x2d5   :  { %7174 = vst [vmem:[#allocation76_spill] sm:$0xff] %v5836_v44  ;;  %v5840_v37 = vadd.f32 %v4413_v6, %v2578_v62  ;;  %v2783_v29 = vadd.f32 %v5836_v44, %v5834_v31 }
 0x2d6   :  { %7175 = vst [vmem:[#allocation77_spill] sm:$0xff] %v5838_v24 }
 0x2d7   :  { %7176 = vst [vmem:[#allocation78_spill] sm:$0xff] %v5840_v37  ;;  %v2394_v8 = vpop.f32.mrb[36].mxu0  ;;  %2784 = vadd.xlane.f32.xlu0 %v2783_v29  ;;  %v2786_v47 = vadd.f32 %v5840_v37, %v5838_v24  ;;  %v4930_v37 = vld [vmem:[#allocation8] ss:$8 sps:$4 sm:$0xff]   ;;  %v7200_v24 = vld [vmem:[#allocation34_spill] sm:$0xff] }
 0x2d8   :  { %v4415_v58 = vadd.f32 %v2394_v8, %v1576_v39  ;;  %v2396_v43 = vpop.f32.mrb[37].mxu0  ;;  %v4462_v44 = vadd.f32 %v7200_v24, %v5598_v22 }
 0x2d9   :  { %v4417_v11 = vadd.f32 %v2396_v43, %v1578_v33  ;;  %v2398_v41 = vpop.f32.mrb[38].mxu0  ;;  %2787 = vadd.xlane.f32.xlu1 %v2786_v47  ;;  %v1588_v33 = vadd.f32 %v5548_v9, %v5600_v57 }
 0x2da   :  { %v5854_v20 = vadd.f32 %v4415_v58, %v2579_v36  ;;  %v4419_v7 = vadd.f32 %v2398_v41, %v1580_v16  ;;  %v2400_v17 = vpop.f32.mrb[39].mxu0  ;;  %v2583_v36 = vld [vmem:[#allocation5 + $0x140] sm:$0xff]  ;;  %v1590_v16 = vadd.f32 %v5550_v13, %v5598_v22 }
 0x2db   :  { %v5856_v62 = vadd.f32 %v4417_v11, %v2580_v55  ;;  %v4421_v6 = vadd.f32 %v2400_v17, %v1582_v2  ;;  %v2584_v55 = vld [vmem:[#allocation5 + $0x148] sm:$0xff]  ;;  %v7181_v2 = vld [vmem:[#allocation19_spill] sm:$0xff] }
 0x2dc   :  { %7177 = vst [vmem:[#allocation79_spill] sm:$0xff] %v5854_v20  ;;  %v5858_v29 = vadd.f32 %v4419_v7, %v2581_v14  ;;  %v1592_v11 = vadd.f32 %v7181_v2, %v5600_v57  ;;  %v2585_v14 = vld [vmem:[#allocation5 + $0x150] sm:$0xff] }
 0x2dd   :  { %7178 = vst [vmem:[#allocation80_spill] sm:$0xff] %v5856_v62  ;;  %v5860_v50 = vadd.f32 %v4421_v6, %v2582_v23  ;;  %v2789_v39 = vadd.f32 %v5856_v62, %v5854_v20  ;;  %v2586_v23 = vld [vmem:[#allocation5 + $0x158] sm:$0xff] }
 0x2de   :  { %7179 = vst [vmem:[#allocation81_spill] sm:$0xff] %v5858_v29 }
 0x2df   :  { %7180 = vst [vmem:[#allocation82_spill] sm:$0xff] %v5860_v50  ;;  %v2404_v8 = vpop.f32.mrb[40].mxu0  ;;  %2790 = vadd.xlane.f32.xlu0 %v2789_v39  ;;  %v2792_v47 = vadd.f32 %v5860_v50, %v5858_v29  ;;  %v7197_v29 = vld [vmem:[#allocation31_spill] sm:$0xff] }
 0x2e0   :  { %v4423_v58 = vadd.f32 %v2404_v8, %v1586_v51  ;;  %v2406_v43 = vpop.f32.mrb[41].mxu0 }
 0x2e1   :  { %v4425_v41 = vadd.f32 %v2406_v43, %v1588_v33  ;;  %v2408_v26 = vpop.f32.mrb[42].mxu0  ;;  %2793 = vadd.xlane.f32.xlu1 %v2792_v47  ;;  %v7186_v33 = vld [vmem:[#allocation20_spill] sm:$0xff]  ;;  %v7187_v47 = vld [vmem:[#allocation21_spill] sm:$0xff]  ;;  %v7188_v43 = vld [vmem:[#allocation22_spill] sm:$0xff] }
 0x2e2   :  { %v5874_v9 = vadd.f32 %v4423_v58, %v2583_v36  ;;  %v4427_v7 = vadd.f32 %v2408_v26, %v1590_v16  ;;  %v2410_v17 = vpop.f32.mrb[43].mxu0  ;;  %v1596_v8 = vadd.f32 %v7186_v33, %v5598_v22  ;;  %v1598_v36 = vadd.f32 %v7187_v47, %v5600_v57  ;;  %v7190_v47 = vld [vmem:[#allocation24_spill] sm:$0xff] }
 0x2e3   :  { %v5876_v6 = vadd.f32 %v4425_v41, %v2584_v55  ;;  %v4429_v39 = vadd.f32 %v2410_v17, %v1592_v11  ;;  %v1600_v55 = vadd.f32 %v7188_v43, %v5598_v22  ;;  %v7189_v41 = vld [vmem:[#allocation23_spill] sm:$0xff]  ;;  %v4440_v33 = vadd.f32 %v5564_v38, %v5600_v57  ;;  %v7192_v38 = vld [vmem:[#allocation26_spill] sm:$0xff] }
 0x2e4   :  { %7182 = vst [vmem:[#allocation19_spill] sm:$0xff] %v5874_v9  ;;  %v5878_v50 = vadd.f32 %v4427_v7, %v2585_v14  ;;  %v1602_v26 = vadd.f32 %v7189_v41, %v5600_v57 }
 0x2e5   :  { %7183 = vst [vmem:[#allocation83_spill] sm:$0xff] %v5876_v6  ;;  %v5880_v13 = vadd.f32 %v4429_v39, %v2586_v23  ;;  %v2795_v51 = vadd.f32 %v5876_v6, %v5874_v9 }
 0x2e6   :  { %7184 = vst [vmem:[#allocation84_spill] sm:$0xff] %v5878_v50 }
 0x2e7   :  { %7185 = vst [vmem:[#allocation85_spill] sm:$0xff] %v5880_v13  ;;  %v2414_v58 = vpop.f32.mrb[44].mxu0  ;;  %2796 = vadd.xlane.f32.xlu0 %v2795_v51  ;;  %v2798_v16 = vadd.f32 %v5880_v13, %v5878_v50  ;;  %v4438_v51 = vadd.f32 %v5562_v15, %v5598_v22  ;;  %v7193_v13 = vld [vmem:[#allocation27_spill] sm:$0xff] }
 0x2e8   :  { %v5892_v2 = vadd.f32 %v2414_v58, %v1596_v8  ;;  %v2416_v11 = vpop.f32.mrb[45].mxu0  ;;  %v4442_v58 = vadd.f32 %v7190_v47, %v5598_v22  ;;  %v4448_v47 = vadd.f32 %v7193_v13, %v5600_v57  ;;  %v7196_v13 = vld [vmem:[#allocation30_spill] sm:$0xff] }
 0x2e9   :  { %v5896_v14 = vadd.f32 %v2416_v11, %v1598_v36  ;;  %v2418_v7 = vpop.f32.mrb[46].mxu0  ;;  %2799 = vadd.xlane.f32.xlu1 %v2798_v16  ;;  %v7191_v16 = vld [vmem:[#allocation25_spill] sm:$0xff]  ;;  %v4454_v9 = vadd.f32 %v7196_v13, %v5598_v22 }
 0x2ea   :  { %v5898_v17 = vadd.f32 %v2418_v7, %v1600_v55  ;;  %v2420_v23 = vpop.f32.mrb[47].mxu0  ;;  %v4444_v55 = vadd.f32 %v7191_v16, %v5600_v57 }
 0x2eb   :  { %v5900_v39 = vadd.f32 %v2420_v23, %v1602_v26  ;;  %v4446_v23 = vadd.f32 %v7192_v38, %v5598_v22 }
 0x2ef   :  { %v2424_v8 = vpop.f32.mrb[48].mxu0 }
 0x2f0   :  { %v5908_v43 = vadd.f32 %v4438_v51, %v2424_v8  ;;  %v2426_v36 = vpop.f32.mrb[49].mxu0  ;;  %v7194_v8 = vld [vmem:[#allocation28_spill] sm:$0xff] }
 0x2f1   :  { %v5912_v11 = vadd.f32 %v4440_v33, %v2426_v36  ;;  %v2428_v41 = vpop.f32.mrb[50].mxu0  ;;  %v4450_v50 = vadd.f32 %v7194_v8, %v5598_v22  ;;  %v7195_v36 = vld [vmem:[#allocation29_spill] sm:$0xff]  ;;  %v4456_v8 = vadd.f32 %v7197_v29, %v5600_v57 }
 0x2f2   :  { %v5914_v26 = vadd.f32 %v4442_v58, %v2428_v41  ;;  %v2430_v7 = vpop.f32.mrb[51].mxu0  ;;  %v4452_v58 = vadd.f32 %v7195_v36, %v5600_v57  ;;  %v4932_v29 = vld [vmem:[#allocation8 + $0x4] ss:$8 sps:$4 sm:$0xff]  }
 0x2f3   :  { %v5916_v15 = vadd.f32 %v4444_v55, %v2430_v7  ;;  %3762 = vmatprep.subr.bf16.mxu1 %v4932_v29 }
 0x2f4   :  { %3763 = vmatpush1.bf16.msra.mxu1 %v4930_v37 }
 0x2f7   :  { %v2434_v51 = vpop.f32.mrb[52].mxu0 }
 0x2f8   :  { %v5924_v6 = vadd.f32 %v4446_v23, %v2434_v51  ;;  %v2436_v33 = vpop.f32.mrb[53].mxu0  ;;  %v7198_v51 = vld [vmem:[#allocation32_spill] sm:$0xff] }
 0x2f9   :  { %v5928_v16 = vadd.f32 %v4448_v47, %v2436_v33  ;;  %v2438_v55 = vpop.f32.mrb[54].mxu0  ;;  %v4458_v62 = vadd.f32 %v7198_v51, %v5598_v22  ;;  %v7199_v33 = vld [vmem:[#allocation33_spill] sm:$0xff]  ;;  %v4935_v51 = vld [vmem:[#allocation8 + $0x14] ss:$8 sps:$4 sm:$0xff]  }
 0x2fa   :  { %v5930_v41 = vadd.f32 %v4450_v50, %v2438_v55  ;;  %v2440_v7 = vpop.f32.mrb[55].mxu0  ;;  %v4460_v50 = vadd.f32 %v7199_v33, %v5600_v57  ;;  %3764 = vmatprep.subr.bf16.mxu1 %v4935_v51 }
 0x2fb   :  { %v5932_v38 = vadd.f32 %v4452_v58, %v2440_v7 }
 0x2ff   :  { %v2444_v23 = vpop.f32.mrb[56].mxu0 }
 0x300   :  { %v5940_v20 = vadd.f32 %v4454_v9, %v2444_v23  ;;  %v2446_v47 = vpop.f32.mrb[57].mxu0  ;;  %v7201_v9 = vld [vmem:[#allocation35_spill] sm:$0xff] }
 0x301   :  { %v5944_v36 = vadd.f32 %v4456_v8, %v2446_v47  ;;  %v2448_v58 = vpop.f32.mrb[58].mxu0  ;;  %v4464_v23 = vadd.f32 %v7201_v9, %v5600_v57  ;;  %v7202_v8 = vld [vmem:[#allocation36_spill] sm:$0xff] }
 0x302   :  { %v5946_v55 = vadd.f32 %v4458_v62, %v2448_v58  ;;  %v2450_v7 = vpop.f32.mrb[59].mxu0  ;;  %v4466_v47 = vadd.f32 %v7202_v8, %v5598_v22  ;;  %v7203_v58 = vld [vmem:[#allocation37_spill] sm:$0xff]  ;;  %v4936_v8 = vld [vmem:[#allocation8 + $0x20] ss:$8 sps:$4 sm:$0xff]  }
 0x303   :  { %v5948_v13 = vadd.f32 %v4460_v50, %v2450_v7  ;;  %v4933_v50 = vld [vmem:[#allocation8 + $0x10] ss:$8 sps:$4 sm:$0xff]   ;;  %v4468_v7 = vadd.f32 %v7203_v58, %v5600_v57  ;;  %v4472_v58 = vadd.f32 %v7208_v12, %v5600_v57 }
 0x304   :  { %3765 = vmatpush1.bf16.msra.mxu1 %v4933_v50  ;;  %v7210_v50 = vld [vmem:[#allocation41_spill] sm:$0xff] }
 0x305   :  { %3766 = vmatprep.subr.bf16.mxu1 %v4938_v59 }
 0x307   :  { %v2454_v31 = vpop.f32.mrb[60].mxu0 }
 0x308   :  { %v5956_v33 = vadd.f32 %v4462_v44, %v2454_v31  ;;  %v2456_v62 = vpop.f32.mrb[61].mxu0  ;;  %v4941_v31 = vld [vmem:[#allocation8 + $0x34] ss:$8 sps:$4 sm:$0xff]   ;;  %3767 = vmatpush1.bf16.msra.mxu1 %v4936_v8  ;;  %v4478_v8 = vadd.f32 %v5622_v34, %v5598_v22  ;;  %v4950_v34 = vld [vmem:[#allocation8 + $0x64] ss:$8 sps:$4 sm:$0xff]  }
 0x309   :  { %v5960_v28 = vadd.f32 %v4464_v23, %v2456_v62  ;;  %v2458_v24 = vpop.f32.mrb[62].mxu0  ;;  %v7207_v44 = vld [vmem:[#allocation38_spill] sm:$0xff]  ;;  %v7209_v62 = vld [vmem:[#allocation40_spill] sm:$0xff]  ;;  %3768 = vmatprep.subr.bf16.mxu1 %v4941_v31  ;;  %v4482_v31 = vadd.f32 %v5634_v61, %v5598_v22 }
 0x30a   :  { %v5962_v48 = vadd.f32 %v4466_v47, %v2458_v24  ;;  %v2460_v9 = vpop.f32.mrb[63].mxu0  ;;  %v4470_v37 = vadd.f32 %v7207_v44, %v5598_v22  ;;  %v4474_v51 = vadd.f32 %v7209_v62, %v5598_v22  ;;  %v4476_v24 = vadd.f32 %v7210_v50, %v5600_v57  ;;  %v4944_v44 = vld [vmem:[#allocation8 + $0x44] ss:$8 sps:$4 sm:$0xff]   ;;  %v4942_v62 = vld [vmem:[#allocation8 + $0x40] ss:$8 sps:$4 sm:$0xff]  }
 0x30b   :  { %7204 = vst [vmem:[#allocation20_spill] sm:$0xff] %v5960_v28  ;;  %v5964_v29 = vadd.f32 %v4468_v7, %v2460_v9  ;;  %v4939_v7 = vld [vmem:[#allocation8 + $0x30] ss:$8 sps:$4 sm:$0xff]   ;;  %v4948_v61 = vld [vmem:[#allocation8 + $0x60] ss:$8 sps:$4 sm:$0xff]  }
 0x30c   :  { %7205 = vst [vmem:[#allocation21_spill] sm:$0xff] %v5962_v48  ;;  %3769 = vmatpush1.bf16.msra.mxu1 %v4939_v7  ;;  %v4945_v50 = vld [vmem:[#allocation8 + $0x50] ss:$8 sps:$4 sm:$0xff]  }
 0x30d   :  { %7206 = vst [vmem:[#allocation22_spill] sm:$0xff] %v5964_v29  ;;  %3770 = vmatprep.subr.bf16.mxu1 %v4944_v44  ;;  %v7212_v7 = vld [vmem:[#allocation46_spill] sm:$0xff] }
 0x30f   :  { %v2464_v23 = vpop.f32.mrb[64].mxu0 }
 0x310   :  { %v5972_v28 = vadd.f32 %v4470_v37, %v2464_v23  ;;  %v2466_v47 = vpop.f32.mrb[65].mxu0  ;;  %v4947_v37 = vld [vmem:[#allocation8 + $0x54] ss:$8 sps:$4 sm:$0xff]   ;;  %v4480_v23 = vadd.f32 %v5630_v1, %v5600_v57  ;;  %3771 = vmatpush1.bf16.msra.mxu1 %v4942_v62  ;;  %v4486_v62 = vadd.f32 %v5650_v40, %v5598_v22  ;;  %v4956_v40 = vld [vmem:[#allocation8 + $0x84] ss:$8 sps:$4 sm:$0xff]  }
 0x311   :  { %v5976_v59 = vadd.f32 %v4472_v58, %v2466_v47  ;;  %v2468_v9 = vpop.f32.mrb[66].mxu0  ;;  %3772 = vmatprep.subr.bf16.mxu1 %v4947_v37  ;;  %v4490_v37 = vadd.f32 %v5662_v19, %v5598_v22  ;;  %v4954_v19 = vld [vmem:[#allocation8 + $0x80] ss:$8 sps:$4 sm:$0xff]  }
 0x312   :  { %v5978_v29 = vadd.f32 %v4474_v51, %v2468_v9  ;;  %v2470_v12 = vpop.f32.mrb[67].mxu0 }
 0x313   :  { %v5980_v48 = vadd.f32 %v4476_v24, %v2470_v12  ;;  %v4484_v24 = vadd.f32 %v7212_v7, %v5600_v57  ;;  %v4951_v7 = vld [vmem:[#allocation8 + $0x70] ss:$8 sps:$4 sm:$0xff]  }
 0x314   :  { %3773 = vmatpush1.bf16.msra.mxu1 %v4945_v50  ;;  %v4492_v50 = vadd.f32 %v5666_v49, %v5600_v57  ;;  %v4496_v49 = vadd.f32 %v5686_v18, %v5600_v57  ;;  %v2587_v18 = vld [vmem:[#allocation5 + $0x160] sm:$0xff] }
 0x315   :  { %7211 = vst [vmem:[#allocation23_spill] sm:$0xff] %v5980_v48  ;;  %3774 = vmatprep.subr.bf16.mxu1 %v4950_v34 }
 0x317   :  { %v2474_v58 = vpop.f32.mrb[68].mxu0 }
 0x318   :  { %v5988_v47 = vadd.f32 %v4478_v8, %v2474_v58  ;;  %v2476_v51 = vpop.f32.mrb[69].mxu0  ;;  %v4953_v8 = vld [vmem:[#allocation8 + $0x74] ss:$8 sps:$4 sm:$0xff]   ;;  %v4488_v58 = vadd.f32 %v5658_v60, %v5600_v57  ;;  %3775 = vmatpush1.bf16.msra.mxu1 %v4948_v61 }
 0x319   :  { %v5992_v9 = vadd.f32 %v4480_v23, %v2476_v51  ;;  %v2478_v44 = vpop.f32.mrb[70].mxu0  ;;  %3776 = vmatprep.subr.bf16.mxu1 %v4953_v8  ;;  %v4959_v61 = vld [vmem:[#allocation8 + $0x94] ss:$8 sps:$4 sm:$0xff]  }
 0x31a   :  { %v5994_v12 = vadd.f32 %v4482_v31, %v2478_v44  ;;  %v2480_v1 = vpop.f32.mrb[71].mxu0 }
 0x31b   :  { %v5996_v48 = vadd.f32 %v4484_v24, %v2480_v1 }
 0x31c   :  { %3777 = vmatpush1.bf16.msra.mxu1 %v4951_v7  ;;  %v4498_v7 = vadd.f32 %v5690_v0, %v5598_v22 }
 0x31d   :  { %7213 = vst [vmem:[#allocation24_spill] sm:$0xff] %v5996_v48  ;;  %3778 = vmatprep.subr.bf16.mxu1 %v4956_v40 }
 0x31f   :  { %v2484_v23 = vpop.f32.mrb[72].mxu0 }
 0x320   :  { %v6004_v51 = vadd.f32 %v4486_v62, %v2484_v23  ;;  %v2486_v31 = vpop.f32.mrb[73].mxu0  ;;  %v4494_v23 = vadd.f32 %v5680_v10, %v5598_v22  ;;  %3779 = vmatpush1.bf16.msra.mxu1 %v4954_v19 }
 0x321   :  { %v6008_v24 = vadd.f32 %v4488_v58, %v2486_v31  ;;  %v2488_v44 = vpop.f32.mrb[74].mxu0  ;;  %v7218_v58 = vld [vmem:[#allocation42_spill] sm:$0xff]  ;;  %3780 = vmatprep.subr.bf16.mxu1 %v4959_v61 }
 0x322   :  { %7214 = vst [vmem:[#allocation25_spill] sm:$0xff] %v6004_v51  ;;  %v6010_v34 = vadd.f32 %v4490_v37, %v2488_v44  ;;  %v2490_v60 = vpop.f32.mrb[75].mxu0  ;;  %v7220_v37 = vld [vmem:[#allocation43_spill] sm:$0xff] }
 0x323   :  { %7215 = vst [vmem:[#allocation26_spill] sm:$0xff] %v6008_v24  ;;  %v6012_v1 = vadd.f32 %v4492_v50, %v2490_v60  ;;  %v4957_v60 = vld [vmem:[#allocation8 + $0x90] ss:$8 sps:$4 sm:$0xff]  }
 0x324   :  { %7216 = vst [vmem:[#allocation27_spill] sm:$0xff] %v6010_v34  ;;  %v2737_v48 = vpop.xlane.xlu0 %2736  ;;  %v7225_v24 = vld [vmem:[#allocation45_spill] sm:$0xff]  ;;  %3781 = vmatpush1.bf16.msra.mxu1 %v4957_v60 }
 0x325   :  { %7217 = vst [vmem:[#allocation28_spill] sm:$0xff] %v6012_v1  ;;  %v2880_v62 = vmul.f32 0.00390625, %v2737_v48  ;;  %v4500_v48 = vadd.f32 %v5696_v3, %v5600_v57  ;;  %v2588_v1 = vld [vmem:[#allocation5 + $0x168] sm:$0xff] }
 0x327   :  { %v6019_v8 = vsub.f32 %v7218_v58, %v2880_v62  ;;  %v6022_v31 = vsub.f32 %v7220_v37, %v2880_v62  ;;  %v2494_v50 = vpop.f32.mrb[76].mxu0 }
 0x328   :  { %v6028_v44 = vadd.f32 %v4494_v23, %v2494_v50  ;;  %v2496_v40 = vpop.f32.mrb[77].mxu0  ;;  %v2740_v10 = vpop.xlane.xlu0 %2739  ;;  %v2589_v50 = vld [vmem:[#allocation5 + $0x170] sm:$0xff] }
 0x329   :  { %7219 = vst [vmem:[#allocation29_spill] sm:$0xff] %v6019_v8  ;;  %7221 = vst [vmem:[#allocation30_spill] sm:$0xff] %v6022_v31  ;;  %v6030_v58 = vadd.f32 %v4496_v49, %v2496_v40  ;;  %v2881_v34 = vmul.f32 0.00390625, %v2740_v10  ;;  %v2498_v62 = vpop.f32.mrb[78].mxu0  ;;  %v3024_v37 = vmul.f32 %v6019_v8, %v6019_v8  ;;  %v3025_v0 = vmul.f32 %v6022_v31, %v6022_v31  ;;  %v2590_v31 = vld [vmem:[#allocation5 + $0x178] sm:$0xff] }
 0x32a   :  { %7222 = vst [vmem:[#allocation31_spill] sm:$0xff] %v6028_v44  ;;  %v6036_v3 = vadd.f32 %v4498_v7, %v2498_v62  ;;  %v2500_v23 = vpop.f32.mrb[79].mxu0  ;;  %v7223_v44 = vld [vmem:[#allocation44_spill] sm:$0xff]  ;;  %v6047_v40 = vadd.f32 %v5892_v2, %v2587_v18  ;;  %v6050_v10 = vadd.f32 %v5896_v14, %v2588_v1  ;;  %v4502_v2 = vadd.f32 %v5708_v27, %v5598_v22  ;;  %v2598_v8 = vld [vmem:[#allocation5 + $0x1b8] sm:$0xff] }
 0x32b   :  { %v6039_v19 = vsub.f32 %v7223_v44, %v2881_v34  ;;  %v6042_v51 = vsub.f32 %v7225_v24, %v2881_v34  ;;  %v6044_v49 = vadd.f32 %v4500_v48, %v2500_v23  ;;  %v3120_v7 = vadd.f32 %v3025_v0, %v3024_v37  ;;  %v7227_v48 = vld [vmem:[#allocation47_spill] sm:$0xff]  ;;  %v7229_v18 = vld [vmem:[#allocation48_spill] sm:$0xff] }
 0x32c   :  { %v2743_v61 = vpop.xlane.xlu1 %2742  ;;  %v6057_v34 = vadd.f32 %v5898_v17, %v2589_v50  ;;  %v4504_v14 = vadd.f32 %v5714_v46, %v5600_v57  ;;  %v6064_v1 = vadd.f32 %v5900_v39, %v2590_v31  ;;  %v4506_v17 = vadd.f32 %v5718_v5, %v5598_v22  ;;  %v2591_v31 = vld [vmem:[#allocation5 + $0x180] sm:$0xff] }
 0x32d   :  { %7224 = vst [vmem:[#allocation32_spill] sm:$0xff] %v6039_v19  ;;  %7226 = vst [vmem:[#allocation33_spill] sm:$0xff] %v6042_v51  ;;  %v2882_v62 = vmul.f32 0.00390625, %v2743_v61  ;;  %v3026_v44 = vmul.f32 %v6039_v19, %v6039_v19  ;;  %v3027_v24 = vmul.f32 %v6042_v51, %v6042_v51  ;;  %3121 = vadd.xlane.f32.xlu0 %v3120_v7  ;;  %v2592_v7 = vld [vmem:[#allocation5 + $0x188] sm:$0xff] }
 0x32e   :  { %v4508_v27 = vadd.f32 %v5724_v25, %v5600_v57  ;;  %v2801_v39 = vadd.f32 %v6050_v10, %v6047_v40  ;;  %v7231_v51 = vld [vmem:[#allocation49_spill] sm:$0xff] }
 0x32f   :  { %v6067_v60 = vsub.f32 %v7227_v48, %v2882_v62  ;;  %v6070_v37 = vsub.f32 %v7229_v18, %v2882_v62  ;;  %v2504_v0 = vpop.f32.mrb[80].mxu0  ;;  %v3123_v23 = vadd.f32 %v3027_v24, %v3026_v44 }
 0x330   :  { %v6076_v50 = vadd.f32 %v4502_v2, %v2504_v0  ;;  %v2506_v46 = vpop.f32.mrb[81].mxu0  ;;  %v2746_v61 = vpop.xlane.xlu1 %2745  ;;  %v2593_v2 = vld [vmem:[#allocation5 + $0x190] sm:$0xff]  ;;  %v2594_v0 = vld [vmem:[#allocation5 + $0x198] sm:$0xff] }
 0x331   :  { %7228 = vst [vmem:[#allocation34_spill] sm:$0xff] %v6067_v60  ;;  %7230 = vst [vmem:[#allocation35_spill] sm:$0xff] %v6070_v37  ;;  %v6080_v48 = vadd.f32 %v4504_v14, %v2506_v46  ;;  %v2883_v62 = vmul.f32 0.00390625, %v2746_v61  ;;  %v2508_v18 = vpop.f32.mrb[82].mxu0  ;;  %3124 = vadd.xlane.f32.xlu1 %v3123_v23  ;;  %v3028_v5 = vmul.f32 %v6067_v60, %v6067_v60  ;;  %2802 = vadd.xlane.f32.xlu0 %v2801_v39  ;;  %v7233_v14 = vld [vmem:[#allocation50_spill] sm:$0xff] }
 0x332   :  { %v3029_v25 = vmul.f32 %v6070_v37, %v6070_v37  ;;  %v6086_v44 = vadd.f32 %v4506_v17, %v2508_v18  ;;  %v2510_v24 = vpop.f32.mrb[83].mxu0  ;;  %v2804_v23 = vadd.f32 %v6064_v1, %v6057_v34  ;;  %v6099_v60 = vadd.f32 %v5908_v43, %v2591_v31 }
 0x333   :  { %v6089_v19 = vsub.f32 %v7231_v51, %v2883_v62  ;;  %v6092_v46 = vsub.f32 %v7233_v14, %v2883_v62  ;;  %v6094_v61 = vadd.f32 %v4508_v27, %v2510_v24  ;;  %v6102_v17 = vadd.f32 %v5912_v11, %v2592_v7  ;;  %v7236_v7 = vld [vmem:[#allocation51_spill] sm:$0xff] }
 0x334   :  { %v2749_v39 = vpop.xlane.xlu0 %2748  ;;  %v3126_v18 = vadd.f32 %v3029_v25, %v3028_v5  ;;  %v6109_v62 = vadd.f32 %v5914_v26, %v2593_v2  ;;  %v6112_v24 = vadd.f32 %v5916_v15, %v2594_v0  ;;  %v4510_v43 = vadd.f32 %v5736_v35, %v5598_v22  ;;  %v7238_v25 = vld [vmem:[#allocation52_spill] sm:$0xff] }
 0x335   :  { %7232 = vst [vmem:[#allocation36_spill] sm:$0xff] %v6089_v19  ;;  %7234 = vst [vmem:[#allocation37_spill] sm:$0xff] %v6092_v46  ;;  %v2884_v37 = vmul.f32 0.00390625, %v2749_v39  ;;  %2805 = vadd.xlane.f32.xlu1 %v2804_v23  ;;  %v3030_v51 = vmul.f32 %v6089_v19, %v6089_v19  ;;  %v3031_v27 = vmul.f32 %v6092_v46, %v6092_v46  ;;  %v7240_v19 = vld [vmem:[#allocation53_spill] sm:$0xff] }
 0x336   :  { %7235 = vst [vmem:[#allocation38_spill] sm:$0xff] %v6102_v17  ;;  %v4512_v11 = vadd.f32 %v5742_v63, %v5600_v57  ;;  %3127 = vadd.xlane.f32.xlu0 %v3126_v18  ;;  %v2752_v31 = vpop.xlane.xlu1 %2751  ;;  %v4514_v15 = vadd.f32 %v5746_v54, %v5598_v22  ;;  %v4516_v35 = vadd.f32 %v5752_v45, %v5600_v57  ;;  %v2595_v18 = vld [vmem:[#allocation5 + $0x1a0] sm:$0xff] }
 0x337   :  { %v6119_v5 = vsub.f32 %v7236_v7, %v2884_v37  ;;  %v6122_v14 = vsub.f32 %v7238_v25, %v2884_v37  ;;  %v2885_v23 = vmul.f32 0.00390625, %v2752_v31  ;;  %v2514_v26 = vpop.f32.mrb[84].mxu0  ;;  %v3129_v2 = vadd.f32 %v3031_v27, %v3030_v51  ;;  %v2596_v7 = vld [vmem:[#allocation5 + $0x1a8] sm:$0xff]  ;;  %v7242_v31 = vld [vmem:[#allocation54_spill] sm:$0xff] }
 0x338   :  { %v6128_v0 = vadd.f32 %v4510_v43, %v2514_v26  ;;  %v2516_v63 = vpop.f32.mrb[85].mxu0  ;;  %v2807_v39 = vadd.f32 %v6102_v17, %v6099_v60  ;;  %v4962_v46 = vld [vmem:[#allocation8 + $0xa4] ss:$8 sps:$4 sm:$0xff]  }
 0x339   :  { %7237 = vst [vmem:[#allocation39_spill] sm:$0xff] %v6119_v5  ;;  %7239 = vst [vmem:[#allocation40_spill] sm:$0xff] %v6122_v14  ;;  %v6133_v37 = vsub.f32 %v7240_v19, %v2885_v23  ;;  %v6136_v25 = vsub.f32 %v7242_v31, %v2885_v23  ;;  %v6138_v51 = vadd.f32 %v4512_v11, %v2516_v63  ;;  %v2518_v54 = vpop.f32.mrb[86].mxu0  ;;  %3130 = vadd.xlane.f32.xlu1 %v3129_v2  ;;  %v2597_v19 = vld [vmem:[#allocation5 + $0x1b0] sm:$0xff] }
 0x33a   :  { %v3032_v45 = vmul.f32 %v6119_v5, %v6119_v5  ;;  %v6142_v27 = vadd.f32 %v4514_v15, %v2518_v54  ;;  %2808 = vadd.xlane.f32.xlu0 %v2807_v39  ;;  %v2520_v43 = vpop.f32.mrb[87].mxu0  ;;  %v3033_v26 = vmul.f32 %v6122_v14, %v6122_v14  ;;  %v2810_v11 = vadd.f32 %v6112_v24, %v6109_v62  ;;  %v4960_v15 = vld [vmem:[#allocation8 + $0xa0] ss:$8 sps:$4 sm:$0xff]   ;;  %v2601_v5 = vld [vmem:[#allocation5 + $0x1d0] sm:$0xff]  ;;  %v2602_v14 = vld [vmem:[#allocation5 + $0x1d8] sm:$0xff] }
 0x33b   :  { %7241 = vst [vmem:[#allocation41_spill] sm:$0xff] %v6133_v37  ;;  %7243 = vst [vmem:[#allocation46_spill] sm:$0xff] %v6136_v25  ;;  %v6146_v17 = vadd.f32 %v4516_v35, %v2520_v43  ;;  %v3034_v23 = vmul.f32 %v6133_v37, %v6133_v37  ;;  %v3035_v2 = vmul.f32 %v6136_v25, %v6136_v25  ;;  %3782 = vmatprep.subr.bf16.mxu1 %v4962_v46 }
 0x33c   :  { %v6155_v63 = vadd.f32 %v5924_v6, %v2595_v18  ;;  %v6158_v39 = vadd.f32 %v5928_v16, %v2596_v7  ;;  %v2755_v31 = vpop.xlane.xlu0 %2754  ;;  %v3132_v54 = vadd.f32 %v3033_v26, %v3032_v45  ;;  %3783 = vmatpush1.bf16.msra.mxu1 %v4960_v15  ;;  %v6161_v43 = vadd.f32 %v5930_v41, %v2597_v19  ;;  %v4965_v18 = vld [vmem:[#allocation8 + $0xb4] ss:$8 sps:$4 sm:$0xff]   ;;  %v7246_v45 = vld [vmem:[#allocation56_spill] sm:$0xff] }
 0x33d   :  { %v2886_v35 = vmul.f32 0.00390625, %v2755_v31  ;;  %2811 = vadd.xlane.f32.xlu1 %v2810_v11  ;;  %v6164_v37 = vadd.f32 %v5932_v38, %v2598_v8  ;;  %v4518_v25 = vadd.f32 %v5764_v42, %v5598_v22  ;;  %v4520_v6 = vadd.f32 %v5770_v4, %v5600_v57  ;;  %v7244_v7 = vld [vmem:[#allocation55_spill] sm:$0xff]  ;;  %v4963_v38 = vld [vmem:[#allocation8 + $0xb0] ss:$8 sps:$4 sm:$0xff]   ;;  %3784 = vmatprep.subr.bf16.mxu1 %v4965_v18 }
 0x33e   :  { %3133 = vadd.xlane.f32.xlu0 %v3132_v54  ;;  %v2758_v16 = vpop.xlane.xlu1 %2757  ;;  %v3135_v11 = vadd.f32 %v3035_v2, %v3034_v23  ;;  %v4522_v8 = vadd.f32 %v5774_v21, %v5598_v22  ;;  %v4524_v42 = vadd.f32 %v5780_v32, %v5600_v57  ;;  %v2813_v31 = vadd.f32 %v6158_v39, %v6155_v63  ;;  %v2599_v54 = vld [vmem:[#allocation5 + $0x1c0] sm:$0xff]  ;;  %v7250_v23 = vld [vmem:[#allocation58_spill] sm:$0xff] }
 0x33f   :  { %v6171_v46 = vsub.f32 %v7244_v7, %v2886_v35  ;;  %v6174_v26 = vsub.f32 %v7246_v45, %v2886_v35  ;;  %v2887_v41 = vmul.f32 0.00390625, %v2758_v16  ;;  %v2524_v19 = vpop.f32.mrb[88].mxu0  ;;  %v2600_v35 = vld [vmem:[#allocation5 + $0x1c8] sm:$0xff] }
 0x340   :  { %v6180_v4 = vadd.f32 %v4518_v25, %v2524_v19  ;;  %v2526_v15 = vpop.f32.mrb[89].mxu0  ;;  %v7248_v7 = vld [vmem:[#allocation57_spill] sm:$0xff]  ;;  %3785 = vmatpush1.bf16.msra.mxu1 %v4963_v38  ;;  %v6210_v38 = vadd.f32 %v5944_v36, %v2600_v35  ;;  %v7252_v35 = vld [vmem:[#allocation59_spill] sm:$0xff] }
 0x341   :  { %7245 = vst [vmem:[#allocation42_spill] sm:$0xff] %v6171_v46  ;;  %7247 = vst [vmem:[#allocation43_spill] sm:$0xff] %v6174_v26  ;;  %v6185_v16 = vsub.f32 %v7248_v7, %v2887_v41  ;;  %v6188_v2 = vsub.f32 %v7250_v23, %v2887_v41  ;;  %v6190_v45 = vadd.f32 %v4520_v6, %v2526_v15  ;;  %v2528_v21 = vpop.f32.mrb[90].mxu0  ;;  %3136 = vadd.xlane.f32.xlu1 %v3135_v11  ;;  %v4968_v7 = vld [vmem:[#allocation8 + $0xc4] ss:$8 sps:$4 sm:$0xff]  }
 0x342   :  { %v3036_v32 = vmul.f32 %v6171_v46, %v6171_v46  ;;  %v6194_v25 = vadd.f32 %v4522_v8, %v2528_v21  ;;  %2814 = vadd.xlane.f32.xlu0 %v2813_v31  ;;  %v2530_v19 = vpop.f32.mrb[91].mxu0  ;;  %v3037_v18 = vmul.f32 %v6174_v26, %v6174_v26  ;;  %v2816_v6 = vadd.f32 %v6164_v37, %v6161_v43  ;;  %v4966_v15 = vld [vmem:[#allocation8 + $0xc0] ss:$8 sps:$4 sm:$0xff]   ;;  %v7262_v46 = vld [vmem:[#allocation22_spill] sm:$0xff] }
 0x343   :  { %7249 = vst [vmem:[#allocation44_spill] sm:$0xff] %v6185_v16  ;;  %7251 = vst [vmem:[#allocation45_spill] sm:$0xff] %v6188_v2  ;;  %v6198_v41 = vadd.f32 %v4524_v42, %v2530_v19  ;;  %v3038_v11 = vmul.f32 %v6185_v16, %v6185_v16  ;;  %v3039_v8 = vmul.f32 %v6188_v2, %v6188_v2  ;;  %3786 = vmatprep.subr.bf16.mxu1 %v4968_v7  ;;  %v4977_v26 = vld [vmem:[#allocation8 + $0xf4] ss:$8 sps:$4 sm:$0xff]  }
 0x344   :  { %v6207_v31 = vadd.f32 %v5940_v20, %v2599_v54  ;;  %v2761_v23 = vpop.xlane.xlu0 %2760  ;;  %v3138_v21 = vadd.f32 %v3037_v18, %v3036_v32  ;;  %v4526_v42 = vadd.f32 %v5792_v53, %v5598_v22  ;;  %v6215_v16 = vadd.f32 %v5946_v55, %v2601_v5  ;;  %3787 = vmatpush1.bf16.msra.mxu1 %v4966_v15  ;;  %v4971_v54 = vld [vmem:[#allocation8 + $0xd4] ss:$8 sps:$4 sm:$0xff]   ;;  %v7254_v18 = vld [vmem:[#allocation60_spill] sm:$0xff]  ;;  %v4969_v5 = vld [vmem:[#allocation8 + $0xd0] ss:$8 sps:$4 sm:$0xff]  }
 0x345   :  { %v2888_v19 = vmul.f32 0.00390625, %v2761_v23  ;;  %2817 = vadd.xlane.f32.xlu1 %v2816_v6  ;;  %v6218_v2 = vadd.f32 %v5948_v13, %v2602_v14  ;;  %v4528_v20 = vadd.f32 %v5798_v30, %v5600_v57  ;;  %v3141_v55 = vadd.f32 %v3039_v8, %v3038_v11  ;;  %3788 = vmatprep.subr.bf16.mxu1 %v4971_v54  ;;  %v7258_v11 = vld [vmem:[#allocation62_spill] sm:$0xff]  ;;  %v4974_v54 = vld [vmem:[#allocation8 + $0xe4] ss:$8 sps:$4 sm:$0xff]  }
 0x346   :  { %3139 = vadd.xlane.f32.xlu0 %v3138_v21  ;;  %v2764_v36 = vpop.xlane.xlu1 %2763  ;;  %v4530_v13 = vadd.f32 %v5802_v56, %v5598_v22  ;;  %v4532_v30 = vadd.f32 %v5808_v52, %v5600_v57  ;;  %v2819_v23 = vadd.f32 %v6210_v38, %v6207_v31  ;;  %v2603_v21 = vld [vmem:[#allocation5 + $0x1e0] sm:$0xff] }
 0x347   :  { %v6223_v32 = vsub.f32 %v7252_v35, %v2888_v19  ;;  %v6226_v53 = vsub.f32 %v7254_v18, %v2888_v19  ;;  %v2889_v7 = vmul.f32 0.00390625, %v2764_v36  ;;  %v2534_v6 = vpop.f32.mrb[92].mxu0  ;;  %v2604_v19 = vld [vmem:[#allocation5 + $0x1e8] sm:$0xff] }
 0x348   :  { %v6232_v14 = vadd.f32 %v4526_v42, %v2534_v6  ;;  %v2536_v15 = vpop.f32.mrb[93].mxu0  ;;  %v7256_v35 = vld [vmem:[#allocation61_spill] sm:$0xff]  ;;  %3789 = vmatpush1.bf16.msra.mxu1 %v4969_v5 }
 0x349   :  { %7253 = vst [vmem:[#allocation47_spill] sm:$0xff] %v6223_v32  ;;  %7255 = vst [vmem:[#allocation48_spill] sm:$0xff] %v6226_v53  ;;  %v6237_v36 = vsub.f32 %v7256_v35, %v2889_v7  ;;  %v6240_v8 = vsub.f32 %v7258_v11, %v2889_v7  ;;  %v6242_v18 = vadd.f32 %v4528_v20, %v2536_v15  ;;  %v2538_v22 = vpop.f32.mrb[94].mxu0  ;;  %3142 = vadd.xlane.f32.xlu1 %v3141_v55  ;;  %v2605_v6 = vld [vmem:[#allocation5 + $0x1f0] sm:$0xff]  ;;  %v2606_v35 = vld [vmem:[#allocation5 + $0x1f8] sm:$0xff] }
 0x34a   :  { %v3040_v57 = vmul.f32 %v6223_v32, %v6223_v32  ;;  %v6246_v56 = vadd.f32 %v4530_v13, %v2538_v22  ;;  %2820 = vadd.xlane.f32.xlu0 %v2819_v23  ;;  %v2540_v52 = vpop.f32.mrb[95].mxu0  ;;  %v3041_v42 = vmul.f32 %v6226_v53, %v6226_v53  ;;  %v2822_v20 = vadd.f32 %v6218_v2, %v6215_v16  ;;  %v4972_v15 = vld [vmem:[#allocation8 + $0xe0] ss:$8 sps:$4 sm:$0xff]  }
 0x34b   :  { %7257 = vst [vmem:[#allocation49_spill] sm:$0xff] %v6237_v36  ;;  %7259 = vst [vmem:[#allocation50_spill] sm:$0xff] %v6240_v8  ;;  %v6250_v7 = vadd.f32 %v4532_v30, %v2540_v52  ;;  %v3042_v55 = vmul.f32 %v6237_v36, %v6237_v36  ;;  %v3043_v13 = vmul.f32 %v6240_v8, %v6240_v8  ;;  %v7260_v11 = vld [vmem:[#allocation20_spill] sm:$0xff]  ;;  %3790 = vmatprep.subr.bf16.mxu1 %v4974_v54  ;;  %v7261_v52 = vld [vmem:[#allocation21_spill] sm:$0xff] }
 0x34c   :  { %v6259_v23 = vadd.f32 %v5956_v33, %v2603_v21  ;;  %v6262_v5 = vadd.f32 %v7260_v11, %v2604_v19  ;;  %v2767_v22 = vpop.xlane.xlu0 %2766  ;;  %v3144_v32 = vadd.f32 %v3041_v42, %v3040_v57  ;;  %v6265_v53 = vadd.f32 %v7261_v52, %v2605_v6  ;;  %3791 = vmatpush1.bf16.msra.mxu1 %v4972_v15  ;;  %v7263_v33 = vld [vmem:[#allocation63_spill] sm:$0xff]  ;;  %v7265_v19 = vld [vmem:[#allocation64_spill] sm:$0xff]  ;;  %v4975_v54 = vld [vmem:[#allocation8 + $0xf0] ss:$8 sps:$4 sm:$0xff]  }
 0x34d   :  { %v2890_v30 = vmul.f32 0.00390625, %v2767_v22  ;;  %2823 = vadd.xlane.f32.xlu1 %v2822_v20  ;;  %v6268_v36 = vadd.f32 %v7262_v46, %v2606_v35  ;;  %v3147_v42 = vadd.f32 %v3043_v13, %v3042_v55  ;;  %3792 = vmatprep.subr.bf16.mxu1 %v4977_v26  ;;  %v2607_v20 = vld [vmem:[#allocation5 + $0x200] sm:$0xff]  ;;  %v2608_v46 = vld [vmem:[#allocation5 + $0x208] sm:$0xff]  ;;  %v7269_v15 = vld [vmem:[#allocation66_spill] sm:$0xff] }
 0x34e   :  { %3145 = vadd.xlane.f32.xlu0 %v3144_v32  ;;  %v2770_v8 = vpop.xlane.xlu1 %2769  ;;  %v2825_v6 = vadd.f32 %v6262_v5, %v6259_v23  ;;  %v7267_v35 = vld [vmem:[#allocation65_spill] sm:$0xff]  ;;  %v2610_v13 = vld [vmem:[#allocation5 + $0x218] sm:$0xff] }
 0x34f   :  { %v6271_v21 = vsub.f32 %v7263_v33, %v2890_v30  ;;  %v6274_v11 = vsub.f32 %v7265_v19, %v2890_v30  ;;  %v2891_v57 = vmul.f32 0.00390625, %v2770_v8  ;;  %v2609_v55 = vld [vmem:[#allocation5 + $0x210] sm:$0xff]  ;;  %v2828_v26 = vadd.f32 %v6268_v36, %v6265_v53 }
 0x350   :  { %3793 = vmatpush1.bf16.msra.mxu1 %v4975_v54 }
 0x351   :  { %7264 = vst [vmem:[#allocation51_spill] sm:$0xff] %v6271_v21  ;;  %7266 = vst [vmem:[#allocation52_spill] sm:$0xff] %v6274_v11  ;;  %v6279_v32 = vsub.f32 %v7267_v35, %v2891_v57  ;;  %v6282_v22 = vsub.f32 %v7269_v15, %v2891_v57  ;;  %3148 = vadd.xlane.f32.xlu1 %v3147_v42  ;;  %v3044_v30 = vmul.f32 %v6271_v21, %v6271_v21  ;;  %v7271_v15 = vld [vmem:[#allocation23_spill] sm:$0xff] }
 0x352   :  { %v3045_v8 = vmul.f32 %v6274_v11, %v6274_v11  ;;  %2826 = vadd.xlane.f32.xlu0 %v2825_v6  ;;  %v6295_v57 = vadd.f32 %v5972_v28, %v2607_v20  ;;  %v6298_v42 = vadd.f32 %v5976_v59, %v2608_v46  ;;  %v6301_v35 = vadd.f32 %v5978_v29, %v2609_v55  ;;  %v7276_v29 = vld [vmem:[#allocation69_spill] sm:$0xff] }
 0x353   :  { %7268 = vst [vmem:[#allocation53_spill] sm:$0xff] %v6279_v32  ;;  %7270 = vst [vmem:[#allocation54_spill] sm:$0xff] %v6282_v22  ;;  %v3046_v33 = vmul.f32 %v6279_v32, %v6279_v32  ;;  %v3047_v19 = vmul.f32 %v6282_v22, %v6282_v22  ;;  %v7272_v32 = vld [vmem:[#allocation67_spill] sm:$0xff]  ;;  %v7274_v22 = vld [vmem:[#allocation68_spill] sm:$0xff] }
 0x354   :  { %v3150_v52 = vadd.f32 %v3045_v8, %v3044_v30  ;;  %v2773_v6 = vpop.xlane.xlu0 %2772  ;;  %v6304_v30 = vadd.f32 %v7271_v15, %v2610_v13  ;;  %v2831_v46 = vadd.f32 %v6298_v42, %v6295_v57  ;;  %v7278_v13 = vld [vmem:[#allocation70_spill] sm:$0xff] }
 0x355   :  { %v2892_v54 = vmul.f32 0.00390625, %v2773_v6  ;;  %2829 = vadd.xlane.f32.xlu1 %v2828_v26  ;;  %v3153_v59 = vadd.f32 %v3047_v19, %v3046_v33  ;;  %v2611_v26 = vld [vmem:[#allocation5 + $0x220] sm:$0xff]  ;;  %v2612_v6 = vld [vmem:[#allocation5 + $0x228] sm:$0xff]  ;;  %v2614_v33 = vld [vmem:[#allocation5 + $0x238] sm:$0xff] }
 0x356   :  { %3151 = vadd.xlane.f32.xlu0 %v3150_v52  ;;  %v2776_v8 = vpop.xlane.xlu1 %2775  ;;  %v2613_v52 = vld [vmem:[#allocation5 + $0x230] sm:$0xff]  ;;  %v2834_v19 = vadd.f32 %v6304_v30, %v6301_v35 }
 0x357   :  { %v6307_v21 = vsub.f32 %v7272_v32, %v2892_v54  ;;  %v6310_v28 = vsub.f32 %v7274_v22, %v2892_v54  ;;  %v2893_v20 = vmul.f32 0.00390625, %v2776_v8 }
 0x359   :  { %7273 = vst [vmem:[#allocation55_spill] sm:$0xff] %v6307_v21  ;;  %7275 = vst [vmem:[#allocation56_spill] sm:$0xff] %v6310_v28  ;;  %v6315_v55 = vsub.f32 %v7276_v29, %v2893_v20  ;;  %v6318_v15 = vsub.f32 %v7278_v13, %v2893_v20  ;;  %3154 = vadd.xlane.f32.xlu1 %v3153_v59  ;;  %v3048_v32 = vmul.f32 %v6307_v21, %v6307_v21 }
 0x35a   :  { %v3049_v22 = vmul.f32 %v6310_v28, %v6310_v28  ;;  %2832 = vadd.xlane.f32.xlu0 %v2831_v46  ;;  %v6331_v59 = vadd.f32 %v5988_v47, %v2611_v26  ;;  %v6334_v29 = vadd.f32 %v5992_v9, %v2612_v6  ;;  %v6337_v21 = vadd.f32 %v5994_v12, %v2613_v52  ;;  %v7283_v28 = vld [vmem:[#allocation24_spill] sm:$0xff]  ;;  %v7289_v12 = vld [vmem:[#allocation73_spill] sm:$0xff] }
 0x35b   :  { %7277 = vst [vmem:[#allocation57_spill] sm:$0xff] %v6315_v55  ;;  %7279 = vst [vmem:[#allocation58_spill] sm:$0xff] %v6318_v15  ;;  %v3050_v8 = vmul.f32 %v6315_v55, %v6315_v55  ;;  %v3051_v20 = vmul.f32 %v6318_v15, %v6318_v15  ;;  %v7285_v55 = vld [vmem:[#allocation71_spill] sm:$0xff]  ;;  %v7287_v15 = vld [vmem:[#allocation72_spill] sm:$0xff] }
 0x35c   :  { %v3156_v54 = vadd.f32 %v3049_v22, %v3048_v32  ;;  %7280 = vst [vmem:[#allocation59_spill] sm:$0xff] %v6331_v59  ;;  %7281 = vst [vmem:[#allocation60_spill] sm:$0xff] %v6334_v29  ;;  %v2779_v13 = vpop.xlane.xlu0 %2778  ;;  %v6340_v32 = vadd.f32 %v7283_v28, %v2614_v33  ;;  %v2837_v6 = vadd.f32 %v6334_v29, %v6331_v59  ;;  %v7291_v28 = vld [vmem:[#allocation74_spill] sm:$0xff]  ;;  %v7295_v29 = vld [vmem:[#allocation27_spill] sm:$0xff] }
 0x35d   :  { %v2894_v46 = vmul.f32 0.00390625, %v2779_v13  ;;  %2835 = vadd.xlane.f32.xlu1 %v2834_v19  ;;  %7282 = vst [vmem:[#allocation61_spill] sm:$0xff] %v6337_v21  ;;  %v3159_v9 = vadd.f32 %v3051_v20, %v3050_v8  ;;  %v2615_v19 = vld [vmem:[#allocation5 + $0x240] sm:$0xff]  ;;  %v2616_v13 = vld [vmem:[#allocation5 + $0x248] sm:$0xff]  ;;  %v2618_v8 = vld [vmem:[#allocation5 + $0x258] sm:$0xff] }
 0x35e   :  { %7284 = vst [vmem:[#allocation62_spill] sm:$0xff] %v6340_v32  ;;  %3157 = vadd.xlane.f32.xlu0 %v3156_v54  ;;  %v2782_v22 = vpop.xlane.xlu1 %2781  ;;  %v2617_v54 = vld [vmem:[#allocation5 + $0x250] sm:$0xff]  ;;  %v2840_v20 = vadd.f32 %v6340_v32, %v6337_v21  ;;  %v7296_v32 = vld [vmem:[#allocation28_spill] sm:$0xff] }
 0x35f   :  { %v6343_v11 = vsub.f32 %v7285_v55, %v2894_v46  ;;  %v6346_v47 = vsub.f32 %v7287_v15, %v2894_v46  ;;  %v2895_v26 = vmul.f32 0.00390625, %v2782_v22  ;;  %v6373_v59 = vadd.f32 %v7295_v29, %v2617_v54  ;;  %v7302_v29 = vld [vmem:[#allocation77_spill] sm:$0xff] }
 0x361   :  { %7286 = vst [vmem:[#allocation20_spill] sm:$0xff] %v6343_v11  ;;  %7288 = vst [vmem:[#allocation21_spill] sm:$0xff] %v6346_v47  ;;  %v6351_v52 = vsub.f32 %v7289_v12, %v2895_v26  ;;  %v6354_v33 = vsub.f32 %v7291_v28, %v2895_v26  ;;  %3160 = vadd.xlane.f32.xlu1 %v3159_v9  ;;  %v3052_v55 = vmul.f32 %v6343_v11, %v6343_v11  ;;  %v7293_v9 = vld [vmem:[#allocation25_spill] sm:$0xff]  ;;  %v7294_v28 = vld [vmem:[#allocation26_spill] sm:$0xff] }
 0x362   :  { %v3053_v15 = vmul.f32 %v6346_v47, %v6346_v47  ;;  %2838 = vadd.xlane.f32.xlu0 %v2837_v6  ;;  %v6367_v12 = vadd.f32 %v7293_v9, %v2615_v19  ;;  %v6370_v11 = vadd.f32 %v7294_v28, %v2616_v13  ;;  %v2620_v28 = vld [vmem:[#allocation5 + $0x268] sm:$0xff] }
 0x363   :  { %7290 = vst [vmem:[#allocation22_spill] sm:$0xff] %v6351_v52  ;;  %7292 = vst [vmem:[#allocation63_spill] sm:$0xff] %v6354_v33  ;;  %v3054_v22 = vmul.f32 %v6351_v52, %v6351_v52  ;;  %v3055_v26 = vmul.f32 %v6354_v33, %v6354_v33  ;;  %v7298_v52 = vld [vmem:[#allocation75_spill] sm:$0xff]  ;;  %v7300_v33 = vld [vmem:[#allocation76_spill] sm:$0xff] }
 0x364   :  { %v3162_v46 = vadd.f32 %v3053_v15, %v3052_v55  ;;  %v2785_v47 = vpop.xlane.xlu0 %2784  ;;  %v6376_v55 = vadd.f32 %v7296_v32, %v2618_v8  ;;  %v7304_v32 = vld [vmem:[#allocation78_spill] sm:$0xff] }
 0x365   :  { %v2896_v6 = vmul.f32 0.00390625, %v2785_v47  ;;  %2841 = vadd.xlane.f32.xlu1 %v2840_v20  ;;  %v3165_v13 = vadd.f32 %v3055_v26, %v3054_v22  ;;  %v2843_v47 = vadd.f32 %v6370_v11, %v6367_v12  ;;  %v2619_v20 = vld [vmem:[#allocation5 + $0x260] sm:$0xff]  ;;  %v2622_v22 = vld [vmem:[#allocation5 + $0x278] sm:$0xff] }
 0x366   :  { %7297 = vst [vmem:[#allocation64_spill] sm:$0xff] %v6376_v55  ;;  %3163 = vadd.xlane.f32.xlu0 %v3162_v46  ;;  %v2788_v15 = vpop.xlane.xlu1 %2787  ;;  %v2621_v46 = vld [vmem:[#allocation5 + $0x270] sm:$0xff]  ;;  %v2846_v26 = vadd.f32 %v6376_v55, %v6373_v59 }
 0x367   :  { %v6379_v21 = vsub.f32 %v7298_v52, %v2896_v6  ;;  %v6382_v19 = vsub.f32 %v7300_v33, %v2896_v6  ;;  %v2897_v9 = vmul.f32 0.00390625, %v2788_v15 }
 0x369   :  { %7299 = vst [vmem:[#allocation65_spill] sm:$0xff] %v6379_v21  ;;  %7301 = vst [vmem:[#allocation66_spill] sm:$0xff] %v6382_v19  ;;  %v6387_v54 = vsub.f32 %v7302_v29, %v2897_v9  ;;  %v6390_v8 = vsub.f32 %v7304_v32, %v2897_v9  ;;  %3166 = vadd.xlane.f32.xlu1 %v3165_v13  ;;  %v3056_v52 = vmul.f32 %v6379_v21, %v6379_v21  ;;  %v7306_v13 = vld [vmem:[#allocation31_spill] sm:$0xff] }
 0x36a   :  { %v3057_v33 = vmul.f32 %v6382_v19, %v6382_v19  ;;  %2844 = vadd.xlane.f32.xlu0 %v2843_v47  ;;  %v6403_v29 = vadd.f32 %v7306_v13, %v2619_v20  ;;  %v6406_v32 = vadd.f32 %v6030_v58, %v2620_v28  ;;  %v6409_v19 = vadd.f32 %v6036_v3, %v2621_v46  ;;  %v2623_v28 = vld [vmem:[#allocation5 + $0x280] sm:$0xff]  ;;  %v7311_v3 = vld [vmem:[#allocation81_spill] sm:$0xff] }
 0x36b   :  { %7303 = vst [vmem:[#allocation23_spill] sm:$0xff] %v6387_v54  ;;  %7305 = vst [vmem:[#allocation67_spill] sm:$0xff] %v6390_v8  ;;  %v3058_v15 = vmul.f32 %v6387_v54, %v6387_v54  ;;  %v3059_v9 = vmul.f32 %v6390_v8, %v6390_v8  ;;  %v7307_v54 = vld [vmem:[#allocation79_spill] sm:$0xff]  ;;  %v7309_v8 = vld [vmem:[#allocation80_spill] sm:$0xff] }
 0x36c   :  { %v3168_v6 = vadd.f32 %v3057_v33, %v3056_v52  ;;  %v2791_v21 = vpop.xlane.xlu0 %2790  ;;  %v6412_v52 = vadd.f32 %v6044_v49, %v2622_v22  ;;  %v7313_v49 = vld [vmem:[#allocation82_spill] sm:$0xff] }
 0x36d   :  { %v2898_v47 = vmul.f32 0.00390625, %v2791_v21  ;;  %2847 = vadd.xlane.f32.xlu1 %v2846_v26  ;;  %v3171_v58 = vadd.f32 %v3059_v9, %v3058_v15  ;;  %v2849_v21 = vadd.f32 %v6406_v32, %v6403_v29  ;;  %v2624_v26 = vld [vmem:[#allocation5 + $0x288] sm:$0xff]  ;;  %v2626_v15 = vld [vmem:[#allocation5 + $0x298] sm:$0xff] }
 0x36e   :  { %3169 = vadd.xlane.f32.xlu0 %v3168_v6  ;;  %v2794_v33 = vpop.xlane.xlu1 %2793  ;;  %v2625_v6 = vld [vmem:[#allocation5 + $0x290] sm:$0xff]  ;;  %v2852_v9 = vadd.f32 %v6412_v52, %v6409_v19 }
 0x36f   :  { %v6415_v55 = vsub.f32 %v7307_v54, %v2898_v47  ;;  %v6418_v20 = vsub.f32 %v7309_v8, %v2898_v47  ;;  %v2899_v13 = vmul.f32 0.00390625, %v2794_v33 }
 0x371   :  { %7308 = vst [vmem:[#allocation68_spill] sm:$0xff] %v6415_v55  ;;  %7310 = vst [vmem:[#allocation69_spill] sm:$0xff] %v6418_v20  ;;  %v6423_v46 = vsub.f32 %v7311_v3, %v2899_v13  ;;  %v6426_v22 = vsub.f32 %v7313_v49, %v2899_v13  ;;  %3172 = vadd.xlane.f32.xlu1 %v3171_v58  ;;  %v3060_v54 = vmul.f32 %v6415_v55, %v6415_v55 }
 0x372   :  { %v3061_v8 = vmul.f32 %v6418_v20, %v6418_v20  ;;  %2850 = vadd.xlane.f32.xlu0 %v2849_v21  ;;  %v6439_v58 = vadd.f32 %v6076_v50, %v2623_v28  ;;  %v6442_v3 = vadd.f32 %v6080_v48, %v2624_v26  ;;  %v6445_v55 = vadd.f32 %v6086_v44, %v2625_v6  ;;  %v7318_v44 = vld [vmem:[#allocation84_spill] sm:$0xff] }
 0x373   :  { %7312 = vst [vmem:[#allocation70_spill] sm:$0xff] %v6423_v46  ;;  %7314 = vst [vmem:[#allocation24_spill] sm:$0xff] %v6426_v22  ;;  %v3062_v33 = vmul.f32 %v6423_v46, %v6423_v46  ;;  %v3063_v13 = vmul.f32 %v6426_v22, %v6426_v22  ;;  %v7315_v46 = vld [vmem:[#allocation19_spill] sm:$0xff] }
 0x374   :  { %v3174_v47 = vadd.f32 %v3061_v8, %v3060_v54  ;;  %v2797_v49 = vpop.xlane.xlu0 %2796  ;;  %v6448_v54 = vadd.f32 %v6094_v61, %v2626_v15  ;;  %v7317_v22 = vld [vmem:[#allocation83_spill] sm:$0xff]  ;;  %v2855_v26 = vadd.f32 %v6442_v3, %v6439_v58  ;;  %v7320_v61 = vld [vmem:[#allocation85_spill] sm:$0xff] }
 0x375   :  { %v2900_v21 = vmul.f32 0.00390625, %v2797_v49  ;;  %2853 = vadd.xlane.f32.xlu1 %v2852_v9  ;;  %v3177_v48 = vadd.f32 %v3063_v13, %v3062_v33  ;;  %v2627_v9 = vld [vmem:[#allocation5 + $0x2a0] sm:$0xff]  ;;  %v2628_v49 = vld [vmem:[#allocation5 + $0x2a8] sm:$0xff] }
 0x376   :  { %3175 = vadd.xlane.f32.xlu0 %v3174_v47  ;;  %v2800_v8 = vpop.xlane.xlu1 %2799  ;;  %v2858_v47 = vadd.f32 %v6448_v54, %v6445_v55 }
 0x377   :  { %v6451_v20 = vsub.f32 %v7315_v46, %v2900_v21  ;;  %v6454_v50 = vsub.f32 %v7317_v22, %v2900_v21  ;;  %v2901_v28 = vmul.f32 0.00390625, %v2800_v8  ;;  %v6475_v8 = vadd.f32 %v6128_v0, %v2627_v9 }
 0x379   :  { %7316 = vst [vmem:[#allocation71_spill] sm:$0xff] %v6451_v20  ;;  %v6459_v6 = vsub.f32 %v7318_v44, %v2901_v28  ;;  %v6462_v15 = vsub.f32 %v7320_v61, %v2901_v28  ;;  %3178 = vadd.xlane.f32.xlu1 %v3177_v48  ;;  %v3064_v46 = vmul.f32 %v6451_v20, %v6451_v20  ;;  %v2629_v48 = vld [vmem:[#allocation5 + $0x2b0] sm:$0xff]  ;;  %v2630_v44 = vld [vmem:[#allocation5 + $0x2b8] sm:$0xff] }
 0x37a   :  { %v3065_v22 = vmul.f32 %v6454_v50, %v6454_v50  ;;  %2856 = vadd.xlane.f32.xlu0 %v2855_v26  ;;  %v6478_v28 = vadd.f32 %v6138_v51, %v2628_v49  ;;  %v6481_v26 = vadd.f32 %v6142_v27, %v2629_v48  ;;  %v6484_v61 = vadd.f32 %v6146_v17, %v2630_v44  ;;  %v2631_v44 = vld [vmem:[#allocation5 + $0x2c0] sm:$0xff] }
 0x37b   :  { %7319 = vst [vmem:[#allocation72_spill] sm:$0xff] %v6459_v6  ;;  %v3066_v13 = vmul.f32 %v6459_v6, %v6459_v6  ;;  %v3067_v21 = vmul.f32 %v6462_v15, %v6462_v15  ;;  %v2633_v6 = vld [vmem:[#allocation5 + $0x2d0] sm:$0xff] }
 0x37c   :  { %v3180_v33 = vadd.f32 %v3065_v22, %v3064_v46  ;;  %v2861_v22 = vadd.f32 %v6478_v28, %v6475_v8  ;;  %v2864_v0 = vadd.f32 %v6484_v61, %v6481_v26 }
 0x37d   :  { %2859 = vadd.xlane.f32.xlu1 %v2858_v47  ;;  %v3183_v46 = vadd.f32 %v3067_v21, %v3066_v13  ;;  %v2632_v13 = vld [vmem:[#allocation5 + $0x2c8] sm:$0xff] }
 0x37e   :  { %3181 = vadd.xlane.f32.xlu0 %v3180_v33 }
 0x381   :  { %3184 = vadd.xlane.f32.xlu1 %v3183_v46 }
 0x382   :  { %2862 = vadd.xlane.f32.xlu0 %v2861_v22 }
 0x385   :  { %2865 = vadd.xlane.f32.xlu1 %v2864_v0  ;;  %v2634_v0 = vld [vmem:[#allocation5 + $0x2d8] sm:$0xff] }
 0x3ba   :  { %v3122_v51 = vpop.xlane.xlu0 %3121 }
 0x3bb   :  { %v3264_v9 = vmul.f32 0.00390625, %v3122_v51 }
 0x3bd   :  { %v3312_v49 = vadd.f32 1e-12, %v3264_v9 }
 0x3be   :  { %v3125_v47 = vpop.xlane.xlu1 %3124  ;;  %v2803_v27 = vpop.xlane.xlu0 %2802 }
 0x3bf   :  { %v3265_v33 = vmul.f32 0.00390625, %v3125_v47  ;;  %4978 = vrsqrt.f32 %v3312_v49  ;;  %v2902_v48 = vmul.f32 0.00390625, %v2803_v27 }
 0x3c1   :  { %v3313_v17 = vadd.f32 1e-12, %v3265_v33  ;;  %v6491_v21 = vsub.f32 %v6047_v40, %v2902_v48  ;;  %v6494_v46 = vsub.f32 %v6050_v10, %v2902_v48  ;;  %v6501_v33 = vadd.f32 %v6180_v4, %v2631_v44 }
 0x3c2   :  { %v2806_v22 = vpop.xlane.xlu1 %2805  ;;  %v6504_v40 = vadd.f32 %v6190_v45, %v2632_v13  ;;  %v6513_v48 = vadd.f32 %v6194_v25, %v2633_v6  ;;  %v2635_v13 = vld [vmem:[#allocation5 + $0x2e0] sm:$0xff]  ;;  %v2637_v25 = vld [vmem:[#allocation5 + $0x2f0] sm:$0xff] }
 0x3c3   :  { %7321 = vst [vmem:[#allocation73_spill] sm:$0xff] %v6491_v21  ;;  %7322 = vst [vmem:[#allocation74_spill] sm:$0xff] %v6494_v46  ;;  %4980 = vrsqrt.f32 %v3313_v17  ;;  %v2903_v51 = vmul.f32 0.00390625, %v2806_v22  ;;  %v3128_v9 = vpop.xlane.xlu0 %3127  ;;  %v3068_v49 = vmul.f32 %v6491_v21, %v6491_v21  ;;  %v3069_v47 = vmul.f32 %v6494_v46, %v6494_v46 }
 0x3c4   :  { %v3266_v20 = vmul.f32 0.00390625, %v3128_v9  ;;  %7325 = vst [vmem:[#allocation27_spill] sm:$0xff] %v6513_v48  ;;  %v6516_v17 = vadd.f32 %v6198_v41, %v2634_v0 }
 0x3c5   :  { %v6507_v10 = vsub.f32 %v6057_v34, %v2903_v51  ;;  %v6510_v27 = vsub.f32 %v6064_v1, %v2903_v51  ;;  %v3186_v21 = vadd.f32 %v3069_v47, %v3068_v49  ;;  %v2636_v1 = vld [vmem:[#allocation5 + $0x2e8] sm:$0xff]  ;;  %v7328_v49 = vld [vmem:[#allocation38_spill] sm:$0xff] }
 0x3c6   :  { %7326 = vst [vmem:[#allocation28_spill] sm:$0xff] %v6516_v17  ;;  %v3314_v22 = vadd.f32 1e-12, %v3266_v20  ;;  %v3131_v9 = vpop.xlane.xlu1 %3130 }
 0x3c7   :  { %7323 = vst [vmem:[#allocation25_spill] sm:$0xff] %v6507_v10  ;;  %7324 = vst [vmem:[#allocation26_spill] sm:$0xff] %v6510_v27  ;;  %v3267_v4 = vmul.f32 0.00390625, %v3131_v9  ;;  %v2809_v44 = vpop.xlane.xlu0 %2808  ;;  %v3070_v45 = vmul.f32 %v6507_v10, %v6507_v10  ;;  %v3071_v34 = vmul.f32 %v6510_v27, %v6510_v27  ;;  %3187 = vadd.xlane.f32.xlu0 %v3186_v21 }
 0x3c8   :  { %4982 = vrsqrt.f32 %v3314_v22  ;;  %v2904_v51 = vmul.f32 0.00390625, %v2809_v44  ;;  %v2867_v10 = vadd.f32 %v6504_v40, %v6501_v33  ;;  %v2870_v27 = vadd.f32 %v6516_v17, %v6513_v48 }
 0x3c9   :  { %v3315_v6 = vadd.f32 1e-12, %v3267_v4  ;;  %v3189_v41 = vadd.f32 %v3071_v34, %v3070_v45  ;;  %v4979_v0 = vpop.eup %4978  ;;  %v6533_v22 = vadd.f32 %v6232_v14, %v2635_v13  ;;  %v6536_v21 = vadd.f32 %v6242_v18, %v2636_v1  ;;  %v2638_v45 = vld [vmem:[#allocation5 + $0x2f8] sm:$0xff] }
 0x3ca   :  { %v6523_v20 = vsub.f32 %v6099_v60, %v2904_v51  ;;  %v6526_v47 = vsub.f32 %v7328_v49, %v2904_v51  ;;  %v2812_v9 = vpop.xlane.xlu1 %2811  ;;  %v6539_v44 = vadd.f32 %v6246_v56, %v2637_v25  ;;  %v7330_v49 = vld [vmem:[#allocation29_spill] sm:$0xff]  ;;  %v7331_v56 = vld [vmem:[#allocation30_spill] sm:$0xff] }
 0x3cb   :  { %4984 = vrsqrt.f32 %v3315_v6  ;;  %v2905_v4 = vmul.f32 0.00390625, %v2812_v9  ;;  %v3134_v60 = vpop.xlane.xlu0 %3133  ;;  %3190 = vadd.xlane.f32.xlu1 %v3189_v41  ;;  %2868 = vadd.xlane.f32.xlu0 %v2867_v10  ;;  %v3408_v18 = vmul.f32 %v4979_v0, %v7330_v49  ;;  %v3409_v25 = vmul.f32 %v4979_v0, %v7331_v56  ;;  %v7332_v41 = vld [vmem:[#allocation32_spill] sm:$0xff] }
 0x3cc   :  { %7327 = vst [vmem:[#allocation75_spill] sm:$0xff] %v6523_v20  ;;  %7329 = vst [vmem:[#allocation76_spill] sm:$0xff] %v6526_v47  ;;  %v3268_v34 = vmul.f32 0.00390625, %v3134_v60  ;;  %v3072_v51 = vmul.f32 %v6523_v20, %v6523_v20  ;;  %v3073_v14 = vmul.f32 %v6526_v47, %v6526_v47  ;;  %v7333_v20 = vld [vmem:[#allocation33_spill] sm:$0xff]  ;;  %v6556_v47 = vadd.f32 %v6250_v7, %v2638_v45 }
 0x3cd   :  { %v4981_v13 = vpop.eup %4980  ;;  %v6547_v1 = vsub.f32 %v6109_v62, %v2905_v4  ;;  %v6550_v6 = vsub.f32 %v6112_v24, %v2905_v4 }
 0x3ce   :  { %v3410_v9 = vmul.f32 %v4981_v13, %v7332_v41  ;;  %v3316_v10 = vadd.f32 1e-12, %v3268_v34  ;;  %v3137_v60 = vpop.xlane.xlu1 %3136  ;;  %v3192_v46 = vadd.f32 %v3073_v14, %v3072_v51  ;;  %v3411_v17 = vmul.f32 %v4981_v13, %v7333_v20 }
 0x3cf   :  { %v3269_v48 = vmul.f32 0.00390625, %v3137_v60  ;;  %v2815_v49 = vpop.xlane.xlu0 %2814  ;;  %2871 = vadd.xlane.f32.xlu1 %v2870_v27  ;;  %v3074_v62 = vmul.f32 %v6547_v1, %v6547_v1  ;;  %v3075_v24 = vmul.f32 %v6550_v6, %v6550_v6  ;;  %v2873_v13 = vadd.f32 %v6536_v21, %v6533_v22  ;;  %v7335_v60 = vld [vmem:[#allocation34_spill] sm:$0xff] }
 0x3d0   :  { %4986 = vrsqrt.f32 %v3316_v10  ;;  %v2906_v0 = vmul.f32 0.00390625, %v2815_v49  ;;  %3193 = vadd.xlane.f32.xlu0 %v3192_v46  ;;  %v3505_v4 = vpack.c.bf16 %v3411_v17, %v3409_v25  ;;  %v3504_v34 = vpack.c.bf16 %v3410_v9, %v3408_v18  ;;  %v7334_v9 = vld [vmem:[#allocation35_spill] sm:$0xff] }
 0x3d1   :  { %v3317_v51 = vadd.f32 1e-12, %v3269_v48  ;;  %v3195_v14 = vadd.f32 %v3075_v24, %v3074_v62  ;;  %v2876_v48 = vadd.f32 %v6556_v47, %v6539_v44 }
 0x3d2   :  { %v4983_v20 = vpop.eup %4982  ;;  %v6563_v7 = vsub.f32 %v6155_v63, %v2906_v0  ;;  %v6566_v45 = vsub.f32 %v6158_v39, %v2906_v0  ;;  %v2818_v27 = vpop.xlane.xlu1 %2817  ;;  %3794 = vmatprep.mubr.bf16.mxu1 %v3505_v4  ;;  %v7336_v4 = vld [vmem:[#allocation37_spill] sm:$0xff] }
 0x3d3   :  { %4988 = vrsqrt.f32 %v3317_v51  ;;  %v2907_v56 = vmul.f32 0.00390625, %v2818_v27  ;;  %v3140_v41 = vpop.xlane.xlu0 %3139  ;;  %3196 = vadd.xlane.f32.xlu1 %v3195_v14  ;;  %3795 = vmatmul.mubr.bf16.vlgmr.msra.gmra.mrb[96].mxu1 %v3504_v34  ;;  %v3413_v10 = vmul.f32 %v4983_v20, %v7334_v9  ;;  %v3412_v49 = vmul.f32 %v4983_v20, %v7335_v60  ;;  %v7337_v51 = vld [vmem:[#allocation36_spill] sm:$0xff] }
 0x3d4   :  { %v3270_v46 = vmul.f32 0.00390625, %v3140_v41  ;;  %2874 = vadd.xlane.f32.xlu0 %v2873_v13  ;;  %v3076_v63 = vmul.f32 %v6563_v7, %v6563_v7  ;;  %v3077_v39 = vmul.f32 %v6566_v45, %v6566_v45 }
 0x3d5   :  { %v4985_v17 = vpop.eup %4984  ;;  %v6577_v18 = vsub.f32 %v6161_v43, %v2907_v56  ;;  %v6580_v25 = vsub.f32 %v6164_v37, %v2907_v56 }
 0x3d6   :  { %v3318_v62 = vadd.f32 1e-12, %v3270_v46  ;;  %v3143_v24 = vpop.xlane.xlu1 %3142  ;;  %v3198_v0 = vadd.f32 %v3077_v39, %v3076_v63  ;;  %v3415_v34 = vmul.f32 %v4985_v17, %v7336_v4  ;;  %v3414_v14 = vmul.f32 %v4985_v17, %v7337_v51  ;;  %v7338_v4 = vld [vmem:[#allocation40_spill] sm:$0xff]  ;;  %v7339_v51 = vld [vmem:[#allocation39_spill] sm:$0xff] }
 0x3d7   :  { %v3271_v27 = vmul.f32 0.00390625, %v3143_v24  ;;  %v2821_v13 = vpop.xlane.xlu0 %2820  ;;  %2877 = vadd.xlane.f32.xlu1 %v2876_v48  ;;  %v3078_v43 = vmul.f32 %v6577_v18, %v6577_v18  ;;  %v3079_v37 = vmul.f32 %v6580_v25, %v6580_v25 }
 0x3d8   :  { %4990 = vrsqrt.f32 %v3318_v62  ;;  %v2908_v56 = vmul.f32 0.00390625, %v2821_v13  ;;  %3199 = vadd.xlane.f32.xlu0 %v3198_v0  ;;  %v3507_v20 = vpack.c.bf16 %v3415_v34, %v3413_v10  ;;  %v3506_v41 = vpack.c.bf16 %v3414_v14, %v3412_v49 }
 0x3d9   :  { %v3319_v46 = vadd.f32 1e-12, %v3271_v27  ;;  %v3201_v63 = vadd.f32 %v3079_v37, %v3078_v43  ;;  %v7340_v37 = vld [vmem:[#allocation46_spill] sm:$0xff] }
 0x3da   :  { %v4987_v39 = vpop.eup %4986  ;;  %v6591_v9 = vsub.f32 %v6207_v31, %v2908_v56  ;;  %v6594_v17 = vsub.f32 %v6210_v38, %v2908_v56  ;;  %v2824_v48 = vpop.xlane.xlu1 %2823  ;;  %3804 = vmatprep.mubr.bf16.mxu1 %v3507_v20  ;;  %v7341_v20 = vld [vmem:[#allocation41_spill] sm:$0xff] }
 0x3db   :  { %4992 = vrsqrt.f32 %v3319_v46  ;;  %v2909_v60 = vmul.f32 0.00390625, %v2824_v48  ;;  %v3146_v24 = vpop.xlane.xlu0 %3145  ;;  %3202 = vadd.xlane.f32.xlu1 %v3201_v63  ;;  %3805 = vmatmul.mubr.bf16.gmra.mrb[100].mxu1 %v3506_v41  ;;  %v3417_v34 = vmul.f32 %v4987_v39, %v7338_v4  ;;  %v3416_v14 = vmul.f32 %v4987_v39, %v7339_v51 }
 0x3dc   :  { %v3272_v62 = vmul.f32 0.00390625, %v3146_v24  ;;  %v3080_v10 = vmul.f32 %v6591_v9, %v6591_v9  ;;  %v3081_v49 = vmul.f32 %v6594_v17, %v6594_v17 }
 0x3dd   :  { %v4989_v0 = vpop.eup %4988  ;;  %v6601_v31 = vsub.f32 %v6215_v16, %v2909_v60  ;;  %v6604_v38 = vsub.f32 %v6218_v2, %v2909_v60 }
 0x3de   :  { %v3320_v27 = vadd.f32 1e-12, %v3272_v62  ;;  %v3149_v13 = vpop.xlane.xlu1 %3148  ;;  %v3204_v43 = vadd.f32 %v3081_v49, %v3080_v10  ;;  %v3419_v56 = vmul.f32 %v4989_v0, %v7340_v37  ;;  %v3418_v41 = vmul.f32 %v4989_v0, %v7341_v20  ;;  %v7342_v37 = vld [vmem:[#allocation43_spill] sm:$0xff]  ;;  %v7343_v20 = vld [vmem:[#allocation42_spill] sm:$0xff] }
 0x3df   :  { %v3273_v46 = vmul.f32 0.00390625, %v3149_v13  ;;  %v2827_v63 = vpop.xlane.xlu0 %2826  ;;  %v3082_v16 = vmul.f32 %v6601_v31, %v6601_v31  ;;  %v3083_v2 = vmul.f32 %v6604_v38, %v6604_v38 }
 0x3e0   :  { %4994 = vrsqrt.f32 %v3320_v27  ;;  %v2910_v48 = vmul.f32 0.00390625, %v2827_v63  ;;  %3205 = vadd.xlane.f32.xlu0 %v3204_v43  ;;  %v3509_v60 = vpack.c.bf16 %v3419_v56, %v3417_v34  ;;  %v3508_v39 = vpack.c.bf16 %v3418_v41, %v3416_v14 }
 0x3e1   :  { %v3321_v24 = vadd.f32 1e-12, %v3273_v46  ;;  %v3207_v62 = vadd.f32 %v3083_v2, %v3082_v16  ;;  %v7344_v2 = vld [vmem:[#allocation45_spill] sm:$0xff] }
 0x3e2   :  { %v4991_v10 = vpop.eup %4990  ;;  %v6615_v49 = vsub.f32 %v6259_v23, %v2910_v48  ;;  %v6618_v0 = vsub.f32 %v6262_v5, %v2910_v48  ;;  %v2830_v4 = vpop.xlane.xlu1 %2829  ;;  %3814 = vmatprep.mubr.bf16.mxu1 %v3509_v60  ;;  %v7345_v60 = vld [vmem:[#allocation44_spill] sm:$0xff] }
 0x3e3   :  { %4996 = vrsqrt.f32 %v3321_v24  ;;  %v2911_v51 = vmul.f32 0.00390625, %v2830_v4  ;;  %v3152_v13 = vpop.xlane.xlu0 %3151  ;;  %3208 = vadd.xlane.f32.xlu1 %v3207_v62  ;;  %3815 = vmatmul.mubr.bf16.gmra.mrb[104].mxu1 %v3508_v39  ;;  %v3421_v56 = vmul.f32 %v4991_v10, %v7342_v37  ;;  %v3420_v41 = vmul.f32 %v4991_v10, %v7343_v20 }
 0x3e4   :  { %v3274_v27 = vmul.f32 0.00390625, %v3152_v13  ;;  %v3084_v34 = vmul.f32 %v6615_v49, %v6615_v49  ;;  %v3085_v14 = vmul.f32 %v6618_v0, %v6618_v0 }
 0x3e5   :  { %v4993_v43 = vpop.eup %4992  ;;  %v6625_v23 = vsub.f32 %v6265_v53, %v2911_v51  ;;  %v6628_v5 = vsub.f32 %v6268_v36, %v2911_v51 }
 0x3e6   :  { %v3322_v46 = vadd.f32 1e-12, %v3274_v27  ;;  %v3155_v63 = vpop.xlane.xlu1 %3154  ;;  %v3210_v16 = vadd.f32 %v3085_v14, %v3084_v34  ;;  %v3423_v48 = vmul.f32 %v4993_v43, %v7344_v2  ;;  %v3422_v39 = vmul.f32 %v4993_v43, %v7345_v60  ;;  %v7346_v2 = vld [vmem:[#allocation48_spill] sm:$0xff]  ;;  %v7347_v60 = vld [vmem:[#allocation47_spill] sm:$0xff] }
 0x3e7   :  { %v3275_v24 = vmul.f32 0.00390625, %v3155_v63  ;;  %v2833_v62 = vpop.xlane.xlu0 %2832  ;;  %v3086_v53 = vmul.f32 %v6625_v23, %v6625_v23  ;;  %v3087_v36 = vmul.f32 %v6628_v5, %v6628_v5 }
 0x3e8   :  { %4998 = vrsqrt.f32 %v3322_v46  ;;  %v2912_v4 = vmul.f32 0.00390625, %v2833_v62  ;;  %3211 = vadd.xlane.f32.xlu0 %v3210_v16  ;;  %v3511_v51 = vpack.c.bf16 %v3423_v48, %v3421_v56  ;;  %v3510_v10 = vpack.c.bf16 %v3422_v39, %v3420_v41 }
 0x3e9   :  { %v3323_v13 = vadd.f32 1e-12, %v3275_v24  ;;  %v3213_v27 = vadd.f32 %v3087_v36, %v3086_v53  ;;  %v7348_v36 = vld [vmem:[#allocation50_spill] sm:$0xff] }
 0x3ea   :  { %v4995_v34 = vpop.eup %4994  ;;  %v6639_v14 = vsub.f32 %v6295_v57, %v2912_v4  ;;  %v6642_v43 = vsub.f32 %v6298_v42, %v2912_v4  ;;  %v2836_v37 = vpop.xlane.xlu1 %2835  ;;  %3824 = vmatprep.mubr.bf16.mxu1 %v3511_v51  ;;  %v7349_v51 = vld [vmem:[#allocation49_spill] sm:$0xff] }
 0x3eb   :  { %5000 = vrsqrt.f32 %v3323_v13  ;;  %v2913_v20 = vmul.f32 0.00390625, %v2836_v37  ;;  %v3158_v63 = vpop.xlane.xlu0 %3157  ;;  %3214 = vadd.xlane.f32.xlu1 %v3213_v27  ;;  %3825 = vmatmul.mubr.bf16.gmra.mrb[108].mxu1 %v3510_v10  ;;  %v3425_v48 = vmul.f32 %v4995_v34, %v7346_v2  ;;  %v3424_v39 = vmul.f32 %v4995_v34, %v7347_v60 }
 0x3ec   :  { %v3276_v46 = vmul.f32 0.00390625, %v3158_v63  ;;  %v3088_v56 = vmul.f32 %v6639_v14, %v6639_v14  ;;  %v3089_v41 = vmul.f32 %v6642_v43, %v6642_v43 }
 0x3ed   :  { %v4997_v16 = vpop.eup %4996  ;;  %v6649_v57 = vsub.f32 %v6301_v35, %v2913_v20  ;;  %v6652_v42 = vsub.f32 %v6304_v30, %v2913_v20 }
 0x3ee   :  { %v3324_v24 = vadd.f32 1e-12, %v3276_v46  ;;  %v3161_v62 = vpop.xlane.xlu1 %3160  ;;  %v3216_v53 = vadd.f32 %v3089_v41, %v3088_v56  ;;  %v3427_v4 = vmul.f32 %v4997_v16, %v7348_v36  ;;  %v3426_v10 = vmul.f32 %v4997_v16, %v7349_v51  ;;  %v7350_v41 = vld [vmem:[#allocation59_spill] sm:$0xff]  ;;  %v7352_v16 = vld [vmem:[#allocation60_spill] sm:$0xff] }
 0x3ef   :  { %v3277_v13 = vmul.f32 0.00390625, %v3161_v62  ;;  %v2839_v27 = vpop.xlane.xlu0 %2838  ;;  %v3090_v35 = vmul.f32 %v6649_v57, %v6649_v57  ;;  %v3091_v30 = vmul.f32 %v6652_v42, %v6652_v42 }
 0x3f0   :  { %5002 = vrsqrt.f32 %v3324_v24  ;;  %v2914_v37 = vmul.f32 0.00390625, %v2839_v27  ;;  %3217 = vadd.xlane.f32.xlu0 %v3216_v53  ;;  %v3513_v20 = vpack.c.bf16 %v3427_v4, %v3425_v48  ;;  %v3512_v34 = vpack.c.bf16 %v3426_v10, %v3424_v39  ;;  %v7354_v4 = vld [vmem:[#allocation61_spill] sm:$0xff] }
 0x3f1   :  { %v3325_v63 = vadd.f32 1e-12, %v3277_v13  ;;  %v3219_v46 = vadd.f32 %v3091_v30, %v3090_v35  ;;  %v7355_v13 = vld [vmem:[#allocation62_spill] sm:$0xff]  ;;  %v7356_v35 = vld [vmem:[#allocation52_spill] sm:$0xff] }
 0x3f2   :  { %v4999_v56 = vpop.eup %4998  ;;  %v6663_v2 = vsub.f32 %v7350_v41, %v2914_v37  ;;  %v6666_v60 = vsub.f32 %v7352_v16, %v2914_v37  ;;  %v2842_v62 = vpop.xlane.xlu1 %2841  ;;  %3834 = vmatprep.mubr.bf16.mxu1 %v3513_v20  ;;  %v7357_v37 = vld [vmem:[#allocation51_spill] sm:$0xff]  ;;  %v7358_v41 = vld [vmem:[#allocation54_spill] sm:$0xff] }
 0x3f3   :  { %5004 = vrsqrt.f32 %v3325_v63  ;;  %v2915_v36 = vmul.f32 0.00390625, %v2842_v62  ;;  %v3164_v51 = vpop.xlane.xlu0 %3163  ;;  %3220 = vadd.xlane.f32.xlu1 %v3219_v46  ;;  %3835 = vmatmul.mubr.bf16.gmra.mrb[112].mxu1 %v3512_v34  ;;  %v3429_v30 = vmul.f32 %v4999_v56, %v7356_v35  ;;  %v3428_v20 = vmul.f32 %v4999_v56, %v7357_v37  ;;  %v7359_v62 = vld [vmem:[#allocation53_spill] sm:$0xff] }
 0x3f4   :  { %7351 = vst [vmem:[#allocation77_spill] sm:$0xff] %v6663_v2  ;;  %7353 = vst [vmem:[#allocation78_spill] sm:$0xff] %v6666_v60  ;;  %v3278_v24 = vmul.f32 0.00390625, %v3164_v51  ;;  %v3092_v48 = vmul.f32 %v6663_v2, %v6663_v2  ;;  %v3093_v39 = vmul.f32 %v6666_v60, %v6666_v60 }
 0x3f5   :  { %v5001_v53 = vpop.eup %5000  ;;  %v6673_v10 = vsub.f32 %v7354_v4, %v2915_v36  ;;  %v6676_v27 = vsub.f32 %v7355_v13, %v2915_v36 }
 0x3f6   :  { %v3326_v63 = vadd.f32 1e-12, %v3278_v24  ;;  %v3167_v34 = vpop.xlane.xlu1 %3166  ;;  %v3222_v46 = vadd.f32 %v3093_v39, %v3092_v48  ;;  %v3431_v16 = vmul.f32 %v5001_v53, %v7358_v41  ;;  %v3430_v51 = vmul.f32 %v5001_v53, %v7359_v62 }
 0x3f7   :  { %v3279_v2 = vmul.f32 0.00390625, %v3167_v34  ;;  %v2845_v60 = vpop.xlane.xlu0 %2844  ;;  %v3094_v4 = vmul.f32 %v6673_v10, %v6673_v10  ;;  %v3095_v36 = vmul.f32 %v6676_v27, %v6676_v27 }
 0x3f8   :  { %5006 = vrsqrt.f32 %v3326_v63  ;;  %v2916_v13 = vmul.f32 0.00390625, %v2845_v60  ;;  %3223 = vadd.xlane.f32.xlu0 %v3222_v46  ;;  %v3515_v35 = vpack.c.bf16 %v3431_v16, %v3429_v30  ;;  %v3514_v56 = vpack.c.bf16 %v3430_v51, %v3428_v20  ;;  %v7362_v46 = vld [vmem:[#allocation56_spill] sm:$0xff]  ;;  %v7363_v51 = vld [vmem:[#allocation55_spill] sm:$0xff] }
 0x3f9   :  { %v3327_v24 = vadd.f32 1e-12, %v3279_v2  ;;  %v3225_v37 = vadd.f32 %v3095_v36, %v3094_v4 }
 0x3fa   :  { %v5003_v48 = vpop.eup %5002  ;;  %v6687_v39 = vsub.f32 %v6367_v12, %v2916_v13  ;;  %v6690_v53 = vsub.f32 %v6370_v11, %v2916_v13  ;;  %v2848_v34 = vpop.xlane.xlu1 %2847  ;;  %3844 = vmatprep.mubr.bf16.mxu1 %v3515_v35  ;;  %v7361_v11 = vld [vmem:[#allocation64_spill] sm:$0xff] }
 0x3fb   :  { %5008 = vrsqrt.f32 %v3327_v24  ;;  %v2917_v41 = vmul.f32 0.00390625, %v2848_v34  ;;  %v3170_v62 = vpop.xlane.xlu0 %3169  ;;  %3226 = vadd.xlane.f32.xlu1 %v3225_v37  ;;  %3845 = vmatmul.mubr.bf16.gmra.mrb[116].mxu1 %v3514_v56  ;;  %v3433_v16 = vmul.f32 %v5003_v48, %v7362_v46  ;;  %v3432_v4 = vmul.f32 %v5003_v48, %v7363_v51  ;;  %v7364_v56 = vld [vmem:[#allocation58_spill] sm:$0xff]  ;;  %v7365_v37 = vld [vmem:[#allocation57_spill] sm:$0xff] }
 0x3fc   :  { %7360 = vst [vmem:[#allocation31_spill] sm:$0xff] %v6687_v39  ;;  %v3280_v60 = vmul.f32 0.00390625, %v3170_v62  ;;  %v3096_v30 = vmul.f32 %v6687_v39, %v6687_v39  ;;  %v3097_v2 = vmul.f32 %v6690_v53, %v6690_v53 }
 0x3fd   :  { %v5005_v20 = vpop.eup %5004  ;;  %v6697_v12 = vsub.f32 %v6373_v59, %v2917_v41  ;;  %v6700_v63 = vsub.f32 %v7361_v11, %v2917_v41 }
 0x3fe   :  { %v3328_v36 = vadd.f32 1e-12, %v3280_v60  ;;  %v3173_v13 = vpop.xlane.xlu1 %3172  ;;  %v3228_v35 = vadd.f32 %v3097_v2, %v3096_v30  ;;  %v3435_v24 = vmul.f32 %v5005_v20, %v7364_v56  ;;  %v3434_v34 = vmul.f32 %v5005_v20, %v7365_v37 }
 0x3ff   :  { %v3281_v62 = vmul.f32 0.00390625, %v3173_v13  ;;  %v2851_v39 = vpop.xlane.xlu0 %2850  ;;  %v3098_v59 = vmul.f32 %v6697_v12, %v6697_v12  ;;  %v3099_v41 = vmul.f32 %v6700_v63, %v6700_v63 }
 0x400   :  { %5010 = vrsqrt.f32 %v3328_v36  ;;  %v2918_v11 = vmul.f32 0.00390625, %v2851_v39  ;;  %3229 = vadd.xlane.f32.xlu0 %v3228_v35  ;;  %v3517_v46 = vpack.c.bf16 %v3435_v24, %v3433_v16  ;;  %v3516_v48 = vpack.c.bf16 %v3434_v34, %v3432_v4  ;;  %v7366_v35 = vld [vmem:[#allocation21_spill] sm:$0xff]  ;;  %v7367_v34 = vld [vmem:[#allocation20_spill] sm:$0xff] }
 0x401   :  { %v3329_v60 = vadd.f32 1e-12, %v3281_v62  ;;  %v3231_v51 = vadd.f32 %v3099_v41, %v3098_v59 }
 0x402   :  { %v5007_v30 = vpop.eup %5006  ;;  %v6711_v2 = vsub.f32 %v6403_v29, %v2918_v11  ;;  %v6714_v20 = vsub.f32 %v6406_v32, %v2918_v11  ;;  %v2854_v13 = vpop.xlane.xlu1 %2853  ;;  %3854 = vmatprep.mubr.bf16.mxu1 %v3517_v46  ;;  %v7368_v46 = vld [vmem:[#allocation63_spill] sm:$0xff] }
 0x403   :  { %5012 = vrsqrt.f32 %v3329_v60  ;;  %v2919_v56 = vmul.f32 0.00390625, %v2854_v13  ;;  %v3176_v37 = vpop.xlane.xlu0 %3175  ;;  %3232 = vadd.xlane.f32.xlu1 %v3231_v51  ;;  %3855 = vmatmul.mubr.bf16.gmra.mrb[120].mxu1 %v3516_v48  ;;  %v3437_v24 = vmul.f32 %v5007_v30, %v7366_v35  ;;  %v3436_v62 = vmul.f32 %v5007_v30, %v7367_v34  ;;  %v7369_v60 = vld [vmem:[#allocation22_spill] sm:$0xff] }
 0x404   :  { %v3282_v39 = vmul.f32 0.00390625, %v3176_v37  ;;  %v3100_v16 = vmul.f32 %v6711_v2, %v6711_v2  ;;  %v3101_v4 = vmul.f32 %v6714_v20, %v6714_v20 }
 0x405   :  { %v5009_v36 = vpop.eup %5008  ;;  %v6721_v29 = vsub.f32 %v6409_v19, %v2919_v56  ;;  %v6724_v32 = vsub.f32 %v6412_v52, %v2919_v56 }
 0x406   :  { %v3330_v59 = vadd.f32 1e-12, %v3282_v39  ;;  %v3179_v41 = vpop.xlane.xlu1 %3178  ;;  %v3234_v11 = vadd.f32 %v3101_v4, %v3100_v16  ;;  %v3439_v48 = vmul.f32 %v5009_v36, %v7368_v46  ;;  %v3438_v51 = vmul.f32 %v5009_v36, %v7369_v60 }
 0x407   :  { %v3283_v13 = vmul.f32 0.00390625, %v3179_v41  ;;  %v2857_v37 = vpop.xlane.xlu0 %2856  ;;  %v3102_v19 = vmul.f32 %v6721_v29, %v6721_v29  ;;  %v3103_v52 = vmul.f32 %v6724_v32, %v6724_v32 }
 0x408   :  { %5014 = vrsqrt.f32 %v3330_v59  ;;  %v2920_v56 = vmul.f32 0.00390625, %v2857_v37  ;;  %3235 = vadd.xlane.f32.xlu0 %v3234_v11  ;;  %v3519_v35 = vpack.c.bf16 %v3439_v48, %v3437_v24  ;;  %v3518_v30 = vpack.c.bf16 %v3438_v51, %v3436_v62  ;;  %v7371_v48 = vld [vmem:[#allocation66_spill] sm:$0xff] }
 0x409   :  { %v3331_v39 = vadd.f32 1e-12, %v3283_v13  ;;  %v3237_v34 = vadd.f32 %v3103_v52, %v3102_v19  ;;  %v7372_v13 = vld [vmem:[#allocation65_spill] sm:$0xff] }
 0x40a   :  { %v5011_v16 = vpop.eup %5010  ;;  %v6735_v4 = vsub.f32 %v6439_v58, %v2920_v56  ;;  %v6738_v36 = vsub.f32 %v6442_v3, %v2920_v56  ;;  %v2860_v41 = vpop.xlane.xlu1 %2859  ;;  %3864 = vmatprep.mubr.bf16.mxu1 %v3519_v35  ;;  %v7373_v35 = vld [vmem:[#allocation67_spill] sm:$0xff] }
 0x40b   :  { %5016 = vrsqrt.f32 %v3331_v39  ;;  %v2921_v46 = vmul.f32 0.00390625, %v2860_v41  ;;  %v3182_v60 = vpop.xlane.xlu0 %3181  ;;  %3238 = vadd.xlane.f32.xlu1 %v3237_v34  ;;  %3865 = vmatmul.mubr.bf16.gmra.mrb[124].mxu1 %v3518_v30  ;;  %v3441_v51 = vmul.f32 %v5011_v16, %v7371_v48  ;;  %v3440_v37 = vmul.f32 %v5011_v16, %v7372_v13  ;;  %v7374_v39 = vld [vmem:[#allocation23_spill] sm:$0xff] }
 0x40c   :  { %7370 = vst [vmem:[#allocation79_spill] sm:$0xff] %v6735_v4  ;;  %v3284_v59 = vmul.f32 0.00390625, %v3182_v60  ;;  %v3104_v24 = vmul.f32 %v6735_v4, %v6735_v4  ;;  %v3105_v62 = vmul.f32 %v6738_v36, %v6738_v36 }
 0x40d   :  { %v5013_v11 = vpop.eup %5012  ;;  %v6745_v58 = vsub.f32 %v6445_v55, %v2921_v46  ;;  %v6748_v3 = vsub.f32 %v6448_v54, %v2921_v46 }
 0x40e   :  { %v3332_v19 = vadd.f32 1e-12, %v3284_v59  ;;  %v3185_v52 = vpop.xlane.xlu1 %3184  ;;  %v3240_v56 = vadd.f32 %v3105_v62, %v3104_v24  ;;  %v3443_v30 = vmul.f32 %v5013_v11, %v7373_v35  ;;  %v3442_v34 = vmul.f32 %v5013_v11, %v7374_v39  ;;  %v7376_v39 = vld [vmem:[#allocation24_spill] sm:$0xff] }
 0x40f   :  { %v3285_v41 = vmul.f32 0.00390625, %v3185_v52  ;;  %v2863_v60 = vpop.xlane.xlu0 %2862  ;;  %v3106_v55 = vmul.f32 %v6745_v58, %v6745_v58  ;;  %v3107_v54 = vmul.f32 %v6748_v3, %v6748_v3 }
 0x410   :  { %v2922_v46 = vmul.f32 0.00390625, %v2863_v60  ;;  %3241 = vadd.xlane.f32.xlu0 %v3240_v56  ;;  %v3521_v48 = vpack.c.bf16 %v3443_v30, %v3441_v51  ;;  %v3520_v4 = vpack.c.bf16 %v3442_v34, %v3440_v37  ;;  %5018 = vrsqrt.f32 %v3332_v19  ;;  %v7378_v60 = vld [vmem:[#allocation70_spill] sm:$0xff] }
 0x411   :  { %v3333_v16 = vadd.f32 1e-12, %v3285_v41  ;;  %v3243_v59 = vadd.f32 %v3107_v54, %v3106_v55  ;;  %v7377_v41 = vld [vmem:[#allocation68_spill] sm:$0xff] }
 0x412   :  { %v5015_v24 = vpop.eup %5014  ;;  %v6759_v62 = vsub.f32 %v6475_v8, %v2922_v46  ;;  %v6762_v11 = vsub.f32 %v6478_v28, %v2922_v46  ;;  %v2866_v13 = vpop.xlane.xlu1 %2865  ;;  %3874 = vmatprep.mubr.bf16.mxu1 %v3521_v48  ;;  %v7375_v28 = vld [vmem:[#allocation69_spill] sm:$0xff] }
 0x413   :  { %5020 = vrsqrt.f32 %v3333_v16  ;;  %v2923_v52 = vmul.f32 0.00390625, %v2866_v13  ;;  %3244 = vadd.xlane.f32.xlu1 %v3243_v59  ;;  %3875 = vmatmul.mubr.bf16.gmra.mrb[128].mxu1 %v3520_v4  ;;  %v3445_v35 = vmul.f32 %v5015_v24, %v7375_v28  ;;  %v3444_v4 = vmul.f32 %v5015_v24, %v7377_v41 }
 0x414   :  { %v3108_v51 = vmul.f32 %v6759_v62, %v6759_v62  ;;  %v3109_v37 = vmul.f32 %v6762_v11, %v6762_v11 }
 0x415   :  { %v5017_v19 = vpop.eup %5016  ;;  %v6769_v56 = vsub.f32 %v6481_v26, %v2923_v52  ;;  %v6772_v8 = vsub.f32 %v6484_v61, %v2923_v52  ;;  %v7379_v52 = vld [vmem:[#allocation71_spill] sm:$0xff] }
 0x416   :  { %v3246_v30 = vadd.f32 %v3109_v37, %v3108_v51  ;;  %v3447_v34 = vmul.f32 %v5017_v19, %v7376_v39  ;;  %v3446_v55 = vmul.f32 %v5017_v19, %v7378_v60  ;;  %v7380_v37 = vld [vmem:[#allocation72_spill] sm:$0xff] }
 0x417   :  { %v3110_v54 = vmul.f32 %v6769_v56, %v6769_v56  ;;  %v3111_v46 = vmul.f32 %v6772_v8, %v6772_v8 }
 0x418   :  { %3247 = vadd.xlane.f32.xlu0 %v3246_v30  ;;  %v3523_v26 = vpack.c.bf16 %v3447_v34, %v3445_v35  ;;  %v3522_v48 = vpack.c.bf16 %v3446_v55, %v3444_v4  ;;  %v7381_v35 = vld [vmem:[#allocation16_spill] sm:$0xff]  ;;  %v7382_v30 = vld [vmem:[#allocation17_spill] sm:$0xff]  ;;  %v7384_v4 = vld [vmem:[#allocation18_spill] sm:$0xff] }
 0x419   :  { %v3249_v61 = vadd.f32 %v3111_v46, %v3110_v54  ;;  %v7383_v34 = vrot.slane %v7382_v30, %v7381_v35  ;;  %v6794_v60 = vrot.slane %v7384_v4, %v7381_v35 }
 0x41a   :  { %3884 = vmatprep.mubr.bf16.mxu1 %v3523_v26  ;;  %v5019_v16 = vpop.eup %5018 }
 0x41b   :  { %3250 = vadd.xlane.f32.xlu1 %v3249_v61  ;;  %3885 = vmatmul.mubr.bf16.gmra.mrb[132].mxu1 %v3522_v48  ;;  %v3449_v13 = vmul.f32 %v5019_v16, %v6454_v50  ;;  %v3448_v51 = vmul.f32 %v5019_v16, %v7379_v52  ;;  %v6790_v41 = vrot.slane %v7383_v34, %v7381_v35  ;;  %v7386_v35 = vld [vmem:[#allocation28_spill] sm:$0xff] }
 0x41d   :  { %v5021_v59 = vpop.eup %5020 }
 0x41e   :  { %v3451_v24 = vmul.f32 %v5021_v59, %v6462_v15  ;;  %v3450_v19 = vmul.f32 %v5021_v59, %v7380_v37 }
 0x420   :  { %v3525_v28 = vpack.c.bf16 %v3451_v24, %v3449_v13  ;;  %v3524_v39 = vpack.c.bf16 %v3450_v19, %v3448_v51 }
 0x422   :  { %3894 = vmatprep.mubr.bf16.mxu1 %v3525_v28  ;;  %v7385_v28 = vld [vmem:[#allocation27_spill] sm:$0xff] }
 0x423   :  { %3895 = vmatmul.mubr.bf16.gmra.mrb[136].mxu1 %v3524_v39 }
 0x454   :  { %v3188_v50 = vpop.xlane.xlu0 %3187 }
 0x455   :  { %v3286_v15 = vmul.f32 0.00390625, %v3188_v50 }
 0x457   :  { %v3334_v55 = vadd.f32 1e-12, %v3286_v15 }
 0x458   :  { %v3191_v54 = vpop.xlane.xlu1 %3190  ;;  %v2869_v26 = vpop.xlane.xlu0 %2868 }
 0x459   :  { %v3287_v46 = vmul.f32 0.00390625, %v3191_v54  ;;  %5022 = vrsqrt.f32 %v3334_v55  ;;  %v2924_v48 = vmul.f32 0.00390625, %v2869_v26 }
 0x45b   :  { %v3335_v61 = vadd.f32 1e-12, %v3287_v46  ;;  %v6797_v16 = vsub.f32 %v6501_v33, %v2924_v48  ;;  %v6800_v59 = vsub.f32 %v6504_v40, %v2924_v48 }
 0x45c   :  { %v2872_v13 = vpop.xlane.xlu1 %2871 }
 0x45d   :  { %5024 = vrsqrt.f32 %v3335_v61  ;;  %v2925_v24 = vmul.f32 0.00390625, %v2872_v13  ;;  %v3194_v52 = vpop.xlane.xlu0 %3193  ;;  %v3112_v37 = vmul.f32 %v6797_v16, %v6797_v16  ;;  %v3113_v19 = vmul.f32 %v6800_v59, %v6800_v59 }
 0x45e   :  { %v3288_v51 = vmul.f32 0.00390625, %v3194_v52 }
 0x45f   :  { %v6807_v39 = vsub.f32 %v7385_v28, %v2925_v24  ;;  %v6810_v33 = vsub.f32 %v7386_v35, %v2925_v24  ;;  %v3252_v34 = vadd.f32 %v3113_v19, %v3112_v37 }
 0x460   :  { %v3336_v30 = vadd.f32 1e-12, %v3288_v51  ;;  %v3197_v40 = vpop.xlane.xlu1 %3196 }
 0x461   :  { %v3289_v4 = vmul.f32 0.00390625, %v3197_v40  ;;  %v2875_v50 = vpop.xlane.xlu0 %2874  ;;  %v3114_v15 = vmul.f32 %v6807_v39, %v6807_v39  ;;  %v3115_v55 = vmul.f32 %v6810_v33, %v6810_v33  ;;  %3253 = vadd.xlane.f32.xlu0 %v3252_v34  ;;  %v7390_v34 = vld [vmem:[#allocation73_spill] sm:$0xff] }
 0x462   :  { %5026 = vrsqrt.f32 %v3336_v30  ;;  %v2926_v54 = vmul.f32 0.00390625, %v2875_v50 }
 0x463   :  { %v3337_v46 = vadd.f32 1e-12, %v3289_v4  ;;  %v3255_v26 = vadd.f32 %v3115_v55, %v3114_v15  ;;  %v5023_v48 = vpop.eup %5022 }
 0x464   :  { %v6817_v61 = vsub.f32 %v6533_v22, %v2926_v54  ;;  %v6820_v13 = vsub.f32 %v6536_v21, %v2926_v54  ;;  %v2878_v24 = vpop.xlane.xlu1 %2877  ;;  %v7389_v21 = vld [vmem:[#allocation74_spill] sm:$0xff]  ;;  %v3452_v4 = vmul.f32 %v5023_v48, %v7390_v34  ;;  %v7393_v34 = vld [vmem:[#allocation76_spill] sm:$0xff] }
 0x465   :  { %5028 = vrsqrt.f32 %v3337_v46  ;;  %v2927_v52 = vmul.f32 0.00390625, %v2878_v24  ;;  %v3200_v51 = vpop.xlane.xlu0 %3199  ;;  %3256 = vadd.xlane.f32.xlu1 %v3255_v26  ;;  %v3453_v40 = vmul.f32 %v5023_v48, %v7389_v21  ;;  %v7391_v54 = vld [vmem:[#allocation26_spill] sm:$0xff]  ;;  %v7392_v26 = vld [vmem:[#allocation25_spill] sm:$0xff] }
 0x466   :  { %7387 = vst [vmem:[#allocation80_spill] sm:$0xff] %v6817_v61  ;;  %v3290_v37 = vmul.f32 0.00390625, %v3200_v51  ;;  %v3116_v19 = vmul.f32 %v6817_v61, %v6817_v61  ;;  %v3117_v28 = vmul.f32 %v6820_v13, %v6820_v13 }
 0x467   :  { %v5025_v35 = vpop.eup %5024  ;;  %v6827_v30 = vsub.f32 %v6539_v44, %v2927_v52  ;;  %v6830_v22 = vsub.f32 %v6556_v47, %v2927_v52 }
 0x468   :  { %v3338_v50 = vadd.f32 1e-12, %v3290_v37  ;;  %v3203_v15 = vpop.xlane.xlu1 %3202  ;;  %v3258_v55 = vadd.f32 %v3117_v28, %v3116_v19  ;;  %v3455_v46 = vmul.f32 %v5025_v35, %v7391_v54  ;;  %v3454_v24 = vmul.f32 %v5025_v35, %v7392_v26 }
 0x469   :  { %7388 = vst [vmem:[#allocation81_spill] sm:$0xff] %v6827_v30  ;;  %v3291_v51 = vmul.f32 0.00390625, %v3203_v15  ;;  %v3118_v61 = vmul.f32 %v6827_v30, %v6827_v30  ;;  %v3119_v44 = vmul.f32 %v6830_v22, %v6830_v22 }
 0x46a   :  { %5030 = vrsqrt.f32 %v3338_v50  ;;  %3259 = vadd.xlane.f32.xlu0 %v3258_v55  ;;  %v3527_v47 = vpack.c.bf16 %v3455_v46, %v3453_v40  ;;  %v3526_v52 = vpack.c.bf16 %v3454_v24, %v3452_v4  ;;  %v7394_v50 = vld [vmem:[#allocation75_spill] sm:$0xff] }
 0x46b   :  { %v3339_v21 = vadd.f32 1e-12, %v3291_v51  ;;  %v3261_v48 = vadd.f32 %v3119_v44, %v3118_v61 }
 0x46c   :  { %v5027_v37 = vpop.eup %5026  ;;  %3904 = vmatprep.mubr.bf16.mxu1 %v3527_v47 }
 0x46d   :  { %5032 = vrsqrt.f32 %v3339_v21  ;;  %v3206_v19 = vpop.xlane.xlu0 %3205  ;;  %3262 = vadd.xlane.f32.xlu1 %v3261_v48  ;;  %3905 = vmatmul.mubr.bf16.gmra.mrb[140].mxu1 %v3526_v52  ;;  %v3457_v15 = vmul.f32 %v5027_v37, %v7393_v34  ;;  %v3456_v55 = vmul.f32 %v5027_v37, %v7394_v50 }
 0x46e   :  { %v3292_v28 = vmul.f32 0.00390625, %v3206_v19 }
 0x46f   :  { %v5029_v35 = vpop.eup %5028 }
 0x470   :  { %v3340_v54 = vadd.f32 1e-12, %v3292_v28  ;;  %v3209_v26 = vpop.xlane.xlu1 %3208  ;;  %v3459_v30 = vmul.f32 %v5029_v35, %v6550_v6  ;;  %v3458_v40 = vmul.f32 %v5029_v35, %v6547_v1 }
 0x471   :  { %v3293_v4 = vmul.f32 0.00390625, %v3209_v26 }
 0x472   :  { %5034 = vrsqrt.f32 %v3340_v54  ;;  %v3529_v61 = vpack.c.bf16 %v3459_v30, %v3457_v15  ;;  %v3528_v46 = vpack.c.bf16 %v3458_v40, %v3456_v55 }
 0x473   :  { %v3341_v24 = vadd.f32 1e-12, %v3293_v4 }
 0x474   :  { %v5031_v51 = vpop.eup %5030  ;;  %3914 = vmatprep.mubr.bf16.mxu1 %v3529_v61 }
 0x475   :  { %5036 = vrsqrt.f32 %v3341_v24  ;;  %v3212_v44 = vpop.xlane.xlu0 %3211  ;;  %3915 = vmatmul.mubr.bf16.gmra.mrb[144].mxu1 %v3528_v46  ;;  %v3461_v21 = vmul.f32 %v5031_v51, %v6566_v45  ;;  %v3460_v1 = vmul.f32 %v5031_v51, %v6563_v7 }
 0x476   :  { %v3294_v47 = vmul.f32 0.00390625, %v3212_v44 }
 0x477   :  { %v5033_v52 = vpop.eup %5032 }
 0x478   :  { %v3342_v48 = vadd.f32 1e-12, %v3294_v47  ;;  %v3215_v6 = vpop.xlane.xlu1 %3214  ;;  %v3463_v37 = vmul.f32 %v5033_v52, %v6580_v25  ;;  %v3462_v19 = vmul.f32 %v5033_v52, %v6577_v18 }
 0x479   :  { %v3295_v30 = vmul.f32 0.00390625, %v3215_v6 }
 0x47a   :  { %5038 = vrsqrt.f32 %v3342_v48  ;;  %v3531_v28 = vpack.c.bf16 %v3463_v37, %v3461_v21  ;;  %v3530_v35 = vpack.c.bf16 %v3462_v19, %v3460_v1 }
 0x47b   :  { %v3343_v34 = vadd.f32 1e-12, %v3295_v30 }
 0x47c   :  { %v5035_v15 = vpop.eup %5034  ;;  %3924 = vmatprep.mubr.bf16.mxu1 %v3531_v28 }
 0x47d   :  { %5040 = vrsqrt.f32 %v3343_v34  ;;  %v3218_v54 = vpop.xlane.xlu0 %3217  ;;  %3925 = vmatmul.mubr.bf16.gmra.mrb[148].mxu1 %v3530_v35  ;;  %v3465_v50 = vmul.f32 %v5035_v15, %v6594_v17  ;;  %v3464_v18 = vmul.f32 %v5035_v15, %v6591_v9 }
 0x47e   :  { %v3296_v26 = vmul.f32 0.00390625, %v3218_v54 }
 0x47f   :  { %v5037_v45 = vpop.eup %5036 }
 0x480   :  { %v3344_v55 = vadd.f32 1e-12, %v3296_v26  ;;  %v3221_v25 = vpop.xlane.xlu1 %3220  ;;  %v3467_v7 = vmul.f32 %v5037_v45, %v6604_v38  ;;  %v3466_v40 = vmul.f32 %v5037_v45, %v6601_v31 }
 0x481   :  { %v3297_v4 = vmul.f32 0.00390625, %v3221_v25 }
 0x482   :  { %5042 = vrsqrt.f32 %v3344_v55  ;;  %v3533_v61 = vpack.c.bf16 %v3467_v7, %v3465_v50  ;;  %v3532_v46 = vpack.c.bf16 %v3466_v40, %v3464_v18  ;;  %v7395_v40 = vld [vmem:[#allocation78_spill] sm:$0xff] }
 0x483   :  { %v3345_v24 = vadd.f32 1e-12, %v3297_v4 }
 0x484   :  { %v5039_v51 = vpop.eup %5038  ;;  %3934 = vmatprep.mubr.bf16.mxu1 %v3533_v61 }
 0x485   :  { %5044 = vrsqrt.f32 %v3345_v24  ;;  %v3224_v44 = vpop.xlane.xlu0 %3223  ;;  %3935 = vmatmul.mubr.bf16.gmra.mrb[152].mxu1 %v3532_v46  ;;  %v3469_v52 = vmul.f32 %v5039_v51, %v6618_v0  ;;  %v3468_v31 = vmul.f32 %v5039_v51, %v6615_v49  ;;  %v7396_v46 = vld [vmem:[#allocation77_spill] sm:$0xff] }
 0x486   :  { %v3298_v47 = vmul.f32 0.00390625, %v3224_v44 }
 0x487   :  { %v5041_v17 = vpop.eup %5040 }
 0x488   :  { %v3346_v21 = vadd.f32 1e-12, %v3298_v47  ;;  %v3227_v38 = vpop.xlane.xlu1 %3226  ;;  %v3471_v9 = vmul.f32 %v5041_v17, %v6628_v5  ;;  %v3470_v48 = vmul.f32 %v5041_v17, %v6625_v23 }
 0x489   :  { %v3299_v6 = vmul.f32 0.00390625, %v3227_v38 }
 0x48a   :  { %5046 = vrsqrt.f32 %v3346_v21  ;;  %v3535_v37 = vpack.c.bf16 %v3471_v9, %v3469_v52  ;;  %v3534_v1 = vpack.c.bf16 %v3470_v48, %v3468_v31 }
 0x48b   :  { %v3347_v19 = vadd.f32 1e-12, %v3299_v6 }
 0x48c   :  { %v5043_v30 = vpop.eup %5042  ;;  %3944 = vmatprep.mubr.bf16.mxu1 %v3535_v37  ;;  %v7397_v37 = vld [vmem:[#allocation31_spill] sm:$0xff] }
 0x48d   :  { %5048 = vrsqrt.f32 %v3347_v19  ;;  %v3230_v28 = vpop.xlane.xlu0 %3229  ;;  %3945 = vmatmul.mubr.bf16.gmra.mrb[156].mxu1 %v3534_v1  ;;  %v3473_v34 = vmul.f32 %v5043_v30, %v6642_v43  ;;  %v3472_v23 = vmul.f32 %v5043_v30, %v6639_v14 }
 0x48e   :  { %v3300_v35 = vmul.f32 0.00390625, %v3230_v28 }
 0x48f   :  { %v5045_v0 = vpop.eup %5044 }
 0x490   :  { %v3348_v15 = vadd.f32 1e-12, %v3300_v35  ;;  %v3233_v5 = vpop.xlane.xlu1 %3232  ;;  %v3475_v49 = vmul.f32 %v5045_v0, %v6652_v42  ;;  %v3474_v54 = vmul.f32 %v5045_v0, %v6649_v57 }
 0x491   :  { %v3301_v26 = vmul.f32 0.00390625, %v3233_v5 }
 0x492   :  { %5050 = vrsqrt.f32 %v3348_v15  ;;  %v3537_v45 = vpack.c.bf16 %v3475_v49, %v3473_v34  ;;  %v3536_v50 = vpack.c.bf16 %v3474_v54, %v3472_v23 }
 0x493   :  { %v3349_v55 = vadd.f32 1e-12, %v3301_v26 }
 0x494   :  { %v5047_v25 = vpop.eup %5046  ;;  %3954 = vmatprep.mubr.bf16.mxu1 %v3537_v45 }
 0x495   :  { %5052 = vrsqrt.f32 %v3349_v55  ;;  %v3236_v7 = vpop.xlane.xlu0 %3235  ;;  %3955 = vmatmul.mubr.bf16.gmra.mrb[160].mxu1 %v3536_v50  ;;  %v3477_v4 = vmul.f32 %v5047_v25, %v7395_v40  ;;  %v3476_v57 = vmul.f32 %v5047_v25, %v7396_v46 }
 0x496   :  { %v3302_v18 = vmul.f32 0.00390625, %v3236_v7 }
 0x497   :  { %v5049_v43 = vpop.eup %5048 }
 0x498   :  { %v3350_v61 = vadd.f32 1e-12, %v3302_v18  ;;  %v3239_v42 = vpop.xlane.xlu1 %3238  ;;  %v3479_v14 = vmul.f32 %v5049_v43, %v6676_v27  ;;  %v3478_v24 = vmul.f32 %v5049_v43, %v6673_v10 }
 0x499   :  { %v3303_v51 = vmul.f32 0.00390625, %v3239_v42 }
 0x49a   :  { %5054 = vrsqrt.f32 %v3350_v61  ;;  %v3539_v44 = vpack.c.bf16 %v3479_v14, %v3477_v4  ;;  %v3538_v47 = vpack.c.bf16 %v3478_v24, %v3476_v57 }
 0x49b   :  { %v3351_v17 = vadd.f32 1e-12, %v3303_v51 }
 0x49c   :  { %v5051_v52 = vpop.eup %5050  ;;  %3964 = vmatprep.mubr.bf16.mxu1 %v3539_v44  ;;  %v7398_v44 = vld [vmem:[#allocation79_spill] sm:$0xff] }
 0x49d   :  { %5056 = vrsqrt.f32 %v3351_v17  ;;  %v3242_v21 = vpop.xlane.xlu0 %3241  ;;  %3965 = vmatmul.mubr.bf16.gmra.mrb[164].mxu1 %v3538_v47  ;;  %v3481_v31 = vmul.f32 %v5051_v52, %v6690_v53  ;;  %v3480_v10 = vmul.f32 %v5051_v52, %v7397_v37 }
 0x49e   :  { %v3304_v38 = vmul.f32 0.00390625, %v3242_v21 }
 0x49f   :  { %v5053_v9 = vpop.eup %5052 }
 0x4a0   :  { %v3352_v48 = vadd.f32 1e-12, %v3304_v38  ;;  %v3245_v27 = vpop.xlane.xlu1 %3244  ;;  %v3483_v6 = vmul.f32 %v5053_v9, %v6700_v63  ;;  %v3482_v1 = vmul.f32 %v5053_v9, %v6697_v12 }
 0x4a1   :  { %v3305_v19 = vmul.f32 0.00390625, %v3245_v27 }
 0x4a2   :  { %5058 = vrsqrt.f32 %v3352_v48  ;;  %v3541_v30 = vpack.c.bf16 %v3483_v6, %v3481_v31  ;;  %v3540_v28 = vpack.c.bf16 %v3482_v1, %v3480_v10 }
 0x4a3   :  { %v3353_v35 = vadd.f32 1e-12, %v3305_v19 }
 0x4a4   :  { %v5055_v0 = vpop.eup %5054  ;;  %3974 = vmatprep.mubr.bf16.mxu1 %v3541_v30 }
 0x4a5   :  { %5060 = vrsqrt.f32 %v3353_v35  ;;  %v3248_v34 = vpop.xlane.xlu0 %3247  ;;  %3975 = vmatmul.mubr.bf16.gmra.mrb[168].mxu1 %v3540_v28  ;;  %v3485_v23 = vmul.f32 %v5055_v0, %v6714_v20  ;;  %v3484_v12 = vmul.f32 %v5055_v0, %v6711_v2 }
 0x4a6   :  { %v3306_v15 = vmul.f32 0.00390625, %v3248_v34  ;;  %v3796_v53 = vpop.f32.mrb[96].mxu1 }
 0x4a7   :  { %v5057_v5 = vpop.eup %5056  ;;  %v3797_v49 = vadd.f32 %v3796_v53, %v6790_v41  ;;  %v3798_v63 = vpop.f32.mrb[97].mxu1 }
 0x4a8   :  { %v3354_v54 = vadd.f32 1e-12, %v3306_v15  ;;  %v3799_v26 = vadd.f32 %v3798_v63, %v6794_v60  ;;  %v3251_v45 = vpop.xlane.xlu1 %3250  ;;  %v3800_v50 = vpop.f32.mrb[98].mxu1  ;;  %v3487_v55 = vmul.f32 %v5057_v5, %v6724_v32  ;;  %v3486_v25 = vmul.f32 %v5057_v5, %v6721_v29 }
 0x4a9   :  { %4035 = vst [vmem:[#allocation11] sm:$0xff] %v3797_v49  ;;  %v3307_v7 = vmul.f32 0.00390625, %v3251_v45  ;;  %v3801_v18 = vadd.f32 %v3800_v50, %v6790_v41  ;;  %v3802_v43 = vpop.f32.mrb[99].mxu1 }
 0x4aa   :  { %5062 = vrsqrt.f32 %v3354_v54  ;;  %4036 = vst [vmem:[#allocation11 + $0x8] sm:$0xff] %v3799_v26  ;;  %v3803_v20 = vadd.f32 %v3802_v43, %v6794_v60  ;;  %v3543_v40 = vpack.c.bf16 %v3487_v55, %v3485_v23  ;;  %v3542_v2 = vpack.c.bf16 %v3486_v25, %v3484_v12 }
 0x4ab   :  { %v3355_v4 = vadd.f32 1e-12, %v3307_v7  ;;  %4037 = vst [vmem:[#allocation11 + $0x10] sm:$0xff] %v3801_v18 }
 0x4ac   :  { %v5059_v61 = vpop.eup %5058  ;;  %4038 = vst [vmem:[#allocation11 + $0x18] sm:$0xff] %v3803_v20  ;;  %3984 = vmatprep.mubr.bf16.mxu1 %v3543_v40 }
 0x4ad   :  { %5064 = vrsqrt.f32 %v3355_v4  ;;  %3985 = vmatmul.mubr.bf16.gmra.mrb[172].mxu1 %v3542_v2  ;;  %v3489_v46 = vmul.f32 %v5059_v61, %v6738_v36  ;;  %v3488_v47 = vmul.f32 %v5059_v61, %v7398_v44 }
 0x4ae   :  { %v3806_v32 = vpop.f32.mrb[100].mxu1 }
 0x4af   :  { %v5061_v29 = vpop.eup %5060  ;;  %v3807_v42 = vadd.f32 %v3806_v32, %v6790_v41  ;;  %v3808_v14 = vpop.f32.mrb[101].mxu1 }
 0x4b0   :  { %v3809_v57 = vadd.f32 %v3808_v14, %v6794_v60  ;;  %v3810_v24 = vpop.f32.mrb[102].mxu1  ;;  %v3491_v51 = vmul.f32 %v5061_v29, %v6748_v3  ;;  %v3490_v17 = vmul.f32 %v5061_v29, %v6745_v58 }
 0x4b1   :  { %4039 = vst [vmem:[#allocation11 + $0x20] sm:$0xff] %v3807_v42  ;;  %v3811_v52 = vadd.f32 %v3810_v24, %v6790_v41  ;;  %v3812_v21 = vpop.f32.mrb[103].mxu1 }
 0x4b2   :  { %4040 = vst [vmem:[#allocation11 + $0x28] sm:$0xff] %v3809_v57  ;;  %v3813_v38 = vadd.f32 %v3812_v21, %v6794_v60  ;;  %v3545_v9 = vpack.c.bf16 %v3491_v51, %v3489_v46  ;;  %v3544_v31 = vpack.c.bf16 %v3490_v17, %v3488_v47 }
 0x4b3   :  { %4041 = vst [vmem:[#allocation11 + $0x30] sm:$0xff] %v3811_v52 }
 0x4b4   :  { %v5063_v36 = vpop.eup %5062  ;;  %4042 = vst [vmem:[#allocation11 + $0x38] sm:$0xff] %v3813_v38  ;;  %3994 = vmatprep.mubr.bf16.mxu1 %v3545_v9 }
 0x4b5   :  { %3995 = vmatmul.mubr.bf16.gmra.mrb[176].mxu1 %v3544_v31  ;;  %v3493_v58 = vmul.f32 %v5063_v36, %v6762_v11  ;;  %v3492_v19 = vmul.f32 %v5063_v36, %v6759_v62 }
 0x4b6   :  { %v3816_v48 = vpop.f32.mrb[104].mxu1 }
 0x4b7   :  { %v5065_v3 = vpop.eup %5064  ;;  %v3817_v27 = vadd.f32 %v3816_v48, %v6790_v41  ;;  %v3818_v6 = vpop.f32.mrb[105].mxu1 }
 0x4b8   :  { %v3819_v37 = vadd.f32 %v3818_v6, %v6794_v60  ;;  %v3820_v10 = vpop.f32.mrb[106].mxu1  ;;  %v3495_v1 = vmul.f32 %v5065_v3, %v6772_v8  ;;  %v3494_v30 = vmul.f32 %v5065_v3, %v6769_v56 }
 0x4b9   :  { %4043 = vst [vmem:[#allocation11 + $0x40] sm:$0xff] %v3817_v27  ;;  %v3821_v28 = vadd.f32 %v3820_v10, %v6790_v41  ;;  %v3822_v35 = vpop.f32.mrb[107].mxu1 }
 0x4ba   :  { %4044 = vst [vmem:[#allocation11 + $0x48] sm:$0xff] %v3819_v37  ;;  %v3823_v0 = vadd.f32 %v3822_v35, %v6794_v60  ;;  %v3547_v34 = vpack.c.bf16 %v3495_v1, %v3493_v58  ;;  %v3546_v15 = vpack.c.bf16 %v3494_v30, %v3492_v19 }
 0x4bb   :  { %4045 = vst [vmem:[#allocation11 + $0x50] sm:$0xff] %v3821_v28 }
 0x4bc   :  { %4046 = vst [vmem:[#allocation11 + $0x58] sm:$0xff] %v3823_v0  ;;  %4004 = vmatprep.mubr.bf16.mxu1 %v3547_v34 }
 0x4bd   :  { %4005 = vmatmul.mubr.bf16.gmra.mrb[180].mxu1 %v3546_v15 }
 0x4be   :  { %v3826_v11 = vpop.f32.mrb[108].mxu1 }
 0x4bf   :  { %v3827_v8 = vadd.f32 %v3826_v11, %v6790_v41  ;;  %v3828_v53 = vpop.f32.mrb[109].mxu1 }
 0x4c0   :  { %v3829_v62 = vadd.f32 %v3828_v53, %v6794_v60  ;;  %v3830_v56 = vpop.f32.mrb[110].mxu1 }
 0x4c1   :  { %4047 = vst [vmem:[#allocation11 + $0x60] sm:$0xff] %v3827_v8  ;;  %v3831_v5 = vadd.f32 %v3830_v56, %v6790_v41  ;;  %v3832_v49 = vpop.f32.mrb[111].mxu1 }
 0x4c2   :  { %4048 = vst [vmem:[#allocation11 + $0x68] sm:$0xff] %v3829_v62  ;;  %v3833_v63 = vadd.f32 %v3832_v49, %v6794_v60 }
 0x4c3   :  { %4049 = vst [vmem:[#allocation11 + $0x70] sm:$0xff] %v3831_v5 }
 0x4c4   :  { %4050 = vst [vmem:[#allocation11 + $0x78] sm:$0xff] %v3833_v63 }
 0x4c6   :  { %v3836_v23 = vpop.f32.mrb[112].mxu1 }
 0x4c7   :  { %v3837_v12 = vadd.f32 %v3836_v23, %v6790_v41  ;;  %v3838_v54 = vpop.f32.mrb[113].mxu1 }
 0x4c8   :  { %v3839_v26 = vadd.f32 %v3838_v54, %v6794_v60  ;;  %v3840_v45 = vpop.f32.mrb[114].mxu1 }
 0x4c9   :  { %4051 = vst [vmem:[#allocation11 + $0x80] sm:$0xff] %v3837_v12  ;;  %v3841_v50 = vadd.f32 %v3840_v45, %v6790_v41  ;;  %v3842_v55 = vpop.f32.mrb[115].mxu1 }
 0x4ca   :  { %4052 = vst [vmem:[#allocation11 + $0x88] sm:$0xff] %v3839_v26  ;;  %v3843_v25 = vadd.f32 %v3842_v55, %v6794_v60 }
 0x4cb   :  { %4053 = vst [vmem:[#allocation11 + $0x90] sm:$0xff] %v3841_v50 }
 0x4cc   :  { %4054 = vst [vmem:[#allocation11 + $0x98] sm:$0xff] %v3843_v25 }
 0x4ce   :  { %v3846_v7 = vpop.f32.mrb[116].mxu1 }
 0x4cf   :  { %v3847_v18 = vadd.f32 %v3846_v7, %v6790_v41  ;;  %v3848_v43 = vpop.f32.mrb[117].mxu1 }
 0x4d0   :  { %v3849_v20 = vadd.f32 %v3848_v43, %v6794_v60  ;;  %v3850_v40 = vpop.f32.mrb[118].mxu1 }
 0x4d1   :  { %4055 = vst [vmem:[#allocation11 + $0xa0] sm:$0xff] %v3847_v18  ;;  %v3851_v2 = vadd.f32 %v3850_v40, %v6790_v41  ;;  %v3852_v4 = vpop.f32.mrb[119].mxu1 }
 0x4d2   :  { %4056 = vst [vmem:[#allocation11 + $0xa8] sm:$0xff] %v3849_v20  ;;  %v3853_v61 = vadd.f32 %v3852_v4, %v6794_v60 }
 0x4d3   :  { %4057 = vst [vmem:[#allocation11 + $0xb0] sm:$0xff] %v3851_v2 }
 0x4d4   :  { %4058 = vst [vmem:[#allocation11 + $0xb8] sm:$0xff] %v3853_v61 }
 0x4d6   :  { %v3856_v32 = vpop.f32.mrb[120].mxu1 }
 0x4d7   :  { %v3857_v29 = vadd.f32 %v3856_v32, %v6790_v41  ;;  %v3858_v42 = vpop.f32.mrb[121].mxu1 }
 0x4d8   :  { %v3859_v14 = vadd.f32 %v3858_v42, %v6794_v60  ;;  %v3860_v46 = vpop.f32.mrb[122].mxu1 }
 0x4d9   :  { %4059 = vst [vmem:[#allocation11 + $0xc0] sm:$0xff] %v3857_v29  ;;  %v3861_v57 = vadd.f32 %v3860_v46, %v6790_v41  ;;  %v3862_v24 = vpop.f32.mrb[123].mxu1 }
 0x4da   :  { %4060 = vst [vmem:[#allocation11 + $0xc8] sm:$0xff] %v3859_v14  ;;  %v3863_v51 = vadd.f32 %v3862_v24, %v6794_v60 }
 0x4db   :  { %4061 = vst [vmem:[#allocation11 + $0xd0] sm:$0xff] %v3861_v57 }
 0x4dc   :  { %4062 = vst [vmem:[#allocation11 + $0xd8] sm:$0xff] %v3863_v51 }
 0x4de   :  { %v3866_v44 = vpop.f32.mrb[124].mxu1 }
 0x4df   :  { %v3867_v47 = vadd.f32 %v3866_v44, %v6790_v41  ;;  %v3868_v17 = vpop.f32.mrb[125].mxu1  ;;  %v7399_v44 = vld [vmem:[#allocation80_spill] sm:$0xff] }
 0x4e0   :  { %v3869_v52 = vadd.f32 %v3868_v17, %v6794_v60  ;;  %v3870_v21 = vpop.f32.mrb[126].mxu1  ;;  %v7400_v17 = vld [vmem:[#allocation81_spill] sm:$0xff] }
 0x4e1   :  { %4063 = vst [vmem:[#allocation11 + $0xe0] sm:$0xff] %v3867_v47  ;;  %v3871_v38 = vadd.f32 %v3870_v21, %v6790_v41  ;;  %v3872_v9 = vpop.f32.mrb[127].mxu1 }
 0x4e2   :  { %4064 = vst [vmem:[#allocation11 + $0xe8] sm:$0xff] %v3869_v52  ;;  %v3873_v31 = vadd.f32 %v3872_v9, %v6794_v60 }
 0x4e3   :  { %4065 = vst [vmem:[#allocation11 + $0xf0] sm:$0xff] %v3871_v38 }
 0x4e4   :  { %4066 = vst [vmem:[#allocation11 + $0xf8] sm:$0xff] %v3873_v31 }
 0x4e6   :  { %v3876_v36 = vpop.f32.mrb[128].mxu1 }
 0x4e7   :  { %v3877_v48 = vadd.f32 %v3876_v36, %v6790_v41  ;;  %v3878_v3 = vpop.f32.mrb[129].mxu1 }
 0x4e8   :  { %v3879_v27 = vadd.f32 %v3878_v3, %v6794_v60  ;;  %v3880_v6 = vpop.f32.mrb[130].mxu1 }
 0x4e9   :  { %4067 = vst [vmem:[#allocation11 + $0x100] sm:$0xff] %v3877_v48  ;;  %v3881_v58 = vadd.f32 %v3880_v6, %v6790_v41  ;;  %v3882_v37 = vpop.f32.mrb[131].mxu1 }
 0x4ea   :  { %4068 = vst [vmem:[#allocation11 + $0x108] sm:$0xff] %v3879_v27  ;;  %v3883_v10 = vadd.f32 %v3882_v37, %v6794_v60 }
 0x4eb   :  { %4069 = vst [vmem:[#allocation11 + $0x110] sm:$0xff] %v3881_v58 }
 0x4ec   :  { %4070 = vst [vmem:[#allocation11 + $0x118] sm:$0xff] %v3883_v10 }
 0x4ee   :  { %v3886_v1 = vpop.f32.mrb[132].mxu1  ;;  %v3254_v30 = vpop.xlane.xlu0 %3253 }
 0x4ef   :  { %v3887_v19 = vadd.f32 %v3886_v1, %v6790_v41  ;;  %v3888_v28 = vpop.f32.mrb[133].mxu1  ;;  %v3308_v35 = vmul.f32 0.00390625, %v3254_v30 }
 0x4f0   :  { %v3889_v0 = vadd.f32 %v3888_v28, %v6794_v60  ;;  %v3890_v34 = vpop.f32.mrb[134].mxu1 }
 0x4f1   :  { %4071 = vst [vmem:[#allocation11 + $0x120] sm:$0xff] %v3887_v19  ;;  %v3891_v15 = vadd.f32 %v3890_v34, %v6790_v41  ;;  %v3892_v11 = vpop.f32.mrb[135].mxu1  ;;  %v3356_v8 = vadd.f32 1e-12, %v3308_v35 }
 0x4f2   :  { %4072 = vst [vmem:[#allocation11 + $0x128] sm:$0xff] %v3889_v0  ;;  %v3893_v53 = vadd.f32 %v3892_v11, %v6794_v60  ;;  %v3257_v62 = vpop.xlane.xlu1 %3256 }
 0x4f3   :  { %4073 = vst [vmem:[#allocation11 + $0x130] sm:$0xff] %v3891_v15  ;;  %v3309_v56 = vmul.f32 0.00390625, %v3257_v62  ;;  %5066 = vrsqrt.f32 %v3356_v8 }
 0x4f4   :  { %4074 = vst [vmem:[#allocation11 + $0x138] sm:$0xff] %v3893_v53 }
 0x4f5   :  { %v3357_v5 = vadd.f32 1e-12, %v3309_v56 }
 0x4f6   :  { %v3896_v49 = vpop.f32.mrb[136].mxu1 }
 0x4f7   :  { %5068 = vrsqrt.f32 %v3357_v5  ;;  %v3897_v63 = vadd.f32 %v3896_v49, %v6790_v41  ;;  %v3260_v23 = vpop.xlane.xlu0 %3259  ;;  %v3898_v12 = vpop.f32.mrb[137].mxu1 }
 0x4f8   :  { %v3310_v54 = vmul.f32 0.00390625, %v3260_v23  ;;  %v3899_v26 = vadd.f32 %v3898_v12, %v6794_v60  ;;  %v3900_v45 = vpop.f32.mrb[138].mxu1 }
 0x4f9   :  { %4075 = vst [vmem:[#allocation11 + $0x140] sm:$0xff] %v3897_v63  ;;  %v3901_v50 = vadd.f32 %v3900_v45, %v6790_v41  ;;  %v3902_v55 = vpop.f32.mrb[139].mxu1 }
 0x4fa   :  { %v3358_v25 = vadd.f32 1e-12, %v3310_v54  ;;  %4076 = vst [vmem:[#allocation11 + $0x148] sm:$0xff] %v3899_v26  ;;  %v3903_v7 = vadd.f32 %v3902_v55, %v6794_v60  ;;  %v3263_v18 = vpop.xlane.xlu1 %3262 }
 0x4fb   :  { %4077 = vst [vmem:[#allocation11 + $0x150] sm:$0xff] %v3901_v50  ;;  %v3311_v43 = vmul.f32 0.00390625, %v3263_v18 }
 0x4fc   :  { %4078 = vst [vmem:[#allocation11 + $0x158] sm:$0xff] %v3903_v7  ;;  %5070 = vrsqrt.f32 %v3358_v25 }
 0x4fd   :  { %v3359_v20 = vadd.f32 1e-12, %v3311_v43  ;;  %v5067_v40 = vpop.eup %5066 }
 0x4fe   :  { %v3497_v4 = vmul.f32 %v5067_v40, %v6800_v59  ;;  %v3496_v32 = vmul.f32 %v5067_v40, %v6797_v16 }
 0x4ff   :  { %5072 = vrsqrt.f32 %v3359_v20 }
 0x501   :  { %v5069_v2 = vpop.eup %5068 }
 0x502   :  { %v3499_v61 = vmul.f32 %v5069_v2, %v6810_v33  ;;  %v3498_v29 = vmul.f32 %v5069_v2, %v6807_v39 }
 0x504   :  { %v3549_v42 = vpack.c.bf16 %v3499_v61, %v3497_v4  ;;  %v3548_v14 = vpack.c.bf16 %v3498_v29, %v3496_v32 }
 0x506   :  { %4014 = vmatprep.mubr.bf16.mxu1 %v3549_v42  ;;  %v5071_v46 = vpop.eup %5070 }
 0x507   :  { %4015 = vmatmul.mubr.bf16.gmra.mrb[184].mxu1 %v3548_v14  ;;  %v3501_v24 = vmul.f32 %v5071_v46, %v6820_v13  ;;  %v3500_v47 = vmul.f32 %v5071_v46, %v7399_v44 }
 0x509   :  { %v5073_v57 = vpop.eup %5072 }
 0x50a   :  { %v3503_v51 = vmul.f32 %v5073_v57, %v6830_v22  ;;  %v3502_v59 = vmul.f32 %v5073_v57, %v7400_v17 }
 0x50c   :  { %v3551_v52 = vpack.c.bf16 %v3503_v51, %v3501_v24  ;;  %v3550_v33 = vpack.c.bf16 %v3502_v59, %v3500_v47 }
 0x50e   :  { %4024 = vmatprep.mubr.bf16.mxu1 %v3551_v52 }
 0x50f   :  { %4025 = vmatmul.mubr.bf16.gmra.mrb[188].mxu1 %v3550_v33 }
 0x540   :  { %v3906_v16 = vpop.f32.mrb[140].mxu1 }
 0x541   :  { %v3907_v39 = vadd.f32 %v3906_v16, %v6790_v41  ;;  %v3908_v21 = vpop.f32.mrb[141].mxu1 }
 0x542   :  { %v3909_v38 = vadd.f32 %v3908_v21, %v6794_v60  ;;  %v3910_v9 = vpop.f32.mrb[142].mxu1 }
 0x543   :  { %4079 = vst [vmem:[#allocation11 + $0x160] sm:$0xff] %v3907_v39  ;;  %v3911_v13 = vadd.f32 %v3910_v9, %v6790_v41  ;;  %v3912_v31 = vpop.f32.mrb[143].mxu1 }
 0x544   :  { %4080 = vst [vmem:[#allocation11 + $0x168] sm:$0xff] %v3909_v38  ;;  %v3913_v22 = vadd.f32 %v3912_v31, %v6794_v60 }
 0x545   :  { %4081 = vst [vmem:[#allocation11 + $0x170] sm:$0xff] %v3911_v13 }
 0x546   :  { %4082 = vst [vmem:[#allocation11 + $0x178] sm:$0xff] %v3913_v22 }
 0x548   :  { %v3916_v36 = vpop.f32.mrb[144].mxu1 }
 0x549   :  { %v3917_v48 = vadd.f32 %v3916_v36, %v6790_v41  ;;  %v3918_v3 = vpop.f32.mrb[145].mxu1 }
 0x54a   :  { %v3919_v27 = vadd.f32 %v3918_v3, %v6794_v60  ;;  %v3920_v6 = vpop.f32.mrb[146].mxu1 }
 0x54b   :  { %4083 = vst [vmem:[#allocation11 + $0x180] sm:$0xff] %v3917_v48  ;;  %v3921_v58 = vadd.f32 %v3920_v6, %v6790_v41  ;;  %v3922_v37 = vpop.f32.mrb[147].mxu1 }
 0x54c   :  { %4084 = vst [vmem:[#allocation11 + $0x188] sm:$0xff] %v3919_v27  ;;  %v3923_v10 = vadd.f32 %v3922_v37, %v6794_v60 }
 0x54d   :  { %4085 = vst [vmem:[#allocation11 + $0x190] sm:$0xff] %v3921_v58 }
 0x54e   :  { %4086 = vst [vmem:[#allocation11 + $0x198] sm:$0xff] %v3923_v10 }
 0x550   :  { %v3926_v1 = vpop.f32.mrb[148].mxu1 }
 0x551   :  { %v3927_v19 = vadd.f32 %v3926_v1, %v6790_v41  ;;  %v3928_v30 = vpop.f32.mrb[149].mxu1 }
 0x552   :  { %v3929_v28 = vadd.f32 %v3928_v30, %v6794_v60  ;;  %v3930_v35 = vpop.f32.mrb[150].mxu1 }
 0x553   :  { %4087 = vst [vmem:[#allocation11 + $0x1a0] sm:$0xff] %v3927_v19  ;;  %v3931_v0 = vadd.f32 %v3930_v35, %v6790_v41  ;;  %v3932_v34 = vpop.f32.mrb[151].mxu1 }
 0x554   :  { %4088 = vst [vmem:[#allocation11 + $0x1a8] sm:$0xff] %v3929_v28  ;;  %v3933_v15 = vadd.f32 %v3932_v34, %v6794_v60 }
 0x555   :  { %4089 = vst [vmem:[#allocation11 + $0x1b0] sm:$0xff] %v3931_v0 }
 0x556   :  { %4090 = vst [vmem:[#allocation11 + $0x1b8] sm:$0xff] %v3933_v15 }
 0x558   :  { %v3936_v11 = vpop.f32.mrb[152].mxu1 }
 0x559   :  { %v3937_v8 = vadd.f32 %v3936_v11, %v6790_v41  ;;  %v3938_v53 = vpop.f32.mrb[153].mxu1 }
 0x55a   :  { %v3939_v62 = vadd.f32 %v3938_v53, %v6794_v60  ;;  %v3940_v56 = vpop.f32.mrb[154].mxu1 }
 0x55b   :  { %4091 = vst [vmem:[#allocation11 + $0x1c0] sm:$0xff] %v3937_v8  ;;  %v3941_v5 = vadd.f32 %v3940_v56, %v6790_v41  ;;  %v3942_v49 = vpop.f32.mrb[155].mxu1 }
 0x55c   :  { %4092 = vst [vmem:[#allocation11 + $0x1c8] sm:$0xff] %v3939_v62  ;;  %v3943_v63 = vadd.f32 %v3942_v49, %v6794_v60 }
 0x55d   :  { %4093 = vst [vmem:[#allocation11 + $0x1d0] sm:$0xff] %v3941_v5 }
 0x55e   :  { %4094 = vst [vmem:[#allocation11 + $0x1d8] sm:$0xff] %v3943_v63 }
 0x560   :  { %v3946_v23 = vpop.f32.mrb[156].mxu1 }
 0x561   :  { %v3947_v12 = vadd.f32 %v3946_v23, %v6790_v41  ;;  %v3948_v54 = vpop.f32.mrb[157].mxu1 }
 0x562   :  { %v3949_v26 = vadd.f32 %v3948_v54, %v6794_v60  ;;  %v3950_v45 = vpop.f32.mrb[158].mxu1 }
 0x563   :  { %4095 = vst [vmem:[#allocation11 + $0x1e0] sm:$0xff] %v3947_v12  ;;  %v3951_v50 = vadd.f32 %v3950_v45, %v6790_v41  ;;  %v3952_v55 = vpop.f32.mrb[159].mxu1 }
 0x564   :  { %4096 = vst [vmem:[#allocation11 + $0x1e8] sm:$0xff] %v3949_v26  ;;  %v3953_v25 = vadd.f32 %v3952_v55, %v6794_v60 }
 0x565   :  { %4097 = vst [vmem:[#allocation11 + $0x1f0] sm:$0xff] %v3951_v50 }
 0x566   :  { %4098 = vst [vmem:[#allocation11 + $0x1f8] sm:$0xff] %v3953_v25 }
 0x568   :  { %v3956_v7 = vpop.f32.mrb[160].mxu1 }
 0x569   :  { %v3957_v18 = vadd.f32 %v3956_v7, %v6790_v41  ;;  %v3958_v43 = vpop.f32.mrb[161].mxu1 }
 0x56a   :  { %v3959_v20 = vadd.f32 %v3958_v43, %v6794_v60  ;;  %v3960_v40 = vpop.f32.mrb[162].mxu1 }
 0x56b   :  { %4099 = vst [vmem:[#allocation11 + $0x200] sm:$0xff] %v3957_v18  ;;  %v3961_v2 = vadd.f32 %v3960_v40, %v6790_v41  ;;  %v3962_v4 = vpop.f32.mrb[163].mxu1 }
 0x56c   :  { %4100 = vst [vmem:[#allocation11 + $0x208] sm:$0xff] %v3959_v20  ;;  %v3963_v61 = vadd.f32 %v3962_v4, %v6794_v60 }
 0x56d   :  { %4101 = vst [vmem:[#allocation11 + $0x210] sm:$0xff] %v3961_v2 }
 0x56e   :  { %4102 = vst [vmem:[#allocation11 + $0x218] sm:$0xff] %v3963_v61 }
 0x570   :  { %v3966_v32 = vpop.f32.mrb[164].mxu1 }
 0x571   :  { %v3967_v29 = vadd.f32 %v3966_v32, %v6790_v41  ;;  %v3968_v42 = vpop.f32.mrb[165].mxu1 }
 0x572   :  { %v3969_v14 = vadd.f32 %v3968_v42, %v6794_v60  ;;  %v3970_v46 = vpop.f32.mrb[166].mxu1 }
 0x573   :  { %4103 = vst [vmem:[#allocation11 + $0x220] sm:$0xff] %v3967_v29  ;;  %v3971_v57 = vadd.f32 %v3970_v46, %v6790_v41  ;;  %v3972_v24 = vpop.f32.mrb[167].mxu1 }
 0x574   :  { %4104 = vst [vmem:[#allocation11 + $0x228] sm:$0xff] %v3969_v14  ;;  %v3973_v51 = vadd.f32 %v3972_v24, %v6794_v60 }
 0x575   :  { %4105 = vst [vmem:[#allocation11 + $0x230] sm:$0xff] %v3971_v57 }
 0x576   :  { %4106 = vst [vmem:[#allocation11 + $0x238] sm:$0xff] %v3973_v51 }
 0x578   :  { %v3976_v44 = vpop.f32.mrb[168].mxu1 }
 0x579   :  { %v3977_v47 = vadd.f32 %v3976_v44, %v6790_v41  ;;  %v3978_v17 = vpop.f32.mrb[169].mxu1 }
 0x57a   :  { %v3979_v59 = vadd.f32 %v3978_v17, %v6794_v60  ;;  %v3980_v52 = vpop.f32.mrb[170].mxu1 }
 0x57b   :  { %4107 = vst [vmem:[#allocation11 + $0x240] sm:$0xff] %v3977_v47  ;;  %v3981_v33 = vadd.f32 %v3980_v52, %v6790_v41  ;;  %v3982_v16 = vpop.f32.mrb[171].mxu1 }
 0x57c   :  { %4108 = vst [vmem:[#allocation11 + $0x248] sm:$0xff] %v3979_v59  ;;  %v3983_v39 = vadd.f32 %v3982_v16, %v6794_v60 }
 0x57d   :  { %4109 = vst [vmem:[#allocation11 + $0x250] sm:$0xff] %v3981_v33 }
 0x57e   :  { %4110 = vst [vmem:[#allocation11 + $0x258] sm:$0xff] %v3983_v39 }
 0x580   :  { %v3986_v21 = vpop.f32.mrb[172].mxu1 }
 0x581   :  { %v3987_v38 = vadd.f32 %v3986_v21, %v6790_v41  ;;  %v3988_v9 = vpop.f32.mrb[173].mxu1 }
 0x582   :  { %v3989_v13 = vadd.f32 %v3988_v9, %v6794_v60  ;;  %v3990_v31 = vpop.f32.mrb[174].mxu1 }
 0x583   :  { %4111 = vst [vmem:[#allocation11 + $0x260] sm:$0xff] %v3987_v38  ;;  %v3991_v22 = vadd.f32 %v3990_v31, %v6790_v41  ;;  %v3992_v36 = vpop.f32.mrb[175].mxu1 }
 0x584   :  { %4112 = vst [vmem:[#allocation11 + $0x268] sm:$0xff] %v3989_v13  ;;  %v3993_v48 = vadd.f32 %v3992_v36, %v6794_v60 }
 0x585   :  { %4113 = vst [vmem:[#allocation11 + $0x270] sm:$0xff] %v3991_v22 }
 0x586   :  { %4114 = vst [vmem:[#allocation11 + $0x278] sm:$0xff] %v3993_v48 }
 0x588   :  { %v3996_v3 = vpop.f32.mrb[176].mxu1 }
 0x589   :  { %v3997_v27 = vadd.f32 %v3996_v3, %v6790_v41  ;;  %v3998_v6 = vpop.f32.mrb[177].mxu1 }
 0x58a   :  { %v3999_v58 = vadd.f32 %v3998_v6, %v6794_v60  ;;  %v4000_v37 = vpop.f32.mrb[178].mxu1 }
 0x58b   :  { %4115 = vst [vmem:[#allocation11 + $0x280] sm:$0xff] %v3997_v27  ;;  %v4001_v10 = vadd.f32 %v4000_v37, %v6790_v41  ;;  %v4002_v1 = vpop.f32.mrb[179].mxu1 }
 0x58c   :  { %4116 = vst [vmem:[#allocation11 + $0x288] sm:$0xff] %v3999_v58  ;;  %v4003_v19 = vadd.f32 %v4002_v1, %v6794_v60 }
 0x58d   :  { %4117 = vst [vmem:[#allocation11 + $0x290] sm:$0xff] %v4001_v10 }
 0x58e   :  { %4118 = vst [vmem:[#allocation11 + $0x298] sm:$0xff] %v4003_v19 }
 0x590   :  { %v4006_v30 = vpop.f32.mrb[180].mxu1 }
 0x591   :  { %v4007_v28 = vadd.f32 %v4006_v30, %v6790_v41  ;;  %v4008_v35 = vpop.f32.mrb[181].mxu1 }
 0x592   :  { %v4009_v0 = vadd.f32 %v4008_v35, %v6794_v60  ;;  %v4010_v34 = vpop.f32.mrb[182].mxu1 }
 0x593   :  { %4119 = vst [vmem:[#allocation11 + $0x2a0] sm:$0xff] %v4007_v28  ;;  %v4011_v15 = vadd.f32 %v4010_v34, %v6790_v41  ;;  %v4012_v11 = vpop.f32.mrb[183].mxu1 }
 0x594   :  { %4120 = vst [vmem:[#allocation11 + $0x2a8] sm:$0xff] %v4009_v0  ;;  %v4013_v8 = vadd.f32 %v4012_v11, %v6794_v60 }
 0x595   :  { %4121 = vst [vmem:[#allocation11 + $0x2b0] sm:$0xff] %v4011_v15 }
 0x596   :  { %4122 = vst [vmem:[#allocation11 + $0x2b8] sm:$0xff] %v4013_v8 }
 0x5da   :  { %v4016_v53 = vpop.f32.mrb[184].mxu1 }
 0x5db   :  { %v4017_v62 = vadd.f32 %v4016_v53, %v6790_v41  ;;  %v4018_v56 = vpop.f32.mrb[185].mxu1 }
 0x5dc   :  { %v4019_v5 = vadd.f32 %v4018_v56, %v6794_v60  ;;  %v4020_v49 = vpop.f32.mrb[186].mxu1 }
 0x5dd   :  { %4123 = vst [vmem:[#allocation11 + $0x2c0] sm:$0xff] %v4017_v62  ;;  %v4021_v63 = vadd.f32 %v4020_v49, %v6790_v41  ;;  %v4022_v23 = vpop.f32.mrb[187].mxu1 }
 0x5de   :  { %4124 = vst [vmem:[#allocation11 + $0x2c8] sm:$0xff] %v4019_v5  ;;  %v4023_v12 = vadd.f32 %v4022_v23, %v6794_v60 }
 0x5df   :  { %4125 = vst [vmem:[#allocation11 + $0x2d0] sm:$0xff] %v4021_v63 }
 0x5e0   :  { %4126 = vst [vmem:[#allocation11 + $0x2d8] sm:$0xff] %v4023_v12 }
 0x5e2   :  { %v4026_v54 = vpop.f32.mrb[188].mxu1 }
 0x5e3   :  { %v4027_v26 = vadd.f32 %v4026_v54, %v6790_v41  ;;  %v4028_v45 = vpop.f32.mrb[189].mxu1 }
 0x5e4   :  { %v4029_v50 = vadd.f32 %v4028_v45, %v6794_v60  ;;  %v4030_v55 = vpop.f32.mrb[190].mxu1 }
 0x5e5   :  { %4127 = vst [vmem:[#allocation11 + $0x2e0] sm:$0xff] %v4027_v26  ;;  %v4031_v25 = vadd.f32 %v4030_v55, %v6790_v41  ;;  %v4032_v7 = vpop.f32.mrb[191].mxu1 }
 0x5e6   :  { %4128 = vst [vmem:[#allocation11 + $0x2e8] sm:$0xff] %v4029_v50  ;;  %v4033_v18 = vadd.f32 %v4032_v7, %v6794_v60 }
 0x5e7   :  { %4129 = vst [vmem:[#allocation11 + $0x2f0] sm:$0xff] %v4031_v25 }
 0x5e8   :  { %4130 = vst [vmem:[#allocation11 + $0x2f8] sm:$0xff] %v4033_v18 }
 0x5e9   :  { %5195 = shalt.err (!%p5192_p2)
}
 0x5ea   :  { %s5196_s12 = scalar_lea.hbm %s7004_s5, 12288 }
 0x5eb   :  { %p5197_p3 = scmp.ne.s32.totalorder %s7004_s5, %s5196_s12  ;;  %p5200_p4 = scmp.lt.u32.totalorder %s5196_s12, %s7004_s5 }
 0x5ed   :  { %p5202_p5 = pnand %p5200_p4, %p5197_p3 }
 0x5ef   :  { %5205 = shalt.err (!%p5202_p5)
}
 0x5f0   :  { %4142 = dma.vmem_to_hbm [thread:$0]  %s4137_s19, 12288, %s7004_s5, [#allocation4], %s5215_s28, %s5215_s28, %s5216_s29  }
 0x5f1   :  { %5212 = dma.done.wait [#allocation4], 12288  }
 0x5f2   :  { %5213 = vsyncadd [#allocation4], 4294955008 }
 0x5f3   :  { %4146 = vsyncpa [#allocation3], 1 }
 0x5f4   :  { %4147 = vsyncpa [#allocation6], 1 }
 0x5f5   :  { %4148 = vsyncpa [#allocation9], 1 }
 0x5f6   :  { %4149 = vsyncpa [#allocation4], 1 }

</bundles_post_ra>
